<compile_context>
chip_gen: v7x
topology: tpu7x:2x2x1
jax: 0.10.0
libtpu: 0.0.40
codegen_flags: <defaults>
</compile_context>

<pallas_src>
import math
import functools

import numpy as np
import jax
import jax.numpy as jnp
from jax.experimental import pallas as pl
from jax.experimental.pallas import tpu as pltpu


# ----------------------------------------------------------------------------
# Fused decoder kernel (one grid step == one decoder layer on one batch element)
# ----------------------------------------------------------------------------
def fused_decoder_kernel(*refs, heads, causal, mxu_dtype):
    if causal:
        x0_ref, e_ref, srcm_ref = refs[:3]
        rest = refs[3:]
        trgm_ref = None
    else:
        x0_ref, e_ref, srcm_ref, trgm_ref = refs[:4]
        rest = refs[4:]
    (na_ref, nb_ref,
     wqkv1_ref, bqkv1_ref, wo1_ref, bo1_ref,
     wq2_ref, bq2_ref, wkv2_ref, bkv2_ref, wo2_ref, bo2_ref,
     ffw1_ref, ffb1_ref, ffw2_ref, ffb2_ref,
     fa_ref, fb_ref,
     o_ref) = rest

    f32 = jnp.float32
    t_len, d = x0_ref.shape
    dk = d // heads
    scale = 1.0 / math.sqrt(dk)

    layer = pl.program_id(1)
    n_layers = pl.num_programs(1)

    # ---- load the precomputed (emb * sqrt(d) + PE) rows once per row block ----
    @pl.when(layer == 0)
    def _init():
        o_ref[...] = x0_ref[...]

    x = o_ref[...]                           # resident activations, (T, D) f32
    e = e_ref[...].astype(mxu_dtype)         # encoder outputs, matmul operand only
    na = na_ref[...]                         # (3, D): norm_1/2/3 scales
    nb = nb_ref[...]                         # (3, D): norm_1/2/3 biases

    def layer_norm(v, alpha, beta):
        # alpha * (v - mean) / (std_unbiased + eps) + beta   (matches the torch Norm)
        mean = jnp.mean(v, axis=-1, keepdims=True)
        c = v - mean
        var = jnp.sum(c * c, axis=-1, keepdims=True) * (1.0 / (d - 1))
        inv = 1.0 / (jnp.sqrt(var) + 1e-6)   # exact: per-row scalar, compounds over layers
        return alpha * c * inv + beta

    # keep-masks (True = attend)
    if causal:
        r_ix = jax.lax.broadcasted_iota(jnp.int32, (t_len, t_len), 0)
        c_ix = jax.lax.broadcasted_iota(jnp.int32, (t_len, t_len), 1)
        trg_keep = r_ix >= c_ix              # (T, T), zero-DMA causal mask
    else:
        trg_keep = trgm_ref[0] > 0.0         # (T, T)
    src_keep = srcm_ref[0] > 0.0             # (1, S)

    def mha(q_mat, k_mat, v_mat, keep, wo_ref, bo_ref):
        # q_mat: (T, D); k_mat / v_mat: (L, D); keep broadcastable to (T, L).
        # Head split = one stack of static lane slices per operand (single relayout);
        # everything that hits the MXU is head-batched or fully merged.
        qh = jnp.stack([q_mat[:, h * dk:(h + 1) * dk] for h in range(heads)],
                       axis=0).astype(mxu_dtype)                       # (H, T, dk)
        kh = jnp.stack([k_mat[:, h * dk:(h + 1) * dk] for h in range(heads)],
                       axis=0).astype(mxu_dtype)                       # (H, L, dk)
        vh = jnp.stack([v_mat[:, h * dk:(h + 1) * dk] for h in range(heads)],
                       axis=0).astype(mxu_dtype)                       # (H, L, dk)
        s = jnp.einsum('htd,hsd->hts', qh, kh, preferred_element_type=f32) * scale
        s = jnp.where(keep[None], s, -1e9)                             # masked_fill(mask==0)
        s = s - jnp.max(s, axis=-1, keepdims=True)
        p = jnp.exp(s)
        p = p * pl.reciprocal(jnp.sum(p, axis=-1, keepdims=True), approx=True)
        av = jnp.einsum('hts,hsd->htd', p.astype(mxu_dtype), vh,
                        preferred_element_type=f32)                    # (H, T, dk)
        # concat(heads) @ Wo as ONE K=D matmul (instead of H small K=dk matmuls)
        cat = jnp.concatenate([av[h] for h in range(heads)], axis=-1)  # (T, D)
        return (jnp.dot(cat.astype(mxu_dtype), wo_ref[...], preferred_element_type=f32)
                + bo_ref[...])

    # ---- sublayer 1: masked self-attention (fused QKV projection) ----
    x2 = layer_norm(x, na[0:1, :], nb[0:1, :])
    qkv = (jnp.dot(x2.astype(mxu_dtype), wqkv1_ref[...], preferred_element_type=f32)
           + bqkv1_ref[...])
    x = x + mha(qkv[:, 0:d], qkv[:, d:2 * d], qkv[:, 2 * d:3 * d], trg_keep,
                wo1_ref, bo1_ref)

    # ---- sublayer 2: encoder-decoder cross-attention (fused K|V projection) ----
    x2 = layer_norm(x, na[1:2, :], nb[1:2, :])
    q = jnp.dot(x2.astype(mxu_dtype), wq2_ref[...], preferred_element_type=f32) + bq2_ref[...]
    kv = jnp.dot(e, wkv2_ref[...], preferred_element_type=f32) + bkv2_ref[...]
    x = x + mha(q, kv[:, 0:d], kv[:, d:2 * d], src_keep, wo2_ref, bo2_ref)

    # ---- sublayer 3: position-wise feed-forward ----
    x2 = layer_norm(x, na[2:3, :], nb[2:3, :])
    h1 = jnp.maximum(
        jnp.dot(x2.astype(mxu_dtype), ffw1_ref[...], preferred_element_type=f32) + ffb1_ref[...],
        0.0)
    x = x + jnp.dot(h1.astype(mxu_dtype), ffw2_ref[...], preferred_element_type=f32) + ffb2_ref[...]

    # ---- write back (activations stay resident across the layer axis) ----
    @pl.when(layer == n_layers - 1)
    def _final():
        o_ref[...] = layer_norm(x, fa_ref[...], fb_ref[...]).astype(o_ref.dtype)

    @pl.when(layer < n_layers - 1)
    def _carry():
        o_ref[...] = x.astype(o_ref.dtype)


# ----------------------------------------------------------------------------
# Positional-encoding table (classic Samuel-Lynn-Evans construction)
# ----------------------------------------------------------------------------
def make_pe(seq_len, d_model):
    pos = jnp.arange(seq_len, dtype=jnp.float32)[:, None]
    i = jnp.arange(0, d_model, 2, dtype=jnp.float32)
    pe_sin = jnp.sin(pos / (10000.0 ** (2.0 * i / d_model)))
    pe_cos = jnp.cos(pos / (10000.0 ** (2.0 * (i + 1.0) / d_model)))
    pe = jnp.zeros((seq_len, d_model), jnp.float32)
    pe = pe.at[:, 0::2].set(pe_sin)
    pe = pe.at[:, 1::2].set(pe_cos)
    return pe


# ----------------------------------------------------------------------------
# Wrapper: one pallas_call for the whole decoder stack
# ----------------------------------------------------------------------------
def decoder_forward(trg, e_outputs, src_mask, trg_mask, params, heads,
                    mxu_dtype=jnp.bfloat16):
    """Forward pass of the Decoder. trg_mask=None -> causal mask generated in-kernel."""
    emb = params["embed"]
    d_model = emb.shape[1]
    B, T = trg.shape
    S = e_outputs.shape[1]
    n_layers = params["na"].shape[0]
    causal = trg_mask is None
    assert d_model % heads == 0

    # Embedding gather, * sqrt(d_model) and PE add in XLA (free glue): one f32 stream.
    x0 = (jnp.take(emb, trg, axis=0) * math.sqrt(d_model)
          + make_pe(T, d_model)[None]).astype(jnp.float32).reshape(B * T, d_model)

    # Encoder outputs are only ever a matmul operand: stream in bf16 when the per-block
    # sublane count is bf16-tile aligned, otherwise keep f32.
    e_dt = mxu_dtype if S % 16 == 0 else jnp.float32
    e_flat = e_outputs.astype(e_dt).reshape(B * S, d_model)

    # One batch element per row block -> grid axis 0 has B >= 2 parallel blocks
    # (megacore sharding on v7x); the layer axis is the resident/arbitrary axis.
    grid = (B, n_layers)

    w = lambda a: a.astype(mxu_dtype)   # matmul weights streamed in bf16

    inputs = [x0, e_flat, src_mask.astype(jnp.float32)]
    in_specs = [pl.BlockSpec((T, d_model), lambda g, l: (g, 0)),
                pl.BlockSpec((S, d_model), lambda g, l: (g, 0)),
                pl.BlockSpec((1, 1, S), lambda g, l: (g, 0, 0))]
    if not causal:
        inputs.append(trg_mask.astype(jnp.float32))
        in_specs.append(pl.BlockSpec((1, T, T), lambda g, l: (g, 0, 0)))

    layer_arrays = [
        params["na"], params["nb"],
        w(params["wqkv1"]), params["bqkv1"], w(params["wo1"]), params["bo1"],
        w(params["wq2"]), params["bq2"], w(params["wkv2"]), params["bkv2"],
        w(params["wo2"]), params["bo2"],
        w(params["ffw1"]), params["ffb1"], w(params["ffw2"]), params["ffb2"],
    ]
    inputs += layer_arrays
    in_specs += [pl.BlockSpec((None,) + tuple(a.shape[1:]), lambda g, l: (l, 0, 0))
                 for a in layer_arrays]

    inputs += [params["fa"], params["fb"]]
    in_specs += [pl.BlockSpec(tuple(params["fa"].shape), lambda g, l: (0, 0)),
                 pl.BlockSpec(tuple(params["fb"].shape), lambda g, l: (0, 0))]

    kernel = functools.partial(fused_decoder_kernel, heads=heads, causal=causal,
                               mxu_dtype=mxu_dtype)

    out_flat = pl.pallas_call(
        kernel,
        grid=grid,
        in_specs=in_specs,
        out_specs=pl.BlockSpec((T, d_model), lambda g, l: (g, 0)),
        out_shape=jax.ShapeDtypeStruct((B * T, d_model), jnp.float32),
        compiler_params=pltpu.CompilerParams(
            dimension_semantics=("parallel", "arbitrary"),
            vmem_limit_bytes=64 * 1024 * 1024),
    )(*inputs)
    return out_flat.reshape(B, T, d_model)


# ----------------------------------------------------------------------------
# Deterministic synthetic parameters (stacked along a leading layer axis)
# ----------------------------------------------------------------------------
def init_params(key, vocab_size, d_model, n_layers, heads, d_ff):
    D, F = d_model, d_ff
    k_emb, k_na, k_nb, k_fa, k_fb, k_lin = jax.random.split(key, 6)
    kws = jax.random.split(k_lin, 14)

    def lin_w(k, din, dout):
        b = 1.0 / math.sqrt(din)
        return jax.random.uniform(k, (n_layers, din, dout), jnp.float32, -b, b)

    def lin_b(k, din, dout):
        b = 1.0 / math.sqrt(din)
        return jax.random.uniform(k, (n_layers, 1, dout), jnp.float32, -b, b)

    return {
        "embed": jax.random.normal(k_emb, (vocab_size, D), jnp.float32) * 0.02,
        "na": 1.0 + 0.1 * jax.random.normal(k_na, (n_layers, 3, D), jnp.float32),
        "nb": 0.1 * jax.random.normal(k_nb, (n_layers, 3, D), jnp.float32),
        "wqkv1": lin_w(kws[0], D, 3 * D), "bqkv1": lin_b(kws[1], D, 3 * D),
        "wo1": lin_w(kws[2], D, D), "bo1": lin_b(kws[3], D, D),
        "wq2": lin_w(kws[4], D, D), "bq2": lin_b(kws[5], D, D),
        "wkv2": lin_w(kws[6], D, 2 * D), "bkv2": lin_b(kws[7], D, 2 * D),
        "wo2": lin_w(kws[8], D, D), "bo2": lin_b(kws[9], D, D),
        "ffw1": lin_w(kws[10], D, F), "ffb1": lin_b(kws[11], D, F),
        "ffw2": lin_w(kws[12], F, D), "ffb2": lin_b(kws[13], F, D),
        "fa": 1.0 + 0.1 * jax.random.normal(k_fa, (1, D), jnp.float32),
        "fb": 0.1 * jax.random.normal(k_fb, (1, D), jnp.float32),
    }


# ----------------------------------------------------------------------------
# Pure-JAX float32 reference (faithful mirror of the PyTorch Decoder)
# ----------------------------------------------------------------------------
def reference_forward(trg, e_outputs, src_mask, trg_mask, params, heads):
    emb = params["embed"]
    d = emb.shape[1]
    B, T = trg.shape
    dk = d // heads

    def norm(v, alpha, beta, eps=1e-6):
        mean = jnp.mean(v, axis=-1, keepdims=True)
        std = jnp.sqrt(jnp.sum((v - mean) ** 2, axis=-1, keepdims=True) / (d - 1))
        return alpha * (v - mean) / (std + eps) + beta

    def mha(q_in, kv_in, mask, wq, bq, wk, bk, wv, bv, wo, bo):
        lq, lk = q_in.shape[1], kv_in.shape[1]
        q = (q_in @ wq + bq).reshape(B, lq, heads, dk).transpose(0, 2, 1, 3)
        k = (kv_in @ wk + bk).reshape(B, lk, heads, dk).transpose(0, 2, 1, 3)
        v = (kv_in @ wv + bv).reshape(B, lk, heads, dk).transpose(0, 2, 1, 3)
        s = q @ jnp.swapaxes(k, -1, -2) / math.sqrt(dk)
        s = jnp.where(mask[:, None] > 0, s, -1e9)
        p = jax.nn.softmax(s, axis=-1)
        o = (p @ v).transpose(0, 2, 1, 3).reshape(B, lq, d)
        return o @ wo + bo

    x = jnp.take(emb, trg, axis=0) * math.sqrt(d) + make_pe(T, d)[None]
    for i in range(params["na"].shape[0]):
        na, nb = params["na"][i], params["nb"][i]
        wqkv, bqkv = params["wqkv1"][i], params["bqkv1"][i]
        x2 = norm(x, na[0:1], nb[0:1])
        x = x + mha(x2, x2, trg_mask,
                    wqkv[:, :d], bqkv[:, :d], wqkv[:, d:2 * d], bqkv[:, d:2 * d],
                    wqkv[:, 2 * d:], bqkv[:, 2 * d:], params["wo1"][i], params["bo1"][i])
        x2 = norm(x, na[1:2], nb[1:2])
        wkv, bkv = params["wkv2"][i], params["bkv2"][i]
        x = x + mha(x2, e_outputs, src_mask,
                    params["wq2"][i], params["bq2"][i],
                    wkv[:, :d], bkv[:, :d], wkv[:, d:], bkv[:, d:],
                    params["wo2"][i], params["bo2"][i])
        x2 = norm(x, na[2:3], nb[2:3])
        h = jax.nn.relu(x2 @ params["ffw1"][i] + params["ffb1"][i])
        x = x + h @ params["ffw2"][i] + params["ffb2"][i]
    return norm(x, params["fa"], params["fb"])


if __name__ == "__main__":
    # Lane-dense demo shapes: d_model / d_ff multiples of 128 lanes, rows multiples of 8.
    vocab_size, d_model, n_layers, heads = 50, 128, 2, 4   # dropout is identity at inference
    d_ff = 256
    B, T, S = 2, 8, 16

    key = jax.random.PRNGKey(0)
    k_params, k_trg, k_enc = jax.random.split(key, 3)
    params = init_params(k_params, vocab_size, d_model, n_layers, heads, d_ff)

    trg = jax.random.randint(k_trg, (B, T), 0, vocab_size)
    e_outputs = jax.random.normal(k_enc, (B, S, d_model), jnp.float32)
    src_mask = jnp.ones((B, 1, S), jnp.float32)                                        # all valid
    trg_mask = jnp.broadcast_to(jnp.tril(jnp.ones((T, T), jnp.float32)), (B, T, T))    # causal

    # Fused decoder: causal target mask generated in-kernel (no (B,T,T) DMA) ...
    out = decoder_forward(trg, e_outputs, src_mask, None, params, heads)
    # ... and the general path with an explicitly supplied target mask.
    out_explicit = decoder_forward(trg, e_outputs, src_mask, trg_mask, params, heads)
    jax.block_until_ready((out, out_explicit))

    ref = jax.block_until_ready(
        reference_forward(trg, e_outputs, src_mask, trg_mask, params, heads))

    np.testing.assert_allclose(np.asarray(out), np.asarray(ref), rtol=5e-2, atol=5e-2)
    np.testing.assert_allclose(np.asarray(out_explicit), np.asarray(ref), rtol=5e-2, atol=5e-2)
    assert out.shape == (B, T, d_model)
    print("KERNEL_OK")
</pallas_src>

<mosaic_0001>
module attributes {stable_mosaic.version = 11 : i64} {
  func.func @fused_decoder_kernel(%arg0: i32, %arg1: i32, %arg2: memref<8x128xf32, #tpu.memory_space<vmem>>, %arg3: memref<16x128xbf16, #tpu.memory_space<vmem>>, %arg4: memref<1x1x16xf32, #tpu.memory_space<vmem>>, %arg5: memref<1x3x128xf32, #tpu.memory_space<vmem>>, %arg6: memref<1x3x128xf32, #tpu.memory_space<vmem>>, %arg7: memref<1x128x384xbf16, #tpu.memory_space<vmem>>, %arg8: memref<1x1x384xf32, #tpu.memory_space<vmem>>, %arg9: memref<1x128x128xbf16, #tpu.memory_space<vmem>>, %arg10: memref<1x1x128xf32, #tpu.memory_space<vmem>>, %arg11: memref<1x128x128xbf16, #tpu.memory_space<vmem>>, %arg12: memref<1x1x128xf32, #tpu.memory_space<vmem>>, %arg13: memref<1x128x256xbf16, #tpu.memory_space<vmem>>, %arg14: memref<1x1x256xf32, #tpu.memory_space<vmem>>, %arg15: memref<1x128x128xbf16, #tpu.memory_space<vmem>>, %arg16: memref<1x1x128xf32, #tpu.memory_space<vmem>>, %arg17: memref<1x128x256xbf16, #tpu.memory_space<vmem>>, %arg18: memref<1x1x256xf32, #tpu.memory_space<vmem>>, %arg19: memref<1x256x128xbf16, #tpu.memory_space<vmem>>, %arg20: memref<1x1x128xf32, #tpu.memory_space<vmem>>, %arg21: memref<1x128xf32, #tpu.memory_space<vmem>>, %arg22: memref<1x128xf32, #tpu.memory_space<vmem>>, %arg23: memref<8x128xf32, #tpu.memory_space<vmem>>) attributes {dimension_semantics = [#tpu.dimension_semantics<parallel>, #tpu.dimension_semantics<arbitrary>], iteration_bounds = array<i64: 2, 2>, scalar_prefetch = 0 : i64, scratch_operands = 0 : i64, tpu.core_type = #tpu.core_type<tc>, window_params = [{transform_indices = @transform_0, window_bounds = array<i64: 8, 128>}, {transform_indices = @transform_1, window_bounds = array<i64: 16, 128>}, {transform_indices = @transform_2, window_bounds = array<i64: 1, 1, 16>}, {transform_indices = @transform_3, window_bounds = array<i64: 1, 3, 128>}, {transform_indices = @transform_4, window_bounds = array<i64: 1, 3, 128>}, {transform_indices = @transform_5, window_bounds = array<i64: 1, 128, 384>}, {transform_indices = @transform_6, window_bounds = array<i64: 1, 1, 384>}, {transform_indices = @transform_7, window_bounds = array<i64: 1, 128, 128>}, {transform_indices = @transform_8, window_bounds = array<i64: 1, 1, 128>}, {transform_indices = @transform_9, window_bounds = array<i64: 1, 128, 128>}, {transform_indices = @transform_10, window_bounds = array<i64: 1, 1, 128>}, {transform_indices = @transform_11, window_bounds = array<i64: 1, 128, 256>}, {transform_indices = @transform_12, window_bounds = array<i64: 1, 1, 256>}, {transform_indices = @transform_13, window_bounds = array<i64: 1, 128, 128>}, {transform_indices = @transform_14, window_bounds = array<i64: 1, 1, 128>}, {transform_indices = @transform_15, window_bounds = array<i64: 1, 128, 256>}, {transform_indices = @transform_16, window_bounds = array<i64: 1, 1, 256>}, {transform_indices = @transform_17, window_bounds = array<i64: 1, 256, 128>}, {transform_indices = @transform_18, window_bounds = array<i64: 1, 1, 128>}, {pipeline_mode = #tpu.pipeline_mode<synchronous>, transform_indices = @transform_19, window_bounds = array<i64: 1, 128>}, {pipeline_mode = #tpu.pipeline_mode<synchronous>, transform_indices = @transform_20, window_bounds = array<i64: 1, 128>}, {transform_indices = @transform_21, window_bounds = array<i64: 8, 128>}]} {
    %c0_i32 = arith.constant 0 : i32
    %0 = arith.cmpi eq, %arg1, %c0_i32 : i32
    %1 = arith.extui %0 : i1 to i32
    %c0_i32_0 = arith.constant 0 : i32
    %2 = arith.cmpi ne, %1, %c0_i32_0 : i32
    scf.if %2 {
      %c0_96 = arith.constant 0 : index
      %c0_97 = arith.constant 0 : index
      %277 = vector.load %arg2[%c0_96, %c0_97] : memref<8x128xf32, #tpu.memory_space<vmem>>, vector<8x128xf32>
      %c0_98 = arith.constant 0 : index
      %c0_99 = arith.constant 0 : index
      %278 = vector.load %arg23[%c0_98, %c0_99] : memref<8x128xf32, #tpu.memory_space<vmem>>, vector<8x128xf32>
      tpu.vector_store %arg23[%c0_98, %c0_99], %277 {strides = array<i32>} : memref<8x128xf32, #tpu.memory_space<vmem>>, vector<8x128xf32>,
    } else {
    }
    %c0 = arith.constant 0 : index
    %c0_1 = arith.constant 0 : index
    %3 = vector.load %arg23[%c0, %c0_1] : memref<8x128xf32, #tpu.memory_space<vmem>>, vector<8x128xf32>
    %c0_2 = arith.constant 0 : index
    %c0_3 = arith.constant 0 : index
    %4 = vector.load %arg3[%c0_2, %c0_3] : memref<16x128xbf16, #tpu.memory_space<vmem>>, vector<16x128xbf16>
    %c0_4 = arith.constant 0 : index
    %c0_5 = arith.constant 0 : index
    %c0_6 = arith.constant 0 : index
    %5 = vector.load %arg5[%c0_4, %c0_5, %c0_6] : memref<1x3x128xf32, #tpu.memory_space<vmem>>, vector<1x3x128xf32>
    %6 = vector.shape_cast %5 : vector<1x3x128xf32> to vector<3x128xf32>
    %c0_7 = arith.constant 0 : index
    %c0_8 = arith.constant 0 : index
    %c0_9 = arith.constant 0 : index
    %7 = vector.load %arg6[%c0_7, %c0_8, %c0_9] : memref<1x3x128xf32, #tpu.memory_space<vmem>>, vector<1x3x128xf32>
    %8 = vector.shape_cast %7 : vector<1x3x128xf32> to vector<3x128xf32>
    %9 = tpu.iota {dimensions = array<i32: 0>} : vector<8x8xi32>
    %10 = tpu.iota {dimensions = array<i32: 1>} : vector<8x8xi32>
    %11 = arith.cmpi sge, %9, %10 : vector<8x8xi32>
    %c0_10 = arith.constant 0 : index
    %c0_11 = arith.constant 0 : index
    %c0_12 = arith.constant 0 : index
    %12 = vector.load %arg4[%c0_10, %c0_11, %c0_12] : memref<1x1x16xf32, #tpu.memory_space<vmem>>, vector<1x1x16xf32>
    %13 = vector.shape_cast %12 : vector<1x1x16xf32> to vector<1x16xf32>
    %cst = arith.constant 0.000000e+00 : f32
    %14 = vector.broadcast %cst : f32 to vector<1x16xf32>
    %15 = arith.cmpf ogt, %13, %14 : vector<1x16xf32>
    %16 = vector.extract_strided_slice %6 {offsets = [0, 0], sizes = [1, 128], strides = [1, 1]} : vector<3x128xf32> to vector<1x128xf32>
    %17 = vector.extract_strided_slice %8 {offsets = [0, 0], sizes = [1, 128], strides = [1, 1]} : vector<3x128xf32> to vector<1x128xf32>
    %cst_13 = arith.constant dense<0.000000e+00> : vector<8xf32>
    %18 = vector.multi_reduction <add>, %3, %cst_13 [1] : vector<8x128xf32> to vector<8xf32>
    %19 = vector.shape_cast %18 : vector<8xf32> to vector<8x1xf32>
    %cst_14 = arith.constant 1.280000e+02 : f32
    %20 = vector.broadcast %cst_14 : f32 to vector<8x1xf32>
    %21 = arith.divf %19, %20 : vector<8x1xf32>
    %22 = vector.broadcast %21 : vector<8x1xf32> to vector<8x128xf32>
    %23 = arith.subf %3, %22 : vector<8x128xf32>
    %24 = arith.mulf %23, %23 : vector<8x128xf32>
    %cst_15 = arith.constant dense<0.000000e+00> : vector<8xf32>
    %25 = vector.multi_reduction <add>, %24, %cst_15 [1] : vector<8x128xf32> to vector<8xf32>
    %26 = vector.shape_cast %25 : vector<8xf32> to vector<8x1xf32>
    %cst_16 = arith.constant 0.00787401571 : f32
    %27 = vector.broadcast %cst_16 : f32 to vector<8x1xf32>
    %28 = arith.mulf %26, %27 : vector<8x1xf32>
    %29 = math.sqrt %28 : vector<8x1xf32>
    %cst_17 = arith.constant 9.99999997E-7 : f32
    %30 = vector.broadcast %cst_17 : f32 to vector<8x1xf32>
    %31 = arith.addf %29, %30 : vector<8x1xf32>
    %cst_18 = arith.constant 1.000000e+00 : f32
    %32 = vector.broadcast %cst_18 : f32 to vector<8x1xf32>
    %33 = arith.divf %32, %31 : vector<8x1xf32>
    %34 = vector.broadcast %16 : vector<1x128xf32> to vector<8x128xf32>
    %35 = arith.mulf %34, %23 : vector<8x128xf32>
    %36 = vector.broadcast %33 : vector<8x1xf32> to vector<8x128xf32>
    %37 = arith.mulf %35, %36 : vector<8x128xf32>
    %38 = vector.broadcast %17 : vector<1x128xf32> to vector<8x128xf32>
    %39 = arith.addf %37, %38 : vector<8x128xf32>
    %40 = arith.truncf %39 : vector<8x128xf32> to vector<8x128xbf16>
    %c0_19 = arith.constant 0 : index
    %c0_20 = arith.constant 0 : index
    %c0_21 = arith.constant 0 : index
    %41 = vector.load %arg7[%c0_19, %c0_20, %c0_21] : memref<1x128x384xbf16, #tpu.memory_space<vmem>>, vector<1x128x384xbf16>
    %42 = vector.shape_cast %41 : vector<1x128x384xbf16> to vector<128x384xbf16>
    %cst_22 = arith.constant dense<0.000000e+00> : vector<8x384xf32>
    %43 = tpu.matmul %40, %42, %cst_22 {dimension_numbers = #tpu.dot_dimension_numbers<[1], [0], [0], [1], [0, 0, 1, 1], [], []>} : vector<8x128xbf16>, vector<128x384xbf16>, vector<8x384xf32> -> vector<8x384xf32>
    %c0_23 = arith.constant 0 : index
    %c0_24 = arith.constant 0 : index
    %c0_25 = arith.constant 0 : index
    %44 = vector.load %arg8[%c0_23, %c0_24, %c0_25] : memref<1x1x384xf32, #tpu.memory_space<vmem>>, vector<1x1x384xf32>
    %45 = vector.shape_cast %44 : vector<1x1x384xf32> to vector<1x384xf32>
    %46 = vector.broadcast %45 : vector<1x384xf32> to vector<8x384xf32>
    %47 = arith.addf %43, %46 : vector<8x384xf32>
    %48 = vector.extract_strided_slice %47 {offsets = [0, 0], sizes = [8, 128], strides = [1, 1]} : vector<8x384xf32> to vector<8x128xf32>
    %49 = vector.extract_strided_slice %47 {offsets = [0, 128], sizes = [8, 128], strides = [1, 1]} : vector<8x384xf32> to vector<8x128xf32>
    %50 = vector.extract_strided_slice %47 {offsets = [0, 256], sizes = [8, 128], strides = [1, 1]} : vector<8x384xf32> to vector<8x128xf32>
    %51 = vector.extract_strided_slice %48 {offsets = [0, 0], sizes = [8, 32], strides = [1, 1]} : vector<8x128xf32> to vector<8x32xf32>
    %52 = vector.extract_strided_slice %48 {offsets = [0, 32], sizes = [8, 32], strides = [1, 1]} : vector<8x128xf32> to vector<8x32xf32>
    %53 = vector.extract_strided_slice %48 {offsets = [0, 64], sizes = [8, 32], strides = [1, 1]} : vector<8x128xf32> to vector<8x32xf32>
    %54 = vector.extract_strided_slice %48 {offsets = [0, 96], sizes = [8, 32], strides = [1, 1]} : vector<8x128xf32> to vector<8x32xf32>
    %55 = vector.shape_cast %51 : vector<8x32xf32> to vector<1x8x32xf32>
    %56 = vector.shape_cast %52 : vector<8x32xf32> to vector<1x8x32xf32>
    %57 = vector.shape_cast %53 : vector<8x32xf32> to vector<1x8x32xf32>
    %58 = vector.shape_cast %54 : vector<8x32xf32> to vector<1x8x32xf32>
    %59 = tpu.concatenate %55, %56, %57, %58 in 0 : vector<1x8x32xf32>, vector<1x8x32xf32>, vector<1x8x32xf32>, vector<1x8x32xf32> -> vector<4x8x32xf32>
    %60 = arith.truncf %59 : vector<4x8x32xf32> to vector<4x8x32xbf16>
    %61 = vector.extract_strided_slice %49 {offsets = [0, 0], sizes = [8, 32], strides = [1, 1]} : vector<8x128xf32> to vector<8x32xf32>
    %62 = vector.extract_strided_slice %49 {offsets = [0, 32], sizes = [8, 32], strides = [1, 1]} : vector<8x128xf32> to vector<8x32xf32>
    %63 = vector.extract_strided_slice %49 {offsets = [0, 64], sizes = [8, 32], strides = [1, 1]} : vector<8x128xf32> to vector<8x32xf32>
    %64 = vector.extract_strided_slice %49 {offsets = [0, 96], sizes = [8, 32], strides = [1, 1]} : vector<8x128xf32> to vector<8x32xf32>
    %65 = vector.shape_cast %61 : vector<8x32xf32> to vector<1x8x32xf32>
    %66 = vector.shape_cast %62 : vector<8x32xf32> to vector<1x8x32xf32>
    %67 = vector.shape_cast %63 : vector<8x32xf32> to vector<1x8x32xf32>
    %68 = vector.shape_cast %64 : vector<8x32xf32> to vector<1x8x32xf32>
    %69 = tpu.concatenate %65, %66, %67, %68 in 0 : vector<1x8x32xf32>, vector<1x8x32xf32>, vector<1x8x32xf32>, vector<1x8x32xf32> -> vector<4x8x32xf32>
    %70 = arith.truncf %69 : vector<4x8x32xf32> to vector<4x8x32xbf16>
    %71 = vector.extract_strided_slice %50 {offsets = [0, 0], sizes = [8, 32], strides = [1, 1]} : vector<8x128xf32> to vector<8x32xf32>
    %72 = vector.extract_strided_slice %50 {offsets = [0, 32], sizes = [8, 32], strides = [1, 1]} : vector<8x128xf32> to vector<8x32xf32>
    %73 = vector.extract_strided_slice %50 {offsets = [0, 64], sizes = [8, 32], strides = [1, 1]} : vector<8x128xf32> to vector<8x32xf32>
    %74 = vector.extract_strided_slice %50 {offsets = [0, 96], sizes = [8, 32], strides = [1, 1]} : vector<8x128xf32> to vector<8x32xf32>
    %75 = vector.shape_cast %71 : vector<8x32xf32> to vector<1x8x32xf32>
    %76 = vector.shape_cast %72 : vector<8x32xf32> to vector<1x8x32xf32>
    %77 = vector.shape_cast %73 : vector<8x32xf32> to vector<1x8x32xf32>
    %78 = vector.shape_cast %74 : vector<8x32xf32> to vector<1x8x32xf32>
    %79 = tpu.concatenate %75, %76, %77, %78 in 0 : vector<1x8x32xf32>, vector<1x8x32xf32>, vector<1x8x32xf32>, vector<1x8x32xf32> -> vector<4x8x32xf32>
    %80 = arith.truncf %79 : vector<4x8x32xf32> to vector<4x8x32xbf16>
    "tpu.trace_start"() <{level = 10 : i32, message = "htd,hsd->hts"}> : () -> ()
    %cst_26 = arith.constant dense<0.000000e+00> : vector<4x8x8xf32>
    %81 = tpu.matmul %60, %70, %cst_26 {dimension_numbers = #tpu.dot_dimension_numbers<[2], [2], [1], [1], [0, 0, 0, 1, 1, 1], [0], [0]>} : vector<4x8x32xbf16>, vector<4x8x32xbf16>, vector<4x8x8xf32> -> vector<4x8x8xf32>
    "tpu.trace_stop"() : () -> ()
    %cst_27 = arith.constant 0.176776692 : f32
    %82 = vector.broadcast %cst_27 : f32 to vector<4x8x8xf32>
    %83 = arith.mulf %81, %82 : vector<4x8x8xf32>
    %84 = vector.shape_cast %11 : vector<8x8xi1> to vector<1x8x8xi1>
    %cst_28 = arith.constant -1.000000e+09 : f32
    %85 = vector.shape_cast %84 : vector<1x8x8xi1> to vector<1x8x8xi1>
    %86 = vector.broadcast %85 : vector<1x8x8xi1> to vector<4x8x8xi1>
    %87 = vector.broadcast %cst_28 : f32 to vector<4x8x8xf32>
    %88 = arith.select %86, %83, %87 : vector<4x8x8xi1>, vector<4x8x8xf32>
    %cst_29 = arith.constant dense<0xFF800000> : vector<4x8xf32>
    %89 = vector.multi_reduction <maximumf>, %88, %cst_29 [2] : vector<4x8x8xf32> to vector<4x8xf32>
    %90 = vector.shape_cast %89 : vector<4x8xf32> to vector<4x8x1xf32>
    %91 = vector.broadcast %90 : vector<4x8x1xf32> to vector<4x8x8xf32>
    %92 = arith.subf %88, %91 : vector<4x8x8xf32>
    %93 = math.exp %92 : vector<4x8x8xf32>
    %cst_30 = arith.constant dense<0.000000e+00> : vector<4x8xf32>
    %94 = vector.multi_reduction <add>, %93, %cst_30 [2] : vector<4x8x8xf32> to vector<4x8xf32>
    %95 = vector.shape_cast %94 : vector<4x8xf32> to vector<4x8x1xf32>
    %96 = tpu.reciprocal %95 {approx = true} : vector<4x8x1xf32> -> vector<4x8x1xf32>
    %97 = vector.broadcast %96 : vector<4x8x1xf32> to vector<4x8x8xf32>
    %98 = arith.mulf %93, %97 : vector<4x8x8xf32>
    %99 = arith.truncf %98 : vector<4x8x8xf32> to vector<4x8x8xbf16>
    "tpu.trace_start"() <{level = 10 : i32, message = "hts,hsd->htd"}> : () -> ()
    %cst_31 = arith.constant dense<0.000000e+00> : vector<4x8x32xf32>
    %100 = tpu.matmul %99, %80, %cst_31 {dimension_numbers = #tpu.dot_dimension_numbers<[2], [1], [1], [2], [0, 0, 0, 1, 1, 2], [0], [0]>} : vector<4x8x8xbf16>, vector<4x8x32xbf16>, vector<4x8x32xf32> -> vector<4x8x32xf32>
    "tpu.trace_stop"() : () -> ()
    %101 = vector.extract_strided_slice %100 {offsets = [0, 0, 0], sizes = [1, 8, 32], strides = [1, 1, 1]} : vector<4x8x32xf32> to vector<1x8x32xf32>
    %102 = vector.shape_cast %101 : vector<1x8x32xf32> to vector<8x32xf32>
    %103 = vector.extract_strided_slice %100 {offsets = [1, 0, 0], sizes = [1, 8, 32], strides = [1, 1, 1]} : vector<4x8x32xf32> to vector<1x8x32xf32>
    %104 = vector.shape_cast %103 : vector<1x8x32xf32> to vector<8x32xf32>
    %105 = vector.extract_strided_slice %100 {offsets = [2, 0, 0], sizes = [1, 8, 32], strides = [1, 1, 1]} : vector<4x8x32xf32> to vector<1x8x32xf32>
    %106 = vector.shape_cast %105 : vector<1x8x32xf32> to vector<8x32xf32>
    %107 = vector.extract_strided_slice %100 {offsets = [3, 0, 0], sizes = [1, 8, 32], strides = [1, 1, 1]} : vector<4x8x32xf32> to vector<1x8x32xf32>
    %108 = vector.shape_cast %107 : vector<1x8x32xf32> to vector<8x32xf32>
    %109 = tpu.concatenate %102, %104, %106, %108 in 1 : vector<8x32xf32>, vector<8x32xf32>, vector<8x32xf32>, vector<8x32xf32> -> vector<8x128xf32>
    %110 = arith.truncf %109 : vector<8x128xf32> to vector<8x128xbf16>
    %c0_32 = arith.constant 0 : index
    %c0_33 = arith.constant 0 : index
    %c0_34 = arith.constant 0 : index
    %111 = vector.load %arg9[%c0_32, %c0_33, %c0_34] : memref<1x128x128xbf16, #tpu.memory_space<vmem>>, vector<1x128x128xbf16>
    %112 = vector.shape_cast %111 : vector<1x128x128xbf16> to vector<128x128xbf16>
    %cst_35 = arith.constant dense<0.000000e+00> : vector<8x128xf32>
    %113 = tpu.matmul %110, %112, %cst_35 {dimension_numbers = #tpu.dot_dimension_numbers<[1], [0], [0], [1], [0, 0, 1, 1], [], []>} : vector<8x128xbf16>, vector<128x128xbf16>, vector<8x128xf32> -> vector<8x128xf32>
    %c0_36 = arith.constant 0 : index
    %c0_37 = arith.constant 0 : index
    %c0_38 = arith.constant 0 : index
    %114 = vector.load %arg10[%c0_36, %c0_37, %c0_38] : memref<1x1x128xf32, #tpu.memory_space<vmem>>, vector<1x1x128xf32>
    %115 = vector.shape_cast %114 : vector<1x1x128xf32> to vector<1x128xf32>
    %116 = vector.broadcast %115 : vector<1x128xf32> to vector<8x128xf32>
    %117 = arith.addf %113, %116 : vector<8x128xf32>
    %118 = arith.addf %3, %117 : vector<8x128xf32>
    %119 = vector.extract_strided_slice %6 {offsets = [1, 0], sizes = [1, 128], strides = [1, 1]} : vector<3x128xf32> to vector<1x128xf32>
    %120 = vector.extract_strided_slice %8 {offsets = [1, 0], sizes = [1, 128], strides = [1, 1]} : vector<3x128xf32> to vector<1x128xf32>
    %cst_39 = arith.constant dense<0.000000e+00> : vector<8xf32>
    %121 = vector.multi_reduction <add>, %118, %cst_39 [1] : vector<8x128xf32> to vector<8xf32>
    %122 = vector.shape_cast %121 : vector<8xf32> to vector<8x1xf32>
    %cst_40 = arith.constant 1.280000e+02 : f32
    %123 = vector.broadcast %cst_40 : f32 to vector<8x1xf32>
    %124 = arith.divf %122, %123 : vector<8x1xf32>
    %125 = vector.broadcast %124 : vector<8x1xf32> to vector<8x128xf32>
    %126 = arith.subf %118, %125 : vector<8x128xf32>
    %127 = arith.mulf %126, %126 : vector<8x128xf32>
    %cst_41 = arith.constant dense<0.000000e+00> : vector<8xf32>
    %128 = vector.multi_reduction <add>, %127, %cst_41 [1] : vector<8x128xf32> to vector<8xf32>
    %129 = vector.shape_cast %128 : vector<8xf32> to vector<8x1xf32>
    %cst_42 = arith.constant 0.00787401571 : f32
    %130 = vector.broadcast %cst_42 : f32 to vector<8x1xf32>
    %131 = arith.mulf %129, %130 : vector<8x1xf32>
    %132 = math.sqrt %131 : vector<8x1xf32>
    %cst_43 = arith.constant 9.99999997E-7 : f32
    %133 = vector.broadcast %cst_43 : f32 to vector<8x1xf32>
    %134 = arith.addf %132, %133 : vector<8x1xf32>
    %cst_44 = arith.constant 1.000000e+00 : f32
    %135 = vector.broadcast %cst_44 : f32 to vector<8x1xf32>
    %136 = arith.divf %135, %134 : vector<8x1xf32>
    %137 = vector.broadcast %119 : vector<1x128xf32> to vector<8x128xf32>
    %138 = arith.mulf %137, %126 : vector<8x128xf32>
    %139 = vector.broadcast %136 : vector<8x1xf32> to vector<8x128xf32>
    %140 = arith.mulf %138, %139 : vector<8x128xf32>
    %141 = vector.broadcast %120 : vector<1x128xf32> to vector<8x128xf32>
    %142 = arith.addf %140, %141 : vector<8x128xf32>
    %143 = arith.truncf %142 : vector<8x128xf32> to vector<8x128xbf16>
    %c0_45 = arith.constant 0 : index
    %c0_46 = arith.constant 0 : index
    %c0_47 = arith.constant 0 : index
    %144 = vector.load %arg11[%c0_45, %c0_46, %c0_47] : memref<1x128x128xbf16, #tpu.memory_space<vmem>>, vector<1x128x128xbf16>
    %145 = vector.shape_cast %144 : vector<1x128x128xbf16> to vector<128x128xbf16>
    %cst_48 = arith.constant dense<0.000000e+00> : vector<8x128xf32>
    %146 = tpu.matmul %143, %145, %cst_48 {dimension_numbers = #tpu.dot_dimension_numbers<[1], [0], [0], [1], [0, 0, 1, 1], [], []>} : vector<8x128xbf16>, vector<128x128xbf16>, vector<8x128xf32> -> vector<8x128xf32>
    %c0_49 = arith.constant 0 : index
    %c0_50 = arith.constant 0 : index
    %c0_51 = arith.constant 0 : index
    %147 = vector.load %arg12[%c0_49, %c0_50, %c0_51] : memref<1x1x128xf32, #tpu.memory_space<vmem>>, vector<1x1x128xf32>
    %148 = vector.shape_cast %147 : vector<1x1x128xf32> to vector<1x128xf32>
    %149 = vector.broadcast %148 : vector<1x128xf32> to vector<8x128xf32>
    %150 = arith.addf %146, %149 : vector<8x128xf32>
    %c0_52 = arith.constant 0 : index
    %c0_53 = arith.constant 0 : index
    %c0_54 = arith.constant 0 : index
    %151 = vector.load %arg13[%c0_52, %c0_53, %c0_54] : memref<1x128x256xbf16, #tpu.memory_space<vmem>>, vector<1x128x256xbf16>
    %152 = vector.shape_cast %151 : vector<1x128x256xbf16> to vector<128x256xbf16>
    %cst_55 = arith.constant dense<0.000000e+00> : vector<16x256xf32>
    %153 = tpu.matmul %4, %152, %cst_55 {dimension_numbers = #tpu.dot_dimension_numbers<[1], [0], [0], [1], [0, 0, 1, 1], [], []>} : vector<16x128xbf16>, vector<128x256xbf16>, vector<16x256xf32> -> vector<16x256xf32>
    %c0_56 = arith.constant 0 : index
    %c0_57 = arith.constant 0 : index
    %c0_58 = arith.constant 0 : index
    %154 = vector.load %arg14[%c0_56, %c0_57, %c0_58] : memref<1x1x256xf32, #tpu.memory_space<vmem>>, vector<1x1x256xf32>
    %155 = vector.shape_cast %154 : vector<1x1x256xf32> to vector<1x256xf32>
    %156 = vector.broadcast %155 : vector<1x256xf32> to vector<16x256xf32>
    %157 = arith.addf %153, %156 : vector<16x256xf32>
    %158 = vector.extract_strided_slice %157 {offsets = [0, 0], sizes = [16, 128], strides = [1, 1]} : vector<16x256xf32> to vector<16x128xf32>
    %159 = vector.extract_strided_slice %157 {offsets = [0, 128], sizes = [16, 128], strides = [1, 1]} : vector<16x256xf32> to vector<16x128xf32>
    %160 = vector.extract_strided_slice %150 {offsets = [0, 0], sizes = [8, 32], strides = [1, 1]} : vector<8x128xf32> to vector<8x32xf32>
    %161 = vector.extract_strided_slice %150 {offsets = [0, 32], sizes = [8, 32], strides = [1, 1]} : vector<8x128xf32> to vector<8x32xf32>
    %162 = vector.extract_strided_slice %150 {offsets = [0, 64], sizes = [8, 32], strides = [1, 1]} : vector<8x128xf32> to vector<8x32xf32>
    %163 = vector.extract_strided_slice %150 {offsets = [0, 96], sizes = [8, 32], strides = [1, 1]} : vector<8x128xf32> to vector<8x32xf32>
    %164 = vector.shape_cast %160 : vector<8x32xf32> to vector<1x8x32xf32>
    %165 = vector.shape_cast %161 : vector<8x32xf32> to vector<1x8x32xf32>
    %166 = vector.shape_cast %162 : vector<8x32xf32> to vector<1x8x32xf32>
    %167 = vector.shape_cast %163 : vector<8x32xf32> to vector<1x8x32xf32>
    %168 = tpu.concatenate %164, %165, %166, %167 in 0 : vector<1x8x32xf32>, vector<1x8x32xf32>, vector<1x8x32xf32>, vector<1x8x32xf32> -> vector<4x8x32xf32>
    %169 = arith.truncf %168 : vector<4x8x32xf32> to vector<4x8x32xbf16>
    %170 = vector.extract_strided_slice %158 {offsets = [0, 0], sizes = [16, 32], strides = [1, 1]} : vector<16x128xf32> to vector<16x32xf32>
    %171 = vector.extract_strided_slice %158 {offsets = [0, 32], sizes = [16, 32], strides = [1, 1]} : vector<16x128xf32> to vector<16x32xf32>
    %172 = vector.extract_strided_slice %158 {offsets = [0, 64], sizes = [16, 32], strides = [1, 1]} : vector<16x128xf32> to vector<16x32xf32>
    %173 = vector.extract_strided_slice %158 {offsets = [0, 96], sizes = [16, 32], strides = [1, 1]} : vector<16x128xf32> to vector<16x32xf32>
    %174 = vector.shape_cast %170 : vector<16x32xf32> to vector<1x16x32xf32>
    %175 = vector.shape_cast %171 : vector<16x32xf32> to vector<1x16x32xf32>
    %176 = vector.shape_cast %172 : vector<16x32xf32> to vector<1x16x32xf32>
    %177 = vector.shape_cast %173 : vector<16x32xf32> to vector<1x16x32xf32>
    %178 = tpu.concatenate %174, %175, %176, %177 in 0 : vector<1x16x32xf32>, vector<1x16x32xf32>, vector<1x16x32xf32>, vector<1x16x32xf32> -> vector<4x16x32xf32>
    %179 = arith.truncf %178 : vector<4x16x32xf32> to vector<4x16x32xbf16>
    %180 = vector.extract_strided_slice %159 {offsets = [0, 0], sizes = [16, 32], strides = [1, 1]} : vector<16x128xf32> to vector<16x32xf32>
    %181 = vector.extract_strided_slice %159 {offsets = [0, 32], sizes = [16, 32], strides = [1, 1]} : vector<16x128xf32> to vector<16x32xf32>
    %182 = vector.extract_strided_slice %159 {offsets = [0, 64], sizes = [16, 32], strides = [1, 1]} : vector<16x128xf32> to vector<16x32xf32>
    %183 = vector.extract_strided_slice %159 {offsets = [0, 96], sizes = [16, 32], strides = [1, 1]} : vector<16x128xf32> to vector<16x32xf32>
    %184 = vector.shape_cast %180 : vector<16x32xf32> to vector<1x16x32xf32>
    %185 = vector.shape_cast %181 : vector<16x32xf32> to vector<1x16x32xf32>
    %186 = vector.shape_cast %182 : vector<16x32xf32> to vector<1x16x32xf32>
    %187 = vector.shape_cast %183 : vector<16x32xf32> to vector<1x16x32xf32>
    %188 = tpu.concatenate %184, %185, %186, %187 in 0 : vector<1x16x32xf32>, vector<1x16x32xf32>, vector<1x16x32xf32>, vector<1x16x32xf32> -> vector<4x16x32xf32>
    %189 = arith.truncf %188 : vector<4x16x32xf32> to vector<4x16x32xbf16>
    "tpu.trace_start"() <{level = 10 : i32, message = "htd,hsd->hts"}> : () -> ()
    %cst_59 = arith.constant dense<0.000000e+00> : vector<4x8x16xf32>
    %190 = tpu.matmul %169, %179, %cst_59 {dimension_numbers = #tpu.dot_dimension_numbers<[2], [2], [1], [1], [0, 0, 0, 1, 1, 1], [0], [0]>} : vector<4x8x32xbf16>, vector<4x16x32xbf16>, vector<4x8x16xf32> -> vector<4x8x16xf32>
    "tpu.trace_stop"() : () -> ()
    %cst_60 = arith.constant 0.176776692 : f32
    %191 = vector.broadcast %cst_60 : f32 to vector<4x8x16xf32>
    %192 = arith.mulf %190, %191 : vector<4x8x16xf32>
    %193 = vector.shape_cast %15 : vector<1x16xi1> to vector<1x1x16xi1>
    %cst_61 = arith.constant -1.000000e+09 : f32
    %194 = vector.shape_cast %193 : vector<1x1x16xi1> to vector<1x1x16xi1>
    %195 = vector.broadcast %194 : vector<1x1x16xi1> to vector<4x8x16xi1>
    %196 = vector.broadcast %cst_61 : f32 to vector<4x8x16xf32>
    %197 = arith.select %195, %192, %196 : vector<4x8x16xi1>, vector<4x8x16xf32>
    %cst_62 = arith.constant dense<0xFF800000> : vector<4x8xf32>
    %198 = vector.multi_reduction <maximumf>, %197, %cst_62 [2] : vector<4x8x16xf32> to vector<4x8xf32>
    %199 = vector.shape_cast %198 : vector<4x8xf32> to vector<4x8x1xf32>
    %200 = vector.broadcast %199 : vector<4x8x1xf32> to vector<4x8x16xf32>
    %201 = arith.subf %197, %200 : vector<4x8x16xf32>
    %202 = math.exp %201 : vector<4x8x16xf32>
    %cst_63 = arith.constant dense<0.000000e+00> : vector<4x8xf32>
    %203 = vector.multi_reduction <add>, %202, %cst_63 [2] : vector<4x8x16xf32> to vector<4x8xf32>
    %204 = vector.shape_cast %203 : vector<4x8xf32> to vector<4x8x1xf32>
    %205 = tpu.reciprocal %204 {approx = true} : vector<4x8x1xf32> -> vector<4x8x1xf32>
    %206 = vector.broadcast %205 : vector<4x8x1xf32> to vector<4x8x16xf32>
    %207 = arith.mulf %202, %206 : vector<4x8x16xf32>
    %208 = arith.truncf %207 : vector<4x8x16xf32> to vector<4x8x16xbf16>
    "tpu.trace_start"() <{level = 10 : i32, message = "hts,hsd->htd"}> : () -> ()
    %cst_64 = arith.constant dense<0.000000e+00> : vector<4x8x32xf32>
    %209 = tpu.matmul %208, %189, %cst_64 {dimension_numbers = #tpu.dot_dimension_numbers<[2], [1], [1], [2], [0, 0, 0, 1, 1, 2], [0], [0]>} : vector<4x8x16xbf16>, vector<4x16x32xbf16>, vector<4x8x32xf32> -> vector<4x8x32xf32>
    "tpu.trace_stop"() : () -> ()
    %210 = vector.extract_strided_slice %209 {offsets = [0, 0, 0], sizes = [1, 8, 32], strides = [1, 1, 1]} : vector<4x8x32xf32> to vector<1x8x32xf32>
    %211 = vector.shape_cast %210 : vector<1x8x32xf32> to vector<8x32xf32>
    %212 = vector.extract_strided_slice %209 {offsets = [1, 0, 0], sizes = [1, 8, 32], strides = [1, 1, 1]} : vector<4x8x32xf32> to vector<1x8x32xf32>
    %213 = vector.shape_cast %212 : vector<1x8x32xf32> to vector<8x32xf32>
    %214 = vector.extract_strided_slice %209 {offsets = [2, 0, 0], sizes = [1, 8, 32], strides = [1, 1, 1]} : vector<4x8x32xf32> to vector<1x8x32xf32>
    %215 = vector.shape_cast %214 : vector<1x8x32xf32> to vector<8x32xf32>
    %216 = vector.extract_strided_slice %209 {offsets = [3, 0, 0], sizes = [1, 8, 32], strides = [1, 1, 1]} : vector<4x8x32xf32> to vector<1x8x32xf32>
    %217 = vector.shape_cast %216 : vector<1x8x32xf32> to vector<8x32xf32>
    %218 = tpu.concatenate %211, %213, %215, %217 in 1 : vector<8x32xf32>, vector<8x32xf32>, vector<8x32xf32>, vector<8x32xf32> -> vector<8x128xf32>
    %219 = arith.truncf %218 : vector<8x128xf32> to vector<8x128xbf16>
    %c0_65 = arith.constant 0 : index
    %c0_66 = arith.constant 0 : index
    %c0_67 = arith.constant 0 : index
    %220 = vector.load %arg15[%c0_65, %c0_66, %c0_67] : memref<1x128x128xbf16, #tpu.memory_space<vmem>>, vector<1x128x128xbf16>
    %221 = vector.shape_cast %220 : vector<1x128x128xbf16> to vector<128x128xbf16>
    %cst_68 = arith.constant dense<0.000000e+00> : vector<8x128xf32>
    %222 = tpu.matmul %219, %221, %cst_68 {dimension_numbers = #tpu.dot_dimension_numbers<[1], [0], [0], [1], [0, 0, 1, 1], [], []>} : vector<8x128xbf16>, vector<128x128xbf16>, vector<8x128xf32> -> vector<8x128xf32>
    %c0_69 = arith.constant 0 : index
    %c0_70 = arith.constant 0 : index
    %c0_71 = arith.constant 0 : index
    %223 = vector.load %arg16[%c0_69, %c0_70, %c0_71] : memref<1x1x128xf32, #tpu.memory_space<vmem>>, vector<1x1x128xf32>
    %224 = vector.shape_cast %223 : vector<1x1x128xf32> to vector<1x128xf32>
    %225 = vector.broadcast %224 : vector<1x128xf32> to vector<8x128xf32>
    %226 = arith.addf %222, %225 : vector<8x128xf32>
    %227 = arith.addf %118, %226 : vector<8x128xf32>
    %228 = vector.extract_strided_slice %6 {offsets = [2, 0], sizes = [1, 128], strides = [1, 1]} : vector<3x128xf32> to vector<1x128xf32>
    %229 = vector.extract_strided_slice %8 {offsets = [2, 0], sizes = [1, 128], strides = [1, 1]} : vector<3x128xf32> to vector<1x128xf32>
    %cst_72 = arith.constant dense<0.000000e+00> : vector<8xf32>
    %230 = vector.multi_reduction <add>, %227, %cst_72 [1] : vector<8x128xf32> to vector<8xf32>
    %231 = vector.shape_cast %230 : vector<8xf32> to vector<8x1xf32>
    %cst_73 = arith.constant 1.280000e+02 : f32
    %232 = vector.broadcast %cst_73 : f32 to vector<8x1xf32>
    %233 = arith.divf %231, %232 : vector<8x1xf32>
    %234 = vector.broadcast %233 : vector<8x1xf32> to vector<8x128xf32>
    %235 = arith.subf %227, %234 : vector<8x128xf32>
    %236 = arith.mulf %235, %235 : vector<8x128xf32>
    %cst_74 = arith.constant dense<0.000000e+00> : vector<8xf32>
    %237 = vector.multi_reduction <add>, %236, %cst_74 [1] : vector<8x128xf32> to vector<8xf32>
    %238 = vector.shape_cast %237 : vector<8xf32> to vector<8x1xf32>
    %cst_75 = arith.constant 0.00787401571 : f32
    %239 = vector.broadcast %cst_75 : f32 to vector<8x1xf32>
    %240 = arith.mulf %238, %239 : vector<8x1xf32>
    %241 = math.sqrt %240 : vector<8x1xf32>
    %cst_76 = arith.constant 9.99999997E-7 : f32
    %242 = vector.broadcast %cst_76 : f32 to vector<8x1xf32>
    %243 = arith.addf %241, %242 : vector<8x1xf32>
    %cst_77 = arith.constant 1.000000e+00 : f32
    %244 = vector.broadcast %cst_77 : f32 to vector<8x1xf32>
    %245 = arith.divf %244, %243 : vector<8x1xf32>
    %246 = vector.broadcast %228 : vector<1x128xf32> to vector<8x128xf32>
    %247 = arith.mulf %246, %235 : vector<8x128xf32>
    %248 = vector.broadcast %245 : vector<8x1xf32> to vector<8x128xf32>
    %249 = arith.mulf %247, %248 : vector<8x128xf32>
    %250 = vector.broadcast %229 : vector<1x128xf32> to vector<8x128xf32>
    %251 = arith.addf %249, %250 : vector<8x128xf32>
    %252 = arith.truncf %251 : vector<8x128xf32> to vector<8x128xbf16>
    %c0_78 = arith.constant 0 : index
    %c0_79 = arith.constant 0 : index
    %c0_80 = arith.constant 0 : index
    %253 = vector.load %arg17[%c0_78, %c0_79, %c0_80] : memref<1x128x256xbf16, #tpu.memory_space<vmem>>, vector<1x128x256xbf16>
    %254 = vector.shape_cast %253 : vector<1x128x256xbf16> to vector<128x256xbf16>
    %cst_81 = arith.constant dense<0.000000e+00> : vector<8x256xf32>
    %255 = tpu.matmul %252, %254, %cst_81 {dimension_numbers = #tpu.dot_dimension_numbers<[1], [0], [0], [1], [0, 0, 1, 1], [], []>} : vector<8x128xbf16>, vector<128x256xbf16>, vector<8x256xf32> -> vector<8x256xf32>
    %c0_82 = arith.constant 0 : index
    %c0_83 = arith.constant 0 : index
    %c0_84 = arith.constant 0 : index
    %256 = vector.load %arg18[%c0_82, %c0_83, %c0_84] : memref<1x1x256xf32, #tpu.memory_space<vmem>>, vector<1x1x256xf32>
    %257 = vector.shape_cast %256 : vector<1x1x256xf32> to vector<1x256xf32>
    %258 = vector.broadcast %257 : vector<1x256xf32> to vector<8x256xf32>
    %259 = arith.addf %255, %258 : vector<8x256xf32>
    %cst_85 = arith.constant 0.000000e+00 : f32
    %260 = vector.broadcast %cst_85 : f32 to vector<8x256xf32>
    %261 = arith.maximumf %259, %260 : vector<8x256xf32>
    %262 = arith.truncf %261 : vector<8x256xf32> to vector<8x256xbf16>
    %c0_86 = arith.constant 0 : index
    %c0_87 = arith.constant 0 : index
    %c0_88 = arith.constant 0 : index
    %263 = vector.load %arg19[%c0_86, %c0_87, %c0_88] : memref<1x256x128xbf16, #tpu.memory_space<vmem>>, vector<1x256x128xbf16>
    %264 = vector.shape_cast %263 : vector<1x256x128xbf16> to vector<256x128xbf16>
    %cst_89 = arith.constant dense<0.000000e+00> : vector<8x128xf32>
    %265 = tpu.matmul %262, %264, %cst_89 {dimension_numbers = #tpu.dot_dimension_numbers<[1], [0], [0], [1], [0, 0, 1, 1], [], []>} : vector<8x256xbf16>, vector<256x128xbf16>, vector<8x128xf32> -> vector<8x128xf32>
    %266 = arith.addf %227, %265 : vector<8x128xf32>
    %c0_90 = arith.constant 0 : index
    %c0_91 = arith.constant 0 : index
    %c0_92 = arith.constant 0 : index
    %267 = vector.load %arg20[%c0_90, %c0_91, %c0_92] : memref<1x1x128xf32, #tpu.memory_space<vmem>>, vector<1x1x128xf32>
    %268 = vector.shape_cast %267 : vector<1x1x128xf32> to vector<1x128xf32>
    %269 = vector.broadcast %268 : vector<1x128xf32> to vector<8x128xf32>
    %270 = arith.addf %266, %269 : vector<8x128xf32>
    %c1_i32 = arith.constant 1 : i32
    %271 = arith.cmpi eq, %arg1, %c1_i32 : i32
    %272 = arith.extui %271 : i1 to i32
    %c0_i32_93 = arith.constant 0 : i32
    %273 = arith.cmpi ne, %272, %c0_i32_93 : i32
    scf.if %273 {
      %c0_96 = arith.constant 0 : index
      %c0_97 = arith.constant 0 : index
      %277 = vector.load %arg21[%c0_96, %c0_97] : memref<1x128xf32, #tpu.memory_space<vmem>>, vector<1x128xf32>
      %c0_98 = arith.constant 0 : index
      %c0_99 = arith.constant 0 : index
      %278 = vector.load %arg22[%c0_98, %c0_99] : memref<1x128xf32, #tpu.memory_space<vmem>>, vector<1x128xf32>
      %cst_100 = arith.constant dense<0.000000e+00> : vector<8xf32>
      %279 = vector.multi_reduction <add>, %270, %cst_100 [1] : vector<8x128xf32> to vector<8xf32>
      %280 = vector.shape_cast %279 : vector<8xf32> to vector<8x1xf32>
      %cst_101 = arith.constant 1.280000e+02 : f32
      %281 = vector.broadcast %cst_101 : f32 to vector<8x1xf32>
      %282 = arith.divf %280, %281 : vector<8x1xf32>
      %283 = vector.broadcast %282 : vector<8x1xf32> to vector<8x128xf32>
      %284 = arith.subf %270, %283 : vector<8x128xf32>
      %285 = arith.mulf %284, %284 : vector<8x128xf32>
      %cst_102 = arith.constant dense<0.000000e+00> : vector<8xf32>
      %286 = vector.multi_reduction <add>, %285, %cst_102 [1] : vector<8x128xf32> to vector<8xf32>
      %287 = vector.shape_cast %286 : vector<8xf32> to vector<8x1xf32>
      %cst_103 = arith.constant 0.00787401571 : f32
      %288 = vector.broadcast %cst_103 : f32 to vector<8x1xf32>
      %289 = arith.mulf %287, %288 : vector<8x1xf32>
      %290 = math.sqrt %289 : vector<8x1xf32>
      %cst_104 = arith.constant 9.99999997E-7 : f32
      %291 = vector.broadcast %cst_104 : f32 to vector<8x1xf32>
      %292 = arith.addf %290, %291 : vector<8x1xf32>
      %cst_105 = arith.constant 1.000000e+00 : f32
      %293 = vector.broadcast %cst_105 : f32 to vector<8x1xf32>
      %294 = arith.divf %293, %292 : vector<8x1xf32>
      %295 = vector.broadcast %277 : vector<1x128xf32> to vector<8x128xf32>
      %296 = arith.mulf %295, %284 : vector<8x128xf32>
      %297 = vector.broadcast %294 : vector<8x1xf32> to vector<8x128xf32>
      %298 = arith.mulf %296, %297 : vector<8x128xf32>
      %299 = vector.broadcast %278 : vector<1x128xf32> to vector<8x128xf32>
      %300 = arith.addf %298, %299 : vector<8x128xf32>
      %c0_106 = arith.constant 0 : index
      %c0_107 = arith.constant 0 : index
      %301 = vector.load %arg23[%c0_106, %c0_107] : memref<8x128xf32, #tpu.memory_space<vmem>>, vector<8x128xf32>
      tpu.vector_store %arg23[%c0_106, %c0_107], %300 {strides = array<i32>} : memref<8x128xf32, #tpu.memory_space<vmem>>, vector<8x128xf32>,
    } else {
    }
    %c1_i32_94 = arith.constant 1 : i32
    %274 = arith.cmpi slt, %arg1, %c1_i32_94 : i32
    %275 = arith.extui %274 : i1 to i32
    %c0_i32_95 = arith.constant 0 : i32
    %276 = arith.cmpi ne, %275, %c0_i32_95 : i32
    scf.if %276 {
      %c0_96 = arith.constant 0 : index
      %c0_97 = arith.constant 0 : index
      %277 = vector.load %arg23[%c0_96, %c0_97] : memref<8x128xf32, #tpu.memory_space<vmem>>, vector<8x128xf32>
      tpu.vector_store %arg23[%c0_96, %c0_97], %270 {strides = array<i32>} : memref<8x128xf32, #tpu.memory_space<vmem>>, vector<8x128xf32>,
    } else {
    }
    return
  }
  func.func @transform_0(%arg0: i32, %arg1: i32) -> (i32, i32) {
    %c0_i32 = arith.constant 0 : i32
    %c0_i32_0 = arith.constant 0 : i32
    return %arg0, %c0_i32 : i32, i32
  }
  func.func @transform_1(%arg0: i32, %arg1: i32) -> (i32, i32) {
    %c0_i32 = arith.constant 0 : i32
    %c0_i32_0 = arith.constant 0 : i32
    return %arg0, %c0_i32 : i32, i32
  }
  func.func @transform_2(%arg0: i32, %arg1: i32) -> (i32, i32, i32) {
    %c0_i32 = arith.constant 0 : i32
    %c0_i32_0 = arith.constant 0 : i32
    %c0_i32_1 = arith.constant 0 : i32
    return %arg0, %c0_i32, %c0_i32_0 : i32, i32, i32
  }
  func.func @transform_3(%arg0: i32, %arg1: i32) -> (i32, i32, i32) {
    %c0_i32 = arith.constant 0 : i32
    %c0_i32_0 = arith.constant 0 : i32
    %c0_i32_1 = arith.constant 0 : i32
    return %arg1, %c0_i32, %c0_i32_0 : i32, i32, i32
  }
  func.func @transform_4(%arg0: i32, %arg1: i32) -> (i32, i32, i32) {
    %c0_i32 = arith.constant 0 : i32
    %c0_i32_0 = arith.constant 0 : i32
    %c0_i32_1 = arith.constant 0 : i32
    return %arg1, %c0_i32, %c0_i32_0 : i32, i32, i32
  }
  func.func @transform_5(%arg0: i32, %arg1: i32) -> (i32, i32, i32) {
    %c0_i32 = arith.constant 0 : i32
    %c0_i32_0 = arith.constant 0 : i32
    %c0_i32_1 = arith.constant 0 : i32
    return %arg1, %c0_i32, %c0_i32_0 : i32, i32, i32
  }
  func.func @transform_6(%arg0: i32, %arg1: i32) -> (i32, i32, i32) {
    %c0_i32 = arith.constant 0 : i32
    %c0_i32_0 = arith.constant 0 : i32
    %c0_i32_1 = arith.constant 0 : i32
    return %arg1, %c0_i32, %c0_i32_0 : i32, i32, i32
  }
  func.func @transform_7(%arg0: i32, %arg1: i32) -> (i32, i32, i32) {
    %c0_i32 = arith.constant 0 : i32
    %c0_i32_0 = arith.constant 0 : i32
    %c0_i32_1 = arith.constant 0 : i32
    return %arg1, %c0_i32, %c0_i32_0 : i32, i32, i32
  }
  func.func @transform_8(%arg0: i32, %arg1: i32) -> (i32, i32, i32) {
    %c0_i32 = arith.constant 0 : i32
    %c0_i32_0 = arith.constant 0 : i32
    %c0_i32_1 = arith.constant 0 : i32
    return %arg1, %c0_i32, %c0_i32_0 : i32, i32, i32
  }
  func.func @transform_9(%arg0: i32, %arg1: i32) -> (i32, i32, i32) {
    %c0_i32 = arith.constant 0 : i32
    %c0_i32_0 = arith.constant 0 : i32
    %c0_i32_1 = arith.constant 0 : i32
    return %arg1, %c0_i32, %c0_i32_0 : i32, i32, i32
  }
  func.func @transform_10(%arg0: i32, %arg1: i32) -> (i32, i32, i32) {
    %c0_i32 = arith.constant 0 : i32
    %c0_i32_0 = arith.constant 0 : i32
    %c0_i32_1 = arith.constant 0 : i32
    return %arg1, %c0_i32, %c0_i32_0 : i32, i32, i32
  }
  func.func @transform_11(%arg0: i32, %arg1: i32) -> (i32, i32, i32) {
    %c0_i32 = arith.constant 0 : i32
    %c0_i32_0 = arith.constant 0 : i32
    %c0_i32_1 = arith.constant 0 : i32
    return %arg1, %c0_i32, %c0_i32_0 : i32, i32, i32
  }
  func.func @transform_12(%arg0: i32, %arg1: i32) -> (i32, i32, i32) {
    %c0_i32 = arith.constant 0 : i32
    %c0_i32_0 = arith.constant 0 : i32
    %c0_i32_1 = arith.constant 0 : i32
    return %arg1, %c0_i32, %c0_i32_0 : i32, i32, i32
  }
  func.func @transform_13(%arg0: i32, %arg1: i32) -> (i32, i32, i32) {
    %c0_i32 = arith.constant 0 : i32
    %c0_i32_0 = arith.constant 0 : i32
    %c0_i32_1 = arith.constant 0 : i32
    return %arg1, %c0_i32, %c0_i32_0 : i32, i32, i32
  }
  func.func @transform_14(%arg0: i32, %arg1: i32) -> (i32, i32, i32) {
    %c0_i32 = arith.constant 0 : i32
    %c0_i32_0 = arith.constant 0 : i32
    %c0_i32_1 = arith.constant 0 : i32
    return %arg1, %c0_i32, %c0_i32_0 : i32, i32, i32
  }
  func.func @transform_15(%arg0: i32, %arg1: i32) -> (i32, i32, i32) {
    %c0_i32 = arith.constant 0 : i32
    %c0_i32_0 = arith.constant 0 : i32
    %c0_i32_1 = arith.constant 0 : i32
    return %arg1, %c0_i32, %c0_i32_0 : i32, i32, i32
  }
  func.func @transform_16(%arg0: i32, %arg1: i32) -> (i32, i32, i32) {
    %c0_i32 = arith.constant 0 : i32
    %c0_i32_0 = arith.constant 0 : i32
    %c0_i32_1 = arith.constant 0 : i32
    return %arg1, %c0_i32, %c0_i32_0 : i32, i32, i32
  }
  func.func @transform_17(%arg0: i32, %arg1: i32) -> (i32, i32, i32) {
    %c0_i32 = arith.constant 0 : i32
    %c0_i32_0 = arith.constant 0 : i32
    %c0_i32_1 = arith.constant 0 : i32
    return %arg1, %c0_i32, %c0_i32_0 : i32, i32, i32
  }
  func.func @transform_18(%arg0: i32, %arg1: i32) -> (i32, i32, i32) {
    %c0_i32 = arith.constant 0 : i32
    %c0_i32_0 = arith.constant 0 : i32
    %c0_i32_1 = arith.constant 0 : i32
    return %arg1, %c0_i32, %c0_i32_0 : i32, i32, i32
  }
  func.func @transform_19(%arg0: i32, %arg1: i32) -> (i32, i32) {
    %c0_i32 = arith.constant 0 : i32
    %c0_i32_0 = arith.constant 0 : i32
    %c0_i32_1 = arith.constant 0 : i32
    return %c0_i32, %c0_i32_0 : i32, i32
  }
  func.func @transform_20(%arg0: i32, %arg1: i32) -> (i32, i32) {
    %c0_i32 = arith.constant 0 : i32
    %c0_i32_0 = arith.constant 0 : i32
    %c0_i32_1 = arith.constant 0 : i32
    return %c0_i32, %c0_i32_0 : i32, i32
  }
  func.func @transform_21(%arg0: i32, %arg1: i32) -> (i32, i32) {
    %c0_i32 = arith.constant 0 : i32
    %c0_i32_0 = arith.constant 0 : i32
    return %arg0, %c0_i32 : i32, i32
  }
}

</mosaic_0001>

<bundles_post_ra>
// kernel: tpu_custom_call.1
= control target key start
LH: loop header
LB: loop body
LE: loop exit
PB: predicated region body
PF: predicated region fallthrough
CT: control target
= control target key end

     0   :  { %s7169_s0 = inlined_call_operand.hbm [shape: f32[16,128], index: 0, kind: input, shape index: {}]   ;;  %s7170_s1 = inlined_call_operand.hbm [shape: bf16[32,128], index: 1, kind: input, shape index: {}]   ;;  %s7171_s2 = inlined_call_operand.hbm [shape: f32[2,1,16], index: 2, kind: input, shape index: {}]   ;;  %s7172_s3 = inlined_call_operand.hbm [shape: f32[2,3,128], index: 3, kind: input, shape index: {}]   ;;  %s7173_s4 = inlined_call_operand.hbm [shape: f32[2,3,128], index: 4, kind: input, shape index: {}]   ;;  %s7174_s5 = inlined_call_operand.hbm [shape: bf16[2,128,384], index: 5, kind: input, shape index: {}]   ;;  %s7175_s6 = inlined_call_operand.hbm [shape: f32[2,1,384], index: 6, kind: input, shape index: {}]   ;;  %s7176_s7 = inlined_call_operand.hbm [shape: bf16[2,128,128], index: 7, kind: input, shape index: {}]   ;;  %s7177_s8 = inlined_call_operand.hbm [shape: f32[2,1,128], index: 8, kind: input, shape index: {}]   ;;  %s7178_s9 = inlined_call_operand.hbm [shape: bf16[2,128,128], index: 9, kind: input, shape index: {}]   ;;  %s7179_s10 = inlined_call_operand.hbm [shape: f32[2,1,128], index: 10, kind: input, shape index: {}]   ;;  %s7180_s11 = inlined_call_operand.hbm [shape: bf16[2,128,256], index: 11, kind: input, shape index: {}]   ;;  %s7181_s12 = inlined_call_operand.hbm [shape: f32[2,1,256], index: 12, kind: input, shape index: {}]   ;;  %s7182_s13 = inlined_call_operand.hbm [shape: bf16[2,128,128], index: 13, kind: input, shape index: {}]   ;;  %s7183_s14 = inlined_call_operand.hbm [shape: f32[2,1,128], index: 14, kind: input, shape index: {}]   ;;  %s7184_s15 = inlined_call_operand.hbm [shape: bf16[2,128,256], index: 15, kind: input, shape index: {}]   ;;  %s7185_s16 = inlined_call_operand.hbm [shape: f32[2,1,256], index: 16, kind: input, shape index: {}]   ;;  %s7186_s17 = inlined_call_operand.hbm [shape: bf16[2,256,128], index: 17, kind: input, shape index: {}]   ;;  %s7187_s18 = inlined_call_operand.hbm [shape: f32[2,1,128], index: 18, kind: input, shape index: {}]   ;;  %s7188_s19 = inlined_call_operand.hbm [shape: f32[1,128], index: 19, kind: input, shape index: {}]   ;;  %s7189_s20 = inlined_call_operand.hbm [shape: f32[1,128], index: 20, kind: input, shape index: {}]   ;;  %s7190_s21 = inlined_call_operand.hbm [shape: f32[16,128], index: 21, kind: output, shape index: {}]  }
   0x1   :  { %7256 = sst [smem:[#allocation64_spill]] %s7169_s0 }
   0x2   :  { %7257 = sst [smem:[#allocation65_spill]] %s7170_s1 }
   0x3   :  { %7258 = sst [smem:[#allocation66_spill]] %s7171_s2 }
   0x4   :  { %7259 = sst [smem:[#allocation67_spill]] %s7172_s3 }
   0x5   :  { %7260 = sst [smem:[#allocation68_spill]] %s7173_s4 }
   0x6   :  { %7261 = sst [smem:[#allocation69_spill]] %s7174_s5 }
   0x7   :  { %7262 = sst [smem:[#allocation70_spill]] %s7175_s6 }
   0x8   :  { %7263 = sst [smem:[#allocation71_spill]] %s7176_s7 }
   0x9   :  { %7264 = sst [smem:[#allocation72_spill]] %s7177_s8 }
   0xa   :  { %7265 = sst [smem:[#allocation73_spill]] %s7178_s9 }
   0xb   :  { %7266 = sst [smem:[#allocation74_spill]] %s7179_s10 }
   0xc   :  { %7267 = sst [smem:[#allocation75_spill]] %s7180_s11 }
   0xd   :  { %7268 = sst [smem:[#allocation76_spill]] %s7181_s12 }
   0xe   :  { %7269 = sst [smem:[#allocation77_spill]] %s7182_s13 }
   0xf   :  { %7270 = sst [smem:[#allocation78_spill]] %s7183_s14 }
  0x10   :  { %7271 = sst [smem:[#allocation79_spill]] %s7184_s15 }
  0x11   :  { %7272 = sst [smem:[#allocation80_spill]] %s7185_s16 }
  0x12   :  { %7273 = sst [smem:[#allocation81_spill]] %s7186_s17 }
  0x13   :  { %7274 = sst [smem:[#allocation82_spill]] %s7187_s18 }
  0x14   :  { %7275 = sst [smem:[#allocation83_spill]] %s7188_s19 }
  0x15   :  { %7276 = sst [smem:[#allocation84_spill]] %s7189_s20 }
  0x16   :  { %7277 = sst [smem:[#allocation85_spill]] %s7190_s21 }
  0x17   :  { %26 = vsyncpa [#allocation3], 0 }
  0x18   :  { %28 = vsyncpa [#allocation3 + $0x1], 0 }
  0x19   :  { %29 = vsyncpa [#allocation6], 0 }
  0x1a   :  { %31 = vsyncpa [#allocation6 + $0x1], 0 }
  0x1b   :  { %32 = vsyncpa [#allocation9], 0 }
  0x1c   :  { %34 = vsyncpa [#allocation9 + $0x1], 0 }
  0x1d   :  { %35 = vsyncpa [#allocation12], 0 }
  0x1e   :  { %37 = vsyncpa [#allocation12 + $0x1], 0 }
  0x1f   :  { %38 = vsyncpa [#allocation15], 0 }
  0x20   :  { %40 = vsyncpa [#allocation15 + $0x1], 0 }
  0x21   :  { %41 = vsyncpa [#allocation18], 0 }
  0x22   :  { %43 = vsyncpa [#allocation18 + $0x1], 0 }
  0x23   :  { %44 = vsyncpa [#allocation21], 0 }
  0x24   :  { %46 = vsyncpa [#allocation21 + $0x1], 0 }
  0x25   :  { %47 = vsyncpa [#allocation24], 0 }
  0x26   :  { %49 = vsyncpa [#allocation24 + $0x1], 0 }
  0x27   :  { %50 = vsyncpa [#allocation27], 0 }
  0x28   :  { %52 = vsyncpa [#allocation27 + $0x1], 0 }
  0x29   :  { %53 = vsyncpa [#allocation30], 0 }
  0x2a   :  { %55 = vsyncpa [#allocation30 + $0x1], 0 }
  0x2b   :  { %56 = vsyncpa [#allocation33], 0 }
  0x2c   :  { %57 = vsyncpa [#allocation4], 0 }
  0x2d   :  { %59 = vsyncpa [#allocation4 + $0x1], 0  ;;  %s5800_s2 = smov 0   ;;  %s5802_s25 = smov 0  }
  0x2e   :  { %s5804_s26 = smov 0   ;;  %s5806_s27 = smov 0  }
  0x2f   :  { %s5808_s3 = smov 0   ;;  %s5810_s28 = smov 0  }
  0x30   :  { %s5812_s29 = smov 0   ;;  %s5814_s0 = smov 0  }
  0x31   :  { %s5816_s4 = smov 0   ;;  %s5818_s30 = smov 0  }
  0x32   :  { %s5820_s5 = smov 0  }
  0x33 LB: > { %7278 = sst [smem:[#allocation48_spill]] %s5618_s25  ;;  %s5856_s22 = sadd.s32 4294967295, %s5654_s5   ;;  %s5654_s5 = sphi %s5820_s5, %s65_s5   ;;  %s5650_s30 = sphi %s5818_s30, %s7388_s30   ;;  %s5646_s4 = sphi %s5816_s4, %s7387_s4   ;;  %s5642_s0 = sphi %s5814_s0, %s7386_s0   ;;  %s5638_s29 = sphi %s5812_s29, %s7385_s29   ;;  %s5634_s28 = sphi %s5810_s28, %s7380_s28   ;;  %s5630_s3 = sphi %s5808_s3, %s7384_s3   ;;  %s5626_s27 = sphi %s5806_s27, %s7383_s27   ;;  %s5622_s26 = sphi %s5804_s26, %s7378_s26   ;;  %s5618_s25 = sphi %s5802_s25, %s7377_s25   ;;  %s5614_s2 = sphi %s5800_s2, %s7376_s2  }
  0x34   : > { %7279 = sst [smem:[#allocation49_spill]] %s5622_s26  ;;  %s4069_s23 = sadd.s32 4294967294, %s5654_s5  }
  0x35   : > { %7280 = sst [smem:[#allocation50_spill]] %s5626_s27  ;;  %s74_s1 = sadd.s32 1, %s5646_s4 }
  0x36   : > { %7281 = sst [smem:[#allocation51_spill]] %s5634_s28  ;;  %s77_s24 = sadd.s32 1, %s5650_s30 }
  0x37   : > { %7282 = sst [smem:[#allocation52_spill]] %s5638_s29  ;;  %p75_p0 = scmp.ge.s32.totalorder %s74_s1, 2 }
  0x38   : > { %7283 = sst [smem:[#allocation53_spill]] %s5642_s0  ;;  %s84_s21 = sadd.s32 1, %s5634_s28 }
  0x39   : > { %7284 = sst [smem:[#allocation54_spill]] %s5654_s5  ;;  %p7206_p1 = scmp.ne.s32.totalorder %s5634_s28, %s5630_s3 }
  0x3a   : > { %7285 = sst [smem:[#allocation55_spill]] %s5856_s22  ;;  %p92_p2 = scmp.eq.s32.totalorder %s5654_s5, 0 }
  0x3b   : > { %s7390_s1 = smov (%p75_p0, %s74_s1), 0  ;;  %s7392_s24 = smov (!%p75_p0, %s77_s24), %s5650_s30 }
  0x3c   : > { %7286 = sst [smem:[#allocation56_spill]] %s7390_s1  ;;  %p5873_p3 = por %p92_p2, %p7206_p1 }
  0x3d   : > { %p7205_p4 = scmp.ne.s32.totalorder %s5630_s3, %s5626_s27  ;;  %p79_p5 = scmp.ge.s32.totalorder %s7392_s24, 2 }
  0x3e   : > { %s7287_s0 = scalar_select %p5873_p3, 1, 0 }
  0x3f   : > { %p7217_p6 = scmp.eq.s32.totalorder %s5856_s22, 0  ;;  %s159_s29 = ssub.s32 %s5646_s4, %s7390_s1 }
  0x40   : > { %s162_s18 = sadd.s32 1, %s5622_s26  ;;  %s7394_s24 = smov (%p79_p5, %s7392_s24), 0 }
  0x41   : > { %7288 = sst [smem:[#allocation57_spill]] %s7394_s24  ;;  %p5890_p7 = por %p7217_p6, %p7205_p4 }
  0x42   : > { %p160_p8 = scmp.eq.s32.totalorder %s159_s29, 0  ;;  %s81_s14 = ssub.s32 %s5650_s30, %s7394_s24 }
  0x43   : > { %s7289_s16 = scalar_select %p5890_p7, 1, 0 }
  0x44   : > { %p169_p9 = scmp.ne.s32.totalorder %s5622_s26, %s5618_s25  ;;  %p82_p10 = scmp.eq.s32.totalorder %s81_s14, 0 }
  0x45   : > { %7290 = sst [smem:[#allocation58_spill]] %s7289_s16  ;;  %p175_p11 = scmp.ne.s32.totalorder %s5618_s25, %s5614_s2 }
  0x46   : > { %s5901_s1 = scalar_select %p160_p8, %s5622_s26, %s162_s18  }
  0x47   : > { %s5904_s12 = scalar_select %p82_p10, %s5634_s28, %s84_s21  }
  0x48   : > { %7291 = sst [smem:[#allocation59_spill]] %s5901_s1  ;;  %p5908_p12 = por %p169_p9, %p92_p2 }
  0x49   : > { %7292 = sst [smem:[#allocation60_spill]] %s5904_s12  ;;  %p5914_p13 = por %p175_p11, %p7217_p6 }
  0x4a   : > { %s7293_s10 = scalar_select %p5908_p12, 1, 0 }
  0x4b   : > { %s7294_s8 = scalar_select %p5914_p13, 1, 0 }
  0x4c   : > { %p631_p0 = scmp.eq.s32.totalorder %s5856_s22, 3  ;;  %p637_p5 = scmp.eq.s32.totalorder %s4069_s23, 3 }
  0x4d   : > { %7295 = sst [smem:[#allocation61_spill]] %s7294_s8  ;;  %p4070_p4 = scmp.ge.s32.totalorder %s5654_s5, 1 }
  0x4e   : > { %p644_p1 = scmp.lt.s32.totalorder %s5654_s5, 5  ;;  %p7296_p7 = scmp.ne.s32.totalorder %s5634_s28, %s5630_s3 }
  0x4f   : > { %p7299_p10 = scmp.ne.s32.totalorder %s5630_s3, %s5626_s27  ;;  %s5656_s2 = smov [#allocation32]  }
  0x50   : > { %p5924_p8 = por %p631_p0, %p7296_p7  ;;  %p5935_p2 = pnand %p4070_p4, %p644_p1 }
  0x51   : > { %p5931_p3 = por %p637_p5, %p7299_p10  ;;  %s657_s29 = sshll.u32 %s5656_s2, 4  ;;  %s658_s29 = int_to_ptr.vmem [resolvable:$true] %s657_s29 }
  0x52   : > { %s7297_s14 = scalar_select %p5924_p8, 1, 0 }
  0x53   : > { %s7300_s18 = scalar_select %p5931_p3, 1, 0 }
  0x54   : > { %7298 = sst [smem:[#allocation62_spill]] %s7297_s14  ;;  %p4585_p9 = pneg %p5935_p2 }
  0x55   : > { %7301 = sst [smem:[#allocation63_spill]] %s7300_s18  ;;  %s5657_s23 = smov [#allocation34]  }
  0x56   : > { %s7302_s21 = scalar_select %p5935_p2, 1, 0 }
  0x57   : > { %s668_s24 = sshll.u32 %s5657_s23, 4  ;;  %p5943_p7 = pnand %p4585_p9, %p7217_p6  ;;  %s5947_s24 = int_to_ptr.vmem [resolvable:$true] %s668_s24 }
  0x58   : > { %s7304_s19 = sld [smem:[#allocation83_spill]] }
  0x59   : > { %p4906_p4 = pneg %p5943_p7 }
  0x5e   : > { %s4904_s27 = scalar_lea.hbm %s7304_s19, 16 }
  0x5f   : > { %p4905_p1 = scmp.ne.s32.totalorder %s7304_s19, %s4904_s27  ;;  %p4911_p5 = scmp.lt.u32.totalorder %s4904_s27, %s7304_s19 }
  0x61   : > { %p4907_p11 = pnand %p4906_p4, %p4905_p1 }
  0x63   : > { %p4908_p0 = pneg %p4907_p11 }
  0x65   : > { %p4913_p10 = pnand %p4911_p5, %p4908_p0 }
  0x67   : > { %4916 = shalt.err (!%p4913_p10)
}
  0x68   : > { %s4917_s25 = scalar_lea.vmem %s658_s29, 16  ;;  %s4924_s8 = scalar_lea.vmem %s658_s29, 32 }
  0x69   : > { %p4918_p9 = scmp.ne.s32.totalorder %s658_s29, %s4917_s25  ;;  %p4925_p8 = scmp.lt.s32.totalorder %s658_s29, %s658_s29 }
  0x6a   : > { %p4926_p13 = scmp.lt.s32.totalorder %s4924_s8, %s4917_s25 }
  0x6b   : > { %p4920_p6 = pnand %p4918_p9, %p4906_p4 }
  0x6c   : > { %p4927_p2 = por %p4926_p13, %p4925_p8 }
  0x6d   : > { %p4921_p3 = pneg %p4920_p6 }
  0x6f   : > { %p4928_p12 = pnand %p4927_p2, %p4921_p3 }
  0x71   : > { %4931 = shalt.err (!%p4928_p12)
}
  0x72   : > { %4588 = dma.hbm_to_vmem [thread:$0]  (!%p5943_p7), %s7304_s19, 16, %s658_s29, [#allocation33]  }
  0x73   : > { %s7305_s20 = sld [smem:[#allocation84_spill]] }
  0x79   : > { %s4932_s2 = scalar_lea.hbm %s7305_s20, 16 }
  0x7a   : > { %p4933_p6 = scmp.ne.s32.totalorder %s7305_s20, %s4932_s2  ;;  %p4939_p12 = scmp.lt.u32.totalorder %s4932_s2, %s7305_s20 }
  0x7c   : > { %p4935_p13 = pnand %p4933_p6, %p4906_p4 }
  0x7e   : > { %p4936_p3 = pneg %p4935_p13 }
  0x80   : > { %p4941_p8 = pnand %p4939_p12, %p4936_p3 }
  0x82   : > { %4944 = shalt.err (!%p4941_p8)
}
  0x83   : > { %s4945_s29 = scalar_lea.vmem %s5947_s24, 16  ;;  %s4952_s22 = scalar_lea.vmem %s5947_s24, 32 }
  0x84   : > { %p4946_p2 = scmp.ne.s32.totalorder %s5947_s24, %s4945_s29  ;;  %p4953_p0 = scmp.lt.s32.totalorder %s5947_s24, %s5947_s24 }
  0x85   : > { %p4954_p5 = scmp.lt.s32.totalorder %s4952_s22, %s4945_s29 }
  0x86   : > { %p4948_p1 = pnand %p4946_p2, %p4906_p4 }
  0x87   : > { %p4955_p10 = por %p4954_p5, %p4953_p0 }
  0x88   : > { %p4949_p11 = pneg %p4948_p1 }
  0x8a   : > { %p4956_p9 = pnand %p4955_p10, %p4949_p11 }
  0x8c   : > { %4959 = shalt.err (!%p4956_p9)
}
  0x8d   : > { %4591 = dma.hbm_to_vmem [thread:$0]  (!%p5943_p7), %s7305_s20, 16, %s5947_s24, [#allocation33]  }
  0x8e   : > { %p4073_p6 = scmp.ge.s32.totalorder %s5654_s5, 4 }
  0x8f   : > { %s5999_s27 = sand.u32 (!%p4073_p6), 1, %s5634_s28   ;;  %s7224_s18 = sshll.u32 (!%p4073_p6), %s5650_s30, 7 }
  0x90   : > { %675 = sbr.rel (%p4073_p6) target bundleno = 687 (0x2af), region = 24  ;;  %s7225_s2 = sshll.u32 (!%p4073_p6), %s5999_s27, 3 }
  0x91   : > { %s6004_s12 = sand.u32 (!%p4073_p6), 1, %s5654_s5   ;;  %s7306_s24 = sld [smem:[#allocation65_spill]] (!%p4073_p6) }
  0x92   : > { %s701_s29 = scalar_lea.vmem (!%p4073_p6), [#allocation5], %s7225_s2  ;;  %s7230_s1 = scalar_lea.sflag (!%p4073_p6), [#allocation6], %s6004_s12 }
  0x93   : > { %s708_s22 = sshll.u32 (!%p4073_p6), %s701_s29, 4  ;;  %p7307_p4 = scmp.ne.s32.totalorder (!%p4073_p6), %s7287_s0, 0  ;;  %s6015_s22 = int_to_ptr.vmem [resolvable:$true] %s708_s22 }
  0x97   : > { %s6011_s8 = scalar_lea.hbm %s7306_s24, %s7224_s18  ;;  %s4964_s25 = scalar_lea.hbm %s7306_s24, 256 }
  0x98   : > { %s4960_s14 = scalar_lea.hbm %s6011_s8, 128  ;;  %p4965_p12 = scmp.lt.u32.totalorder %s6011_s8, %s7306_s24 }
  0x99   : > { %p4961_p7 = scmp.ne.s32.totalorder %s6011_s8, %s4960_s14  ;;  %p4966_p8 = scmp.lt.u32.totalorder %s4964_s25, %s4960_s14 }
  0x9a   : > { %p4968_p1 = scmp.lt.u32.totalorder %s4960_s14, %s6011_s8 }
  0x9b   : > { %p4962_p13 = pnand %p4961_p7, %p7307_p4  ;;  %p4967_p2 = por %p4966_p8, %p4965_p12 }
  0x9d   : > { %p4963_p3 = pneg %p4962_p13  ;;  %p4969_p11 = por %p4968_p1, %p4967_p2 }
  0x9f   : > { %p4970_p0 = pnand %p4969_p11, %p4963_p3 }
  0xa1   : > { %4973 = shalt.err (!%p4970_p0)
}
  0xa2   : > { %s4974_s29 = scalar_lea.vmem %s6015_s22, 128  ;;  %s5658_s19 = smov [#allocation5]  }
  0xa3   : > { %p4975_p5 = scmp.ne.s32.totalorder %s6015_s22, %s4974_s29  ;;  %s4978_s23 = sshll.u32 %s5658_s19, 4  ;;  %s4979_s23 = int_to_ptr.vmem [resolvable:$false] %s4978_s23 }
  0xa4   : > { %s4980_s20 = scalar_lea.vmem %s4979_s23, 256  ;;  %p4981_p6 = scmp.lt.s32.totalorder %s6015_s22, %s4979_s23 }
  0xa5   : > { %p4976_p10 = pnand %p4975_p5, %p7307_p4  ;;  %p4982_p7 = scmp.lt.s32.totalorder %s4980_s20, %s4974_s29 }
  0xa7   : > { %p4977_p9 = pneg %p4976_p10  ;;  %p4983_p13 = por %p4982_p7, %p4981_p6 }
  0xa9   : > { %p4984_p12 = pnand %p4983_p13, %p4977_p9 }
  0xab   : > { %4987 = shalt.err (!%p4984_p12)
}
  0xac   : > { %s7231_s18 = smov 64   ;;  %s7233_s14 = smov 4  }
  0xad   : > { %4542 = dma.hbm_to_vmem [thread:$0]  (%p7307_p4), %s6011_s8, 128, %s6015_s22, %s7230_s1, %s7231_s18, %s7231_s18, %s7233_s14  }
  0xae   : > { %s6045_s25 = sand.u32 1, %s5622_s26   ;;  %s7235_s29 = sshll.u32 %s5646_s4, 6 }
  0xaf   : > { %s7237_s19 = sshll.u32 %s6045_s25, 2  ;;  %s7308_s2 = sld [smem:[#allocation67_spill]] }
  0xb0   : > { %s739_s5 = scalar_lea.vmem [#allocation8], %s7237_s19  ;;  %s4531_s22 = smul.u32 192, %s6045_s25 }
  0xb1   : > { %s746_s8 = sshll.u32 %s739_s5, 4  ;;  %s4532_s1 = smul.u32 3072, %s5646_s4  ;;  %s6059_s8 = int_to_ptr.vmem [resolvable:$true] %s746_s8 }
  0xb2   : > { %s7238_s18 = scalar_lea.sflag [#allocation9], %s6004_s12  ;;  %p7310_p8 = scmp.ne.s32.totalorder %s7293_s10, 0 }
  0xb5   : > { %s7309_s24 = smov %s7308_s2  ;;  %s6054_s28 = scalar_lea.hbm %s7308_s2, %s7235_s29 }
  0xb6   : > { %s4988_s14 = scalar_lea.hbm %s6054_s28, 64  ;;  %s4992_s20 = scalar_lea.hbm %s7309_s24, 128 }
  0xb7   : > { %p4989_p3 = scmp.ne.s32.totalorder %s6054_s28, %s4988_s14  ;;  %p4993_p11 = scmp.lt.u32.totalorder %s6054_s28, %s7309_s24 }
  0xb8   : > { %p4994_p0 = scmp.lt.u32.totalorder %s4992_s20, %s4988_s14  ;;  %p4996_p10 = scmp.lt.u32.totalorder %s4988_s14, %s6054_s28 }
  0xb9   : > { %p4990_p2 = pnand %p4989_p3, %p7310_p8 }
  0xba   : > { %p4995_p5 = por %p4994_p0, %p4993_p11 }
  0xbb   : > { %p4991_p1 = pneg %p4990_p2 }
  0xbc   : > { %p4997_p9 = por %p4996_p10, %p4995_p5 }
  0xbe   : > { %p4998_p6 = pnand %p4997_p9, %p4991_p1 }
  0xc0   : > { %5001 = shalt.err (!%p4998_p6)
}
  0xc1   : > { %s5002_s5 = scalar_lea.vmem %s6059_s8, 64  ;;  %s5661_s23 = smov [#allocation8]  }
  0xc2   : > { %p5003_p7 = scmp.ne.s32.totalorder %s6059_s8, %s5002_s5  ;;  %s5006_s2 = sshll.u32 %s5661_s23, 4  ;;  %s5007_s2 = int_to_ptr.vmem [resolvable:$false] %s5006_s2 }
  0xc3   : > { %s5008_s26 = scalar_lea.vmem %s5007_s2, 128  ;;  %p5009_p3 = scmp.lt.s32.totalorder %s6059_s8, %s5007_s2 }
  0xc4   : > { %p5004_p13 = pnand %p5003_p7, %p7310_p8  ;;  %p5010_p2 = scmp.lt.s32.totalorder %s5008_s26, %s5002_s5 }
  0xc6   : > { %p5005_p12 = pneg %p5004_p13  ;;  %p5011_p11 = por %p5010_p2, %p5009_p3 }
  0xc8   : > { %p5012_p0 = pnand %p5011_p11, %p5005_p12 }
  0xca   : > { %5015 = shalt.err (!%p5012_p0)
}
  0xcb   : > { %4544 = dma.hbm_to_vmem [thread:$0]  (%p7310_p8), %s6054_s28, 64, %s6059_s8, %s7238_s18  }
  0xcc   : > { %s7311_s20 = sld [smem:[#allocation69_spill]]  ;;  %s775_s5 = scalar_lea.vmem [#allocation11], %s4531_s22 }
  0xcd   : > { %s782_s2 = sshll.u32 %s775_s5, 4  ;;  %s7239_s26 = scalar_lea.sflag [#allocation12], %s6004_s12  ;;  %s6095_s2 = int_to_ptr.vmem [resolvable:$true] %s782_s2 }
  0xd2   : > { %s6091_s23 = scalar_lea.hbm %s7311_s20, %s4532_s1  ;;  %s5020_s1 = scalar_lea.hbm %s7311_s20, 6144 }
  0xd3   : > { %s5016_s19 = scalar_lea.hbm %s6091_s23, 3072  ;;  %p5021_p9 = scmp.lt.u32.totalorder %s6091_s23, %s7311_s20 }
  0xd4   : > { %p5017_p1 = scmp.ne.s32.totalorder %s6091_s23, %s5016_s19  ;;  %p5022_p6 = scmp.lt.u32.totalorder %s5020_s1, %s5016_s19 }
  0xd5   : > { %p5024_p13 = scmp.lt.u32.totalorder %s5016_s19, %s6091_s23 }
  0xd6   : > { %p5018_p5 = pnand %p5017_p1, %p7310_p8  ;;  %p5023_p7 = por %p5022_p6, %p5021_p9 }
  0xd8   : > { %p5019_p10 = pneg %p5018_p5  ;;  %p5025_p12 = por %p5024_p13, %p5023_p7 }
  0xda   : > { %p5026_p3 = pnand %p5025_p12, %p5019_p10 }
  0xdc   : > { %5029 = shalt.err (!%p5026_p3)
}
  0xdd   : > { %s5030_s22 = scalar_lea.vmem %s6095_s2, 3072  ;;  %s5662_s5 = smov [#allocation11]  }
  0xde   : > { %p5031_p2 = scmp.ne.s32.totalorder %s6095_s2, %s5030_s22  ;;  %s5034_s28 = sshll.u32 %s5662_s5, 4  ;;  %s5035_s28 = int_to_ptr.vmem [resolvable:$false] %s5034_s28 }
  0xdf   : > { %s5036_s8 = scalar_lea.vmem %s5035_s28, 6144  ;;  %p5037_p1 = scmp.lt.s32.totalorder %s6095_s2, %s5035_s28 }
  0xe0   : > { %p5032_p11 = pnand %p5031_p2, %p7310_p8  ;;  %p5038_p5 = scmp.lt.s32.totalorder %s5036_s8, %s5030_s22 }
  0xe2   : > { %p5033_p0 = pneg %p5032_p11  ;;  %p5039_p9 = por %p5038_p5, %p5037_p1 }
  0xe4   : > { %p5040_p6 = pnand %p5039_p9, %p5033_p0 }
  0xe6   : > { %5043 = shalt.err (!%p5040_p6)
}
  0xe7   : > { %s5663_s19 = smov 192   ;;  %s5664_s1 = smov 12  }
  0xe8   : > { %4546 = dma.hbm_to_vmem [thread:$0]  (%p7310_p8), %s6091_s23, 3072, %s6095_s2, %s7239_s26, %s5663_s19, %s5663_s19, %s5664_s1  }
  0xe9   : > { %s6122_s14 = sshll.u32 %s6045_s25, 6  ;;  %s6125_s29 = sshll.u32 %s5646_s4, 10 }
  0xea   : > { %s7312_s7 = sld [smem:[#allocation71_spill]]  ;;  %s815_s8 = scalar_lea.vmem [#allocation14], %s6122_s14 }
  0xeb   : > { %s822_s18 = sshll.u32 %s815_s8, 4  ;;  %s7242_s23 = scalar_lea.sflag [#allocation15], %s6004_s12  ;;  %s6134_s18 = int_to_ptr.vmem [resolvable:$true] %s822_s18 }
  0xf0   : > { %s6131_s28 = scalar_lea.hbm %s7312_s7, %s6125_s29  ;;  %s5048_s22 = scalar_lea.hbm %s7312_s7, 2048 }
  0xf1   : > { %s5044_s2 = scalar_lea.hbm %s6131_s28, 1024  ;;  %p5049_p12 = scmp.lt.u32.totalorder %s6131_s28, %s7312_s7 }
  0xf2   : > { %p5045_p10 = scmp.ne.s32.totalorder %s6131_s28, %s5044_s2  ;;  %p5050_p3 = scmp.lt.u32.totalorder %s5048_s22, %s5044_s2 }
  0xf3   : > { %p5052_p11 = scmp.lt.u32.totalorder %s5044_s2, %s6131_s28 }
  0xf4   : > { %p5046_p7 = pnand %p5045_p10, %p7310_p8  ;;  %p5051_p2 = por %p5050_p3, %p5049_p12 }
  0xf6   : > { %p5047_p13 = pneg %p5046_p7  ;;  %p5053_p0 = por %p5052_p11, %p5051_p2 }
  0xf8   : > { %p5054_p1 = pnand %p5053_p0, %p5047_p13 }
  0xfa   : > { %5057 = shalt.err (!%p5054_p1)
}
  0xfb   : > { %s5058_s8 = scalar_lea.vmem %s6134_s18, 1024  ;;  %s5665_s19 = smov [#allocation14]  }
  0xfc   : > { %p5059_p5 = scmp.ne.s32.totalorder %s6134_s18, %s5058_s8  ;;  %s5062_s1 = sshll.u32 %s5665_s19, 4  ;;  %s5063_s1 = int_to_ptr.vmem [resolvable:$false] %s5062_s1 }
  0xfd   : > { %s5064_s26 = scalar_lea.vmem %s5063_s1, 2048  ;;  %p5065_p10 = scmp.lt.s32.totalorder %s6134_s18, %s5063_s1 }
  0xfe   : > { %p5060_p9 = pnand %p5059_p5, %p7310_p8  ;;  %p5066_p7 = scmp.lt.s32.totalorder %s5064_s26, %s5058_s8 }
 0x100   : > { %p5061_p6 = pneg %p5060_p9  ;;  %p5067_p12 = por %p5066_p7, %p5065_p10 }
 0x102   : > { %p5068_p3 = pnand %p5067_p12, %p5061_p6 }
 0x104   : > { %5071 = shalt.err (!%p5068_p3)
}
 0x105   : > { %s7313_s2 = smov 4   ;;  %s7314_s22 = smov 64  }
 0x106   : > { %4548 = dma.hbm_to_vmem [thread:$0]  (%p7310_p8), %s6131_s28, 1024, %s6134_s18, %s7242_s23, %s7314_s22, %s7314_s22, %s7313_s2  }
 0x107   : > { %s7315_s9 = sld [smem:[#allocation73_spill]]  ;;  %s853_s1 = scalar_lea.vmem [#allocation17], %s6122_s14 }
 0x108   : > { %s860_s26 = sshll.u32 %s853_s1, 4  ;;  %s6173_s7 = sshll.u32 %s6045_s25, 7  ;;  %s6170_s26 = int_to_ptr.vmem [resolvable:$true] %s860_s26 }
 0x109   : > { %s7243_s20 = scalar_lea.sflag [#allocation18], %s6004_s12 }
 0x10d   : > { %s6167_s19 = scalar_lea.hbm %s7315_s9, %s6125_s29  ;;  %s5076_s5 = scalar_lea.hbm %s7315_s9, 2048 }
 0x10e   : > { %s5072_s24 = scalar_lea.hbm %s6167_s19, 1024  ;;  %p5077_p0 = scmp.lt.u32.totalorder %s6167_s19, %s7315_s9 }
 0x10f   : > { %p5073_p13 = scmp.ne.s32.totalorder %s6167_s19, %s5072_s24  ;;  %p5078_p1 = scmp.lt.u32.totalorder %s5076_s5, %s5072_s24 }
 0x110   : > { %p5080_p9 = scmp.lt.u32.totalorder %s5072_s24, %s6167_s19 }
 0x111   : > { %p5074_p2 = pnand %p5073_p13, %p7310_p8  ;;  %p5079_p5 = por %p5078_p1, %p5077_p0 }
 0x113   : > { %p5075_p11 = pneg %p5074_p2  ;;  %p5081_p6 = por %p5080_p9, %p5079_p5 }
 0x115   : > { %p5082_p10 = pnand %p5081_p6, %p5075_p11 }
 0x117   : > { %5085 = shalt.err (!%p5082_p10)
}
 0x118   : > { %s5086_s1 = scalar_lea.vmem %s6170_s26, 1024  ;;  %s5666_s18 = smov [#allocation17]  }
 0x119   : > { %p5087_p7 = scmp.ne.s32.totalorder %s6170_s26, %s5086_s1  ;;  %s5090_s28 = sshll.u32 %s5666_s18, 4  ;;  %s5091_s28 = int_to_ptr.vmem [resolvable:$false] %s5090_s28 }
 0x11a   : > { %s5092_s23 = scalar_lea.vmem %s5091_s28, 2048  ;;  %p5093_p13 = scmp.lt.s32.totalorder %s6170_s26, %s5091_s28 }
 0x11b   : > { %p5088_p12 = pnand %p5087_p7, %p7310_p8  ;;  %p5094_p2 = scmp.lt.s32.totalorder %s5092_s23, %s5086_s1 }
 0x11d   : > { %p5089_p3 = pneg %p5088_p12  ;;  %p5095_p0 = por %p5094_p2, %p5093_p13 }
 0x11f   : > { %p5096_p1 = pnand %p5095_p0, %p5089_p3 }
 0x121   : > { %5099 = shalt.err (!%p5096_p1)
}
 0x122   : > { %4550 = dma.hbm_to_vmem [thread:$0]  (%p7310_p8), %s6167_s19, 1024, %s6170_s26, %s7243_s20, %s7314_s22, %s7314_s22, %s7313_s2  }
 0x123   : > { %s6203_s24 = sshll.u32 %s5646_s4, 11  ;;  %s7316_s11 = sld [smem:[#allocation75_spill]] }
 0x124   : > { %s891_s18 = scalar_lea.vmem [#allocation20], %s6173_s7  ;;  %s888_s23 = scalar_lea.sflag [#allocation21], %s6004_s12 }
 0x125   : > { %s898_s28 = sshll.u32 %s891_s18, 4  ;;  %s6212_s28 = int_to_ptr.vmem [resolvable:$true] %s898_s28 }
 0x129   : > { %s6209_s1 = scalar_lea.hbm %s7316_s11, %s6203_s24  ;;  %s5104_s5 = scalar_lea.hbm %s7316_s11, 4096 }
 0x12a   : > { %s5100_s9 = scalar_lea.hbm %s6209_s1, 2048  ;;  %p5105_p6 = scmp.lt.u32.totalorder %s6209_s1, %s7316_s11 }
 0x12b   : > { %p5101_p11 = scmp.ne.s32.totalorder %s6209_s1, %s5100_s9  ;;  %p5106_p10 = scmp.lt.u32.totalorder %s5104_s5, %s5100_s9 }
 0x12c   : > { %p5108_p12 = scmp.lt.u32.totalorder %s5100_s9, %s6209_s1 }
 0x12d   : > { %p5102_p5 = pnand %p5101_p11, %p7310_p8  ;;  %p5107_p7 = por %p5106_p10, %p5105_p6 }
 0x12f   : > { %p5103_p9 = pneg %p5102_p5  ;;  %p5109_p3 = por %p5108_p12, %p5107_p7 }
 0x131   : > { %p5110_p13 = pnand %p5109_p3, %p5103_p9 }
 0x133   : > { %5113 = shalt.err (!%p5110_p13)
}
 0x134   : > { %s5114_s18 = scalar_lea.vmem %s6212_s28, 2048  ;;  %s5667_s19 = smov [#allocation20]  }
 0x135   : > { %p5115_p2 = scmp.ne.s32.totalorder %s6212_s28, %s5114_s18  ;;  %s5118_s26 = sshll.u32 %s5667_s19, 4  ;;  %s5119_s26 = int_to_ptr.vmem [resolvable:$false] %s5118_s26 }
 0x136   : > { %s5120_s20 = scalar_lea.vmem %s5119_s26, 4096  ;;  %p5121_p11 = scmp.lt.s32.totalorder %s6212_s28, %s5119_s26 }
 0x137   : > { %p5116_p0 = pnand %p5115_p2, %p7310_p8  ;;  %p5122_p5 = scmp.lt.s32.totalorder %s5120_s20, %s5114_s18 }
 0x139   : > { %p5117_p1 = pneg %p5116_p0  ;;  %p5123_p6 = por %p5122_p5, %p5121_p11 }
 0x13b   : > { %p5124_p10 = pnand %p5123_p6, %p5117_p1 }
 0x13d   : > { %5127 = shalt.err (!%p5124_p10)
}
 0x13e   : > { %s5668_s9 = smov 128   ;;  %s5669_s5 = smov 8  }
 0x13f   : > { %4552 = dma.hbm_to_vmem [thread:$0]  (%p7310_p8), %s6209_s1, 2048, %s6212_s28, %s888_s23, %s5668_s9, %s5668_s9, %s5669_s5  }
 0x140   : > { %s7317_s13 = sld [smem:[#allocation77_spill]]  ;;  %s931_s26 = scalar_lea.vmem [#allocation23], %s6122_s14 }
 0x141   : > { %s938_s20 = sshll.u32 %s931_s26, 4  ;;  %s7249_s11 = scalar_lea.sflag [#allocation24], %s6004_s12  ;;  %s6248_s20 = int_to_ptr.vmem [resolvable:$true] %s938_s20 }
 0x146   : > { %s6245_s19 = scalar_lea.hbm %s7317_s13, %s6125_s29  ;;  %s5132_s8 = scalar_lea.hbm %s7317_s13, 2048 }
 0x147   : > { %s5128_s16 = scalar_lea.hbm %s6245_s19, 1024  ;;  %p5133_p3 = scmp.lt.u32.totalorder %s6245_s19, %s7317_s13 }
 0x148   : > { %p5129_p9 = scmp.ne.s32.totalorder %s6245_s19, %s5128_s16  ;;  %p5134_p13 = scmp.lt.u32.totalorder %s5132_s8, %s5128_s16 }
 0x149   : > { %p5136_p0 = scmp.lt.u32.totalorder %s5128_s16, %s6245_s19 }
 0x14a   : > { %p5130_p7 = pnand %p5129_p9, %p7310_p8  ;;  %p5135_p2 = por %p5134_p13, %p5133_p3 }
 0x14c   : > { %p5131_p12 = pneg %p5130_p7  ;;  %p5137_p1 = por %p5136_p0, %p5135_p2 }
 0x14e   : > { %p5138_p11 = pnand %p5137_p1, %p5131_p12 }
 0x150   : > { %5141 = shalt.err (!%p5138_p11)
}
 0x151   : > { %s5142_s14 = scalar_lea.vmem %s6248_s20, 1024  ;;  %s5670_s26 = smov [#allocation23]  }
 0x152   : > { %p5143_p5 = scmp.ne.s32.totalorder %s6248_s20, %s5142_s14  ;;  %s5146_s1 = sshll.u32 %s5670_s26, 4  ;;  %s5147_s1 = int_to_ptr.vmem [resolvable:$false] %s5146_s1 }
 0x153   : > { %s5148_s28 = scalar_lea.vmem %s5147_s1, 2048  ;;  %p5149_p9 = scmp.lt.s32.totalorder %s6248_s20, %s5147_s1 }
 0x154   : > { %p5144_p6 = pnand %p5143_p5, %p7310_p8  ;;  %p5150_p7 = scmp.lt.s32.totalorder %s5148_s28, %s5142_s14 }
 0x156   : > { %p5145_p10 = pneg %p5144_p6  ;;  %p5151_p3 = por %p5150_p7, %p5149_p9 }
 0x158   : > { %p5152_p13 = pnand %p5151_p3, %p5145_p10 }
 0x15a   : > { %5155 = shalt.err (!%p5152_p13)
}
 0x15b   : > { %4554 = dma.hbm_to_vmem [thread:$0]  (%p7310_p8), %s6245_s19, 1024, %s6248_s20, %s7249_s11, %s7314_s22, %s7314_s22, %s7313_s2  }
 0x15c   : > { %s7318_s15 = sld [smem:[#allocation79_spill]]  ;;  %s969_s18 = scalar_lea.vmem [#allocation26], %s6173_s7 }
 0x15d   : > { %s976_s14 = sshll.u32 %s969_s18, 4  ;;  %s7246_s26 = scalar_lea.sflag [#allocation27], %s6004_s12  ;;  %s6284_s14 = int_to_ptr.vmem [resolvable:$true] %s976_s14 }
 0x162   : > { %s6281_s29 = scalar_lea.hbm %s7318_s15, %s6203_s24  ;;  %s5160_s28 = scalar_lea.hbm %s7318_s15, 4096 }
 0x163   : > { %s5156_s1 = scalar_lea.hbm %s6281_s29, 2048  ;;  %p5161_p1 = scmp.lt.u32.totalorder %s6281_s29, %s7318_s15 }
 0x164   : > { %p5157_p12 = scmp.ne.s32.totalorder %s6281_s29, %s5156_s1  ;;  %p5162_p11 = scmp.lt.u32.totalorder %s5160_s28, %s5156_s1 }
 0x165   : > { %p5164_p6 = scmp.lt.u32.totalorder %s5156_s1, %s6281_s29 }
 0x166   : > { %p5158_p2 = pnand %p5157_p12, %p7310_p8  ;;  %p5163_p5 = por %p5162_p11, %p5161_p1 }
 0x168   : > { %p5159_p0 = pneg %p5158_p2  ;;  %p5165_p10 = por %p5164_p6, %p5163_p5 }
 0x16a   : > { %p5166_p9 = pnand %p5165_p10, %p5159_p0 }
 0x16c   : > { %5169 = shalt.err (!%p5166_p9)
}
 0x16d   : > { %s5170_s18 = scalar_lea.vmem %s6284_s14, 2048  ;;  %s5671_s19 = smov [#allocation26]  }
 0x16e   : > { %p5171_p7 = scmp.ne.s32.totalorder %s6284_s14, %s5170_s18  ;;  %s5174_s20 = sshll.u32 %s5671_s19, 4  ;;  %s5175_s20 = int_to_ptr.vmem [resolvable:$false] %s5174_s20 }
 0x16f   : > { %s5176_s16 = scalar_lea.vmem %s5175_s20, 4096  ;;  %p5177_p12 = scmp.lt.s32.totalorder %s6284_s14, %s5175_s20 }
 0x170   : > { %p5172_p3 = pnand %p5171_p7, %p7310_p8  ;;  %p5178_p2 = scmp.lt.s32.totalorder %s5176_s16, %s5170_s18 }
 0x172   : > { %p5173_p13 = pneg %p5172_p3  ;;  %p5179_p1 = por %p5178_p2, %p5177_p12 }
 0x174   : > { %p5180_p11 = pnand %p5179_p1, %p5173_p13 }
 0x176   : > { %5183 = shalt.err (!%p5180_p11)
}
 0x177   : > { %4556 = dma.hbm_to_vmem [thread:$0]  (%p7310_p8), %s6281_s29, 2048, %s6284_s14, %s7246_s26, %s5668_s9, %s5668_s9, %s5669_s5  }
 0x178   : > { %s7319_s17 = sld [smem:[#allocation81_spill]]  ;;  %s1009_s18 = scalar_lea.vmem [#allocation29], %s6173_s7 }
 0x179   : > { %s1016_s19 = sshll.u32 %s1009_s18, 4  ;;  %s7248_s20 = scalar_lea.sflag [#allocation30], %s6004_s12  ;;  %s6320_s19 = int_to_ptr.vmem [resolvable:$true] %s1016_s19 }
 0x17e   : > { %s6317_s8 = scalar_lea.hbm %s7319_s17, %s6203_s24  ;;  %s5188_s29 = scalar_lea.hbm %s7319_s17, 4096 }
 0x17f   : > { %s5184_s16 = scalar_lea.hbm %s6317_s8, 2048  ;;  %p5189_p10 = scmp.lt.u32.totalorder %s6317_s8, %s7319_s17 }
 0x180   : > { %p5185_p0 = scmp.ne.s32.totalorder %s6317_s8, %s5184_s16  ;;  %p5190_p9 = scmp.lt.u32.totalorder %s5188_s29, %s5184_s16 }
 0x181   : > { %p5192_p3 = scmp.lt.u32.totalorder %s5184_s16, %s6317_s8 }
 0x182   : > { %p5186_p5 = pnand %p5185_p0, %p7310_p8  ;;  %p5191_p7 = por %p5190_p9, %p5189_p10 }
 0x184   : > { %p5187_p6 = pneg %p5186_p5  ;;  %p5193_p13 = por %p5192_p3, %p5191_p7 }
 0x186   : > { %p5194_p12 = pnand %p5193_p13, %p5187_p6 }
 0x188   : > { %5197 = shalt.err (!%p5194_p12)
}
 0x189   : > { %s5198_s7 = scalar_lea.vmem %s6320_s19, 2048  ;;  %s5672_s1 = smov [#allocation29]  }
 0x18a   : > { %p5199_p2 = scmp.ne.s32.totalorder %s6320_s19, %s5198_s7  ;;  %s5202_s28 = sshll.u32 %s5672_s1, 4  ;;  %s5203_s28 = int_to_ptr.vmem [resolvable:$false] %s5202_s28 }
 0x18b   : > { %s5204_s18 = scalar_lea.vmem %s5203_s28, 4096  ;;  %p5205_p0 = scmp.lt.s32.totalorder %s6320_s19, %s5203_s28 }
 0x18c   : > { %p5200_p1 = pnand %p5199_p2, %p7310_p8  ;;  %p5206_p5 = scmp.lt.s32.totalorder %s5204_s18, %s5198_s7 }
 0x18e   : > { %p5201_p11 = pneg %p5200_p1  ;;  %p5207_p10 = por %p5206_p5, %p5205_p0 }
 0x190   : > { %p5208_p9 = pnand %p5207_p10, %p5201_p11 }
 0x192   : > { %5211 = shalt.err (!%p5208_p9)
}
 0x193   : > { %4558 = dma.hbm_to_vmem [thread:$0]  (%p7310_p8), %s6317_s8, 2048, %s6320_s19, %s7248_s20, %s7314_s22, %s7314_s22, %s7313_s2  }
 0x194   : > { %s7320_s16 = sshll.u32 %s5650_s30, 7  ;;  %s7321_s29 = sld [smem:[#allocation64_spill]] }
 0x195   : > { %s7323_s7 = sshll.u32 %s5999_s27, 3  ;;  %s680_s18 = scalar_lea.sflag [#allocation3], %s5999_s27 }
 0x196   : > { %s683_s1 = scalar_lea.vmem [#allocation2], %s7323_s7 }
 0x197   : > { %s690_s28 = sshll.u32 %s683_s1, 4  ;;  %s691_s28 = int_to_ptr.vmem [resolvable:$true] %s690_s28 }
 0x19a   : > { %s7322_s24 = smov %s7321_s29  ;;  %s6354_s14 = scalar_lea.hbm %s7321_s29, %s7320_s16 }
 0x19b   : > { %s5212_s26 = scalar_lea.hbm %s6354_s14, 128  ;;  %s5216_s8 = scalar_lea.hbm %s7322_s24, 256 }
 0x19c   : > { %p5213_p6 = scmp.ne.s32.totalorder %s6354_s14, %s5212_s26  ;;  %p5217_p13 = scmp.lt.u32.totalorder %s6354_s14, %s7322_s24 }
 0x19d   : > { %p5218_p12 = scmp.lt.u32.totalorder %s5216_s8, %s5212_s26  ;;  %p5220_p1 = scmp.lt.u32.totalorder %s5212_s26, %s6354_s14 }
 0x19e   : > { %p5214_p7 = pnand %p5213_p6, %p7307_p4 }
 0x19f   : > { %p5219_p2 = por %p5218_p12, %p5217_p13 }
 0x1a0   : > { %p5215_p3 = pneg %p5214_p7 }
 0x1a1   : > { %p5221_p11 = por %p5220_p1, %p5219_p2 }
 0x1a3   : > { %p5222_p0 = pnand %p5221_p11, %p5215_p3 }
 0x1a5   : > { %5225 = shalt.err (!%p5222_p0)
}
 0x1a6   : > { %s5226_s9 = scalar_lea.vmem %s691_s28, 128  ;;  %s5673_s5 = smov [#allocation2]  }
 0x1a7   : > { %p5227_p5 = scmp.ne.s32.totalorder %s691_s28, %s5226_s9  ;;  %s5230_s29 = sshll.u32 %s5673_s5, 4  ;;  %s5231_s29 = int_to_ptr.vmem [resolvable:$false] %s5230_s29 }
 0x1a8   : > { %s5232_s7 = scalar_lea.vmem %s5231_s29, 256  ;;  %p5233_p6 = scmp.lt.s32.totalorder %s691_s28, %s5231_s29 }
 0x1a9   : > { %p5228_p10 = pnand %p5227_p5, %p7307_p4  ;;  %p5234_p7 = scmp.lt.s32.totalorder %s5232_s7, %s5226_s9 }
 0x1ab   : > { %p5229_p9 = pneg %p5228_p10  ;;  %p5235_p8 = por %p5234_p7, %p5233_p6 }
 0x1ad   : > { %p5236_p12 = pnand %p5235_p8, %p5229_p9 }
 0x1af   : > { %5239 = shalt.err (!%p5236_p12)
}
 0x1b0   : > { %4541 = dma.hbm_to_vmem [thread:$0]  (%p7307_p4), %s6354_s14, 128, %s691_s28, %s680_s18  }
 0x1b1   : > { %s4079_s26 = sshll.u32 %s5650_s30, 4  ;;  %s721_s1 = scalar_lea.vmem [#allocation7], %s5999_s27 }
 0x1b2   : > { %s728_s2 = sshll.u32 %s721_s1, 4  ;;  %s7324_s19 = sld [smem:[#allocation66_spill]]  ;;  %s729_s2 = int_to_ptr.vmem [resolvable:$true] %s728_s2 }
 0x1b8   : > { %s726_s16 = scalar_lea.hbm %s7324_s19, %s4079_s26  ;;  %s5244_s7 = scalar_lea.hbm %s7324_s19, 32 }
 0x1b9   : > { %s5240_s5 = scalar_lea.hbm %s726_s16, 16  ;;  %p5245_p2 = scmp.lt.u32.totalorder %s726_s16, %s7324_s19 }
 0x1ba   : > { %p5241_p3 = scmp.ne.s32.totalorder %s726_s16, %s5240_s5  ;;  %p5246_p1 = scmp.lt.u32.totalorder %s5244_s7, %s5240_s5 }
 0x1bb   : > { %p5248_p0 = scmp.lt.u32.totalorder %s5240_s5, %s726_s16 }
 0x1bc   : > { %p5242_p8 = pnand %p5241_p3, %p7307_p4  ;;  %p5247_p11 = por %p5246_p1, %p5245_p2 }
 0x1be   : > { %p5243_p13 = pneg %p5242_p8  ;;  %p5249_p5 = por %p5248_p0, %p5247_p11 }
 0x1c0   : > { %p5250_p10 = pnand %p5249_p5, %p5243_p13 }
 0x1c2   : > { %5253 = shalt.err (!%p5250_p10)
}
 0x1c3   : > { %s5254_s27 = scalar_lea.vmem %s729_s2, 16  ;;  %s5674_s14 = smov [#allocation7]  }
 0x1c4   : > { %p5255_p9 = scmp.ne.s32.totalorder %s729_s2, %s5254_s27  ;;  %s5258_s28 = sshll.u32 %s5674_s14, 4  ;;  %s5259_s28 = int_to_ptr.vmem [resolvable:$false] %s5258_s28 }
 0x1c5   : > { %s5260_s18 = scalar_lea.vmem %s5259_s28, 32  ;;  %p5261_p12 = scmp.lt.s32.totalorder %s729_s2, %s5259_s28 }
 0x1c6   : > { %p5256_p6 = pnand %p5255_p9, %p7307_p4  ;;  %p5262_p3 = scmp.lt.s32.totalorder %s5260_s18, %s5254_s27 }
 0x1c8   : > { %p5257_p7 = pneg %p5256_p6  ;;  %p5263_p8 = por %p5262_p3, %p5261_p12 }
 0x1ca   : > { %p5264_p1 = pnand %p5263_p8, %p5257_p7 }
 0x1cc   : > { %5267 = shalt.err (!%p5264_p1)
}
 0x1cd   : > { %s7325_s11 = scalar_lea.sflag [#allocation6], %s6004_s12  ;;  %s7326_s20 = sshll.u32 %s5646_s4, 6 }
 0x1ce   : > { %4543 = dma.hbm_to_vmem [thread:$0]  (%p7307_p4), %s726_s16, 16, %s729_s2, %s7325_s11  }
 0x1cf   : > { %s7327_s22 = sld [smem:[#allocation68_spill]]  ;;  %s7328_s5 = sshll.u32 %s6045_s25, 2 }
 0x1d0   : > { %s757_s0 = scalar_lea.vmem [#allocation10], %s7328_s5  ;;  %s4533_s29 = smul.u32 3, %s6045_s25 }
 0x1d1   : > { %s764_s9 = sshll.u32 %s757_s0, 4  ;;  %s4534_s7 = smul.u32 48, %s5646_s4  ;;  %s765_s9 = int_to_ptr.vmem [resolvable:$true] %s764_s9 }
 0x1d2   : > { %p7329_p2 = scmp.ne.s32.totalorder %s7293_s10, 0 }
 0x1d5   : > { %s6400_s8 = scalar_lea.hbm %s7327_s22, %s7326_s20  ;;  %s5272_s14 = scalar_lea.hbm %s7327_s22, 128 }
 0x1d6   : > { %s5268_s27 = scalar_lea.hbm %s6400_s8, 64  ;;  %p5273_p0 = scmp.lt.u32.totalorder %s6400_s8, %s7327_s22 }
 0x1d7   : > { %p5269_p13 = scmp.ne.s32.totalorder %s6400_s8, %s5268_s27  ;;  %p5274_p5 = scmp.lt.u32.totalorder %s5272_s14, %s5268_s27 }
 0x1d8   : > { %p5276_p9 = scmp.lt.u32.totalorder %s5268_s27, %s6400_s8 }
 0x1d9   : > { %p5270_p4 = pnand %p5269_p13, %p7329_p2  ;;  %p5275_p10 = por %p5274_p5, %p5273_p0 }
 0x1db   : > { %p5271_p11 = pneg %p5270_p4  ;;  %p5277_p6 = por %p5276_p9, %p5275_p10 }
 0x1dd   : > { %p5278_p7 = pnand %p5277_p6, %p5271_p11 }
 0x1df   : > { %5281 = shalt.err (!%p5278_p7)
}
 0x1e0   : > { %s5282_s11 = scalar_lea.vmem %s765_s9, 64  ;;  %s5675_s20 = smov [#allocation10]  }
 0x1e1   : > { %p5283_p12 = scmp.ne.s32.totalorder %s765_s9, %s5282_s11  ;;  %s5286_s26 = sshll.u32 %s5675_s20, 4  ;;  %s5287_s26 = int_to_ptr.vmem [resolvable:$false] %s5286_s26 }
 0x1e2   : > { %s5288_s1 = scalar_lea.vmem %s5287_s26, 128  ;;  %p5289_p1 = scmp.lt.s32.totalorder %s765_s9, %s5287_s26 }
 0x1e3   : > { %p5284_p3 = pnand %p5283_p12, %p7329_p2  ;;  %p5290_p13 = scmp.lt.s32.totalorder %s5288_s1, %s5282_s11 }
 0x1e5   : > { %p5285_p8 = pneg %p5284_p3  ;;  %p5291_p4 = por %p5290_p13, %p5289_p1 }
 0x1e7   : > { %p5292_p0 = pnand %p5291_p4, %p5285_p8 }
 0x1e9   : > { %5295 = shalt.err (!%p5292_p0)
}
 0x1ea   : > { %s7330_s5 = scalar_lea.sflag [#allocation9], %s6004_s12  ;;  %s7331_s6 = sld [smem:[#allocation70_spill]] }
 0x1eb   : > { %4545 = dma.hbm_to_vmem [thread:$0]  (%p7329_p2), %s6400_s8, 64, %s765_s9, %s7330_s5  }
 0x1ec   : > { %s796_s16 = scalar_lea.vmem [#allocation13], %s4533_s29  ;;  %s6433_s28 = sshll.u32 %s5646_s4, 4 }
 0x1ed   : > { %s804_s14 = sshll.u32 %s796_s16, 4  ;;  %s805_s14 = int_to_ptr.vmem [resolvable:$true] %s804_s14 }
 0x1f0   : > { %s6428_s2 = scalar_lea.hbm %s7331_s6, %s4534_s7  ;;  %s5300_s7 = scalar_lea.hbm %s7331_s6, 96 }
 0x1f1   : > { %s5296_s18 = scalar_lea.hbm %s6428_s2, 48  ;;  %p5301_p9 = scmp.lt.u32.totalorder %s6428_s2, %s7331_s6 }
 0x1f2   : > { %p5297_p11 = scmp.ne.s32.totalorder %s6428_s2, %s5296_s18  ;;  %p5302_p6 = scmp.lt.u32.totalorder %s5300_s7, %s5296_s18 }
 0x1f3   : > { %p5304_p12 = scmp.lt.u32.totalorder %s5296_s18, %s6428_s2 }
 0x1f4   : > { %p5298_p5 = pnand %p5297_p11, %p7329_p2  ;;  %p5303_p7 = por %p5302_p6, %p5301_p9 }
 0x1f6   : > { %p5299_p10 = pneg %p5298_p5  ;;  %p5305_p3 = por %p5304_p12, %p5303_p7 }
 0x1f8   : > { %p5306_p8 = pnand %p5305_p3, %p5299_p10 }
 0x1fa   : > { %5309 = shalt.err (!%p5306_p8)
}
 0x1fb   : > { %s5310_s29 = scalar_lea.vmem %s805_s14, 48  ;;  %s5676_s26 = smov [#allocation13]  }
 0x1fc   : > { %p5311_p1 = scmp.ne.s32.totalorder %s805_s14, %s5310_s29  ;;  %s5314_s1 = sshll.u32 %s5676_s26, 4  ;;  %s5315_s1 = int_to_ptr.vmem [resolvable:$false] %s5314_s1 }
 0x1fd   : > { %s5316_s5 = scalar_lea.vmem %s5315_s1, 96  ;;  %p5317_p0 = scmp.lt.s32.totalorder %s805_s14, %s5315_s1 }
 0x1fe   : > { %p5312_p13 = pnand %p5311_p1, %p7329_p2  ;;  %p5318_p11 = scmp.lt.s32.totalorder %s5316_s5, %s5310_s29 }
 0x200   : > { %p5313_p4 = pneg %p5312_p13  ;;  %p5319_p5 = por %p5318_p11, %p5317_p0 }
 0x202   : > { %p5320_p6 = pnand %p5319_p5, %p5313_p4 }
 0x204   : > { %5323 = shalt.err (!%p5320_p6)
}
 0x205   : > { %s7332_s0 = scalar_lea.sflag [#allocation12], %s6004_s12  ;;  %s7333_s18 = sld [smem:[#allocation72_spill]] }
 0x206   : > { %4547 = dma.hbm_to_vmem [thread:$0]  (%p7329_p2), %s6428_s2, 48, %s805_s14, %s7332_s0  }
 0x207   : > { %s835_s9 = scalar_lea.vmem [#allocation16], %s6045_s25 }
 0x208   : > { %s842_s7 = sshll.u32 %s835_s9, 4  ;;  %s843_s7 = int_to_ptr.vmem [resolvable:$true] %s842_s7 }
 0x20b   : > { %s6458_s8 = scalar_lea.hbm %s7333_s18, %s6433_s28  ;;  %s5328_s2 = scalar_lea.hbm %s7333_s18, 32 }
 0x20c   : > { %s5324_s11 = scalar_lea.hbm %s6458_s8, 16  ;;  %p5329_p12 = scmp.lt.u32.totalorder %s6458_s8, %s7333_s18 }
 0x20d   : > { %p5325_p10 = scmp.ne.s32.totalorder %s6458_s8, %s5324_s11  ;;  %p5330_p3 = scmp.lt.u32.totalorder %s5328_s2, %s5324_s11 }
 0x20e   : > { %p5332_p1 = scmp.lt.u32.totalorder %s5324_s11, %s6458_s8 }
 0x20f   : > { %p5326_p9 = pnand %p5325_p10, %p7329_p2  ;;  %p5331_p8 = por %p5330_p3, %p5329_p12 }
 0x211   : > { %p5327_p7 = pneg %p5326_p9  ;;  %p5333_p13 = por %p5332_p1, %p5331_p8 }
 0x213   : > { %p5334_p4 = pnand %p5333_p13, %p5327_p7 }
 0x215   : > { %5337 = shalt.err (!%p5334_p4)
}
 0x216   : > { %s5338_s1 = scalar_lea.vmem %s843_s7, 16  ;;  %s5677_s5 = smov [#allocation16]  }
 0x217   : > { %p5339_p0 = scmp.ne.s32.totalorder %s843_s7, %s5338_s1  ;;  %s5342_s0 = sshll.u32 %s5677_s5, 4  ;;  %s5343_s0 = int_to_ptr.vmem [resolvable:$false] %s5342_s0 }
 0x218   : > { %s5344_s27 = scalar_lea.vmem %s5343_s0, 32  ;;  %p5345_p6 = scmp.lt.s32.totalorder %s843_s7, %s5343_s0 }
 0x219   : > { %p5340_p11 = pnand %p5339_p0, %p7329_p2  ;;  %p5346_p10 = scmp.lt.s32.totalorder %s5344_s27, %s5338_s1 }
 0x21b   : > { %p5341_p5 = pneg %p5340_p11  ;;  %p5347_p9 = por %p5346_p10, %p5345_p6 }
 0x21d   : > { %p5348_p3 = pnand %p5347_p9, %p5341_p5 }
 0x21f   : > { %5351 = shalt.err (!%p5348_p3)
}
 0x220   : > { %s7334_s16 = scalar_lea.sflag [#allocation15], %s6004_s12  ;;  %s7335_s20 = sld [smem:[#allocation74_spill]] }
 0x221   : > { %4549 = dma.hbm_to_vmem [thread:$0]  (%p7329_p2), %s6458_s8, 16, %s843_s7, %s7334_s16  }
 0x222   : > { %s873_s2 = scalar_lea.vmem [#allocation19], %s6045_s25  ;;  %s7250_s26 = sshll.u32 %s6045_s25, 1 }
 0x223   : > { %s880_s14 = sshll.u32 %s873_s2, 4  ;;  %s881_s14 = int_to_ptr.vmem [resolvable:$true] %s880_s14 }
 0x226   : > { %s6484_s29 = scalar_lea.hbm %s7335_s20, %s6433_s28  ;;  %s5356_s7 = scalar_lea.hbm %s7335_s20, 32 }
 0x227   : > { %s5352_s1 = scalar_lea.hbm %s6484_s29, 16  ;;  %p5357_p1 = scmp.lt.u32.totalorder %s6484_s29, %s7335_s20 }
 0x228   : > { %p5353_p7 = scmp.ne.s32.totalorder %s6484_s29, %s5352_s1  ;;  %p5358_p13 = scmp.lt.u32.totalorder %s5356_s7, %s5352_s1 }
 0x229   : > { %p5360_p0 = scmp.lt.u32.totalorder %s5352_s1, %s6484_s29 }
 0x22a   : > { %p5354_p12 = pnand %p5353_p7, %p7329_p2  ;;  %p5359_p4 = por %p5358_p13, %p5357_p1 }
 0x22c   : > { %p5355_p8 = pneg %p5354_p12  ;;  %p5361_p11 = por %p5360_p0, %p5359_p4 }
 0x22e   : > { %p5362_p5 = pnand %p5361_p11, %p5355_p8 }
 0x230   : > { %5365 = shalt.err (!%p5362_p5)
}
 0x231   : > { %s5366_s16 = scalar_lea.vmem %s881_s14, 16  ;;  %s5678_s9 = smov [#allocation19]  }
 0x232   : > { %p5367_p6 = scmp.ne.s32.totalorder %s881_s14, %s5366_s16  ;;  %s5370_s11 = sshll.u32 %s5678_s9, 4  ;;  %s5371_s11 = int_to_ptr.vmem [resolvable:$false] %s5370_s11 }
 0x233   : > { %s5372_s2 = scalar_lea.vmem %s5371_s11, 32  ;;  %p5373_p3 = scmp.lt.s32.totalorder %s881_s14, %s5371_s11 }
 0x234   : > { %p5368_p10 = pnand %p5367_p6, %p7329_p2  ;;  %p5374_p7 = scmp.lt.s32.totalorder %s5372_s2, %s5366_s16 }
 0x236   : > { %p5369_p9 = pneg %p5368_p10  ;;  %p5375_p12 = por %p5374_p7, %p5373_p3 }
 0x238   : > { %p5376_p1 = pnand %p5375_p12, %p5369_p9 }
 0x23a   : > { %5379 = shalt.err (!%p5376_p1)
}
 0x23b   : > { %s7336_s1 = scalar_lea.sflag [#allocation18], %s6004_s12  ;;  %s4260_s5 = sshll.u32 %s5646_s4, 5 }
 0x23c   : > { %4551 = dma.hbm_to_vmem [thread:$0]  (%p7329_p2), %s6484_s29, 16, %s881_s14, %s7336_s1  }
 0x23d   : > { %s7337_s0 = sld [smem:[#allocation76_spill]]  ;;  %s912_s16 = scalar_lea.vmem [#allocation22], %s7250_s26 }
 0x23e   : > { %s920_s11 = sshll.u32 %s912_s16, 4  ;;  %s921_s11 = int_to_ptr.vmem [resolvable:$true] %s920_s11 }
 0x243   : > { %s7338_s9 = smov %s7337_s0  ;;  %s6513_s27 = scalar_lea.hbm %s7337_s0, %s4260_s5 }
 0x244   : > { %s5380_s2 = scalar_lea.hbm %s6513_s27, 32  ;;  %s5384_s1 = scalar_lea.hbm %s7338_s9, 64 }
 0x245   : > { %p5381_p8 = scmp.ne.s32.totalorder %s6513_s27, %s5380_s2  ;;  %p5385_p0 = scmp.lt.u32.totalorder %s6513_s27, %s7338_s9 }
 0x246   : > { %p5386_p11 = scmp.lt.u32.totalorder %s5384_s1, %s5380_s2  ;;  %p5388_p6 = scmp.lt.u32.totalorder %s5380_s2, %s6513_s27 }
 0x247   : > { %p5382_p13 = pnand %p5381_p8, %p7329_p2 }
 0x248   : > { %p5387_p5 = por %p5386_p11, %p5385_p0 }
 0x249   : > { %p5383_p4 = pneg %p5382_p13 }
 0x24a   : > { %p5389_p10 = por %p5388_p6, %p5387_p5 }
 0x24c   : > { %p5390_p9 = pnand %p5389_p10, %p5383_p4 }
 0x24e   : > { %5393 = shalt.err (!%p5390_p9)
}
 0x24f   : > { %s5394_s0 = scalar_lea.vmem %s921_s11, 32  ;;  %s5679_s16 = smov [#allocation22]  }
 0x250   : > { %p5395_p3 = scmp.ne.s32.totalorder %s921_s11, %s5394_s0  ;;  %s5398_s26 = sshll.u32 %s5679_s16, 4  ;;  %s5399_s26 = int_to_ptr.vmem [resolvable:$false] %s5398_s26 }
 0x251   : > { %s5400_s29 = scalar_lea.vmem %s5399_s26, 64  ;;  %p5401_p1 = scmp.lt.s32.totalorder %s921_s11, %s5399_s26 }
 0x252   : > { %p5396_p7 = pnand %p5395_p3, %p7329_p2  ;;  %p5402_p8 = scmp.lt.s32.totalorder %s5400_s29, %s5394_s0 }
 0x254   : > { %p5397_p12 = pneg %p5396_p7  ;;  %p5403_p13 = por %p5402_p8, %p5401_p1 }
 0x256   : > { %p5404_p0 = pnand %p5403_p13, %p5397_p12 }
 0x258   : > { %5407 = shalt.err (!%p5404_p0)
}
 0x259   : > { %4553 = dma.hbm_to_vmem [thread:$0]  (%p7329_p2), %s6513_s27, 32, %s921_s11, %s888_s23  }
 0x25a   : > { %s7339_s1 = sld [smem:[#allocation78_spill]]  ;;  %s951_s26 = scalar_lea.vmem [#allocation25], %s6045_s25 }
 0x25b   : > { %s958_s7 = sshll.u32 %s951_s26, 4  ;;  %s959_s7 = int_to_ptr.vmem [resolvable:$true] %s958_s7 }
 0x260   : > { %s6540_s8 = scalar_lea.hbm %s7339_s1, %s6433_s28  ;;  %s5412_s23 = scalar_lea.hbm %s7339_s1, 32 }
 0x261   : > { %s5408_s0 = scalar_lea.hbm %s6540_s8, 16  ;;  %p5413_p6 = scmp.lt.u32.totalorder %s6540_s8, %s7339_s1 }
 0x262   : > { %p5409_p4 = scmp.ne.s32.totalorder %s6540_s8, %s5408_s0  ;;  %p5414_p10 = scmp.lt.u32.totalorder %s5412_s23, %s5408_s0 }
 0x263   : > { %p5416_p3 = scmp.lt.u32.totalorder %s5408_s0, %s6540_s8 }
 0x264   : > { %p5410_p11 = pnand %p5409_p4, %p7329_p2  ;;  %p5415_p9 = por %p5414_p10, %p5413_p6 }
 0x266   : > { %p5411_p5 = pneg %p5410_p11  ;;  %p5417_p7 = por %p5416_p3, %p5415_p9 }
 0x268   : > { %p5418_p12 = pnand %p5417_p7, %p5411_p5 }
 0x26a   : > { %5421 = shalt.err (!%p5418_p12)
}
 0x26b   : > { %s5422_s2 = scalar_lea.vmem %s959_s7, 16  ;;  %s5680_s14 = smov [#allocation25]  }
 0x26c   : > { %p5423_p1 = scmp.ne.s32.totalorder %s959_s7, %s5422_s2  ;;  %s5426_s26 = sshll.u32 %s5680_s14, 4  ;;  %s5427_s26 = int_to_ptr.vmem [resolvable:$false] %s5426_s26 }
 0x26d   : > { %s5428_s16 = scalar_lea.vmem %s5427_s26, 32  ;;  %p5429_p0 = scmp.lt.s32.totalorder %s959_s7, %s5427_s26 }
 0x26e   : > { %p5424_p8 = pnand %p5423_p1, %p7329_p2  ;;  %p5430_p4 = scmp.lt.s32.totalorder %s5428_s16, %s5422_s2 }
 0x270   : > { %p5425_p13 = pneg %p5424_p8  ;;  %p5431_p11 = por %p5430_p4, %p5429_p0 }
 0x272   : > { %p5432_p6 = pnand %p5431_p11, %p5425_p13 }
 0x274   : > { %5435 = shalt.err (!%p5432_p6)
}
 0x275   : > { %s7340_s0 = scalar_lea.sflag [#allocation24], %s6004_s12  ;;  %s7341_s27 = sld [smem:[#allocation80_spill]] }
 0x276   : > { %4555 = dma.hbm_to_vmem [thread:$0]  (%p7329_p2), %s6540_s8, 16, %s959_s7, %s7340_s0  }
 0x277   : > { %s7343_s26 = sshll.u32 %s6045_s25, 1 }
 0x278   : > { %s990_s2 = scalar_lea.vmem [#allocation28], %s7343_s26 }
 0x279   : > { %s998_s16 = sshll.u32 %s990_s2, 4  ;;  %s999_s16 = int_to_ptr.vmem [resolvable:$true] %s998_s16 }
 0x27b   : > { %s7342_s11 = smov %s7341_s27  ;;  %s6567_s14 = scalar_lea.hbm %s7341_s27, %s4260_s5 }
 0x27c   : > { %s5436_s1 = scalar_lea.hbm %s6567_s14, 32  ;;  %s5440_s0 = scalar_lea.hbm %s7342_s11, 64 }
 0x27d   : > { %p5437_p5 = scmp.ne.s32.totalorder %s6567_s14, %s5436_s1  ;;  %p5441_p3 = scmp.lt.u32.totalorder %s6567_s14, %s7342_s11 }
 0x27e   : > { %p5442_p7 = scmp.lt.u32.totalorder %s5440_s0, %s5436_s1  ;;  %p5444_p1 = scmp.lt.u32.totalorder %s5436_s1, %s6567_s14 }
 0x27f   : > { %p5438_p10 = pnand %p5437_p5, %p7329_p2 }
 0x280   : > { %p5443_p12 = por %p5442_p7, %p5441_p3 }
 0x281   : > { %p5439_p9 = pneg %p5438_p10 }
 0x282   : > { %p5445_p8 = por %p5444_p1, %p5443_p12 }
 0x284   : > { %p5446_p13 = pnand %p5445_p8, %p5439_p9 }
 0x286   : > { %5449 = shalt.err (!%p5446_p13)
}
 0x287   : > { %s5450_s23 = scalar_lea.vmem %s999_s16, 32  ;;  %s5681_s27 = smov [#allocation28]  }
 0x288   : > { %p5451_p0 = scmp.ne.s32.totalorder %s999_s16, %s5450_s23  ;;  %s5454_s26 = sshll.u32 %s5681_s27, 4  ;;  %s5455_s26 = int_to_ptr.vmem [resolvable:$false] %s5454_s26 }
 0x289   : > { %s5456_s2 = scalar_lea.vmem %s5455_s26, 64  ;;  %p5457_p6 = scmp.lt.s32.totalorder %s999_s16, %s5455_s26 }
 0x28a   : > { %p5452_p4 = pnand %p5451_p0, %p7329_p2  ;;  %p5458_p5 = scmp.lt.s32.totalorder %s5456_s2, %s5450_s23 }
 0x28c   : > { %p5453_p11 = pneg %p5452_p4  ;;  %p5459_p10 = por %p5458_p5, %p5457_p6 }
 0x28e   : > { %p5460_p3 = pnand %p5459_p10, %p5453_p11 }
 0x290   : > { %5463 = shalt.err (!%p5460_p3)
}
 0x291   : > { %s7344_s1 = scalar_lea.sflag [#allocation27], %s6004_s12  ;;  %s7345_s0 = sld [smem:[#allocation82_spill]] }
 0x292   : > { %4557 = dma.hbm_to_vmem [thread:$0]  (%p7329_p2), %s6567_s14, 32, %s999_s16, %s7344_s1  }
 0x293   : > { %s1029_s5 = scalar_lea.vmem [#allocation31], %s6045_s25 }
 0x294   : > { %s1036_s23 = sshll.u32 %s1029_s5, 4  ;;  %s1037_s23 = int_to_ptr.vmem [resolvable:$true] %s1036_s23 }
 0x297   : > { %s7346_s6 = smov %s7345_s0  ;;  %s6594_s29 = scalar_lea.hbm %s7345_s0, %s6433_s28 }
 0x298   : > { %s5464_s27 = scalar_lea.hbm %s6594_s29, 16  ;;  %s5468_s14 = scalar_lea.hbm %s7346_s6, 32 }
 0x299   : > { %p5465_p9 = scmp.ne.s32.totalorder %s6594_s29, %s5464_s27  ;;  %p5469_p1 = scmp.lt.u32.totalorder %s6594_s29, %s7346_s6 }
 0x29a   : > { %p5470_p8 = scmp.lt.u32.totalorder %s5468_s14, %s5464_s27  ;;  %p5472_p0 = scmp.lt.u32.totalorder %s5464_s27, %s6594_s29 }
 0x29b   : > { %p5466_p7 = pnand %p5465_p9, %p7329_p2 }
 0x29c   : > { %p5471_p13 = por %p5470_p8, %p5469_p1 }
 0x29d   : > { %p5467_p12 = pneg %p5466_p7 }
 0x29e   : > { %p5473_p4 = por %p5472_p0, %p5471_p13 }
 0x2a0   : > { %p5474_p11 = pnand %p5473_p4, %p5467_p12 }
 0x2a2   : > { %5477 = shalt.err (!%p5474_p11)
}
 0x2a3   : > { %s5478_s25 = scalar_lea.vmem %s1037_s23, 16  ;;  %s5682_s28 = smov [#allocation31]  }
 0x2a4   : > { %p5479_p6 = scmp.ne.s32.totalorder %s1037_s23, %s5478_s25  ;;  %s5482_s8 = sshll.u32 %s5682_s28, 4  ;;  %s5483_s8 = int_to_ptr.vmem [resolvable:$false] %s5482_s8 }
 0x2a5   : > { %s5484_s7 = scalar_lea.vmem %s5483_s8, 32  ;;  %p5485_p3 = scmp.lt.s32.totalorder %s1037_s23, %s5483_s8 }
 0x2a6   : > { %p5480_p5 = pnand %p5479_p6, %p7329_p2  ;;  %p5486_p9 = scmp.lt.s32.totalorder %s5484_s7, %s5478_s25 }
 0x2a8   : > { %p5481_p10 = pneg %p5480_p5  ;;  %p5487_p7 = por %p5486_p9, %p5485_p3 }
 0x2aa   : > { %p5488_p1 = pnand %p5487_p7, %p5481_p10 }
 0x2ac   : > { %5491 = shalt.err (!%p5488_p1)
}
 0x2ad   : > { %s7347_s0 = scalar_lea.sflag [#allocation30], %s6004_s12 }
 0x2ae   : > { %4559 = dma.hbm_to_vmem [thread:$0]  (%p7329_p2), %s6594_s29, 16, %s1037_s23, %s7347_s0  }
 0x2af PF: > { %p7348_p12 = scmp.ne.s32.totalorder %s7302_s21, 0 }
 0x2b0   : > { %s7349_s5 = sld [smem:[#allocation58_spill]] (!%p7348_p12)  ;;  %s6619_s27 = sand.u32 (!%p7348_p12), 1, %s5630_s3  }
 0x2b1   : > { %1045 = sbr.rel (%p7348_p12) target bundleno = 5473 (0x1561), region = 104  ;;  %s6622_s26 = sshll.u32 (!%p7348_p12), %s6619_s27, 3 }
 0x2b2   : > { %s1048_s2 = scalar_lea.sflag (!%p7348_p12), [#allocation3], %s6619_s27 }
 0x2b6   : > { %p7350_p8 = scmp.ne.s32.totalorder (!%p7348_p12), %s7349_s5, 0 }
 0x2b8   : > { %5565 = dma.done.wait (%p7350_p8), %s1048_s2, 128  }
 0x2b9   : > { %5567 = vsyncadd (%p7350_p8), %s1048_s2, 4294967168  ;;  %s7351_s10 = sld [smem:[#allocation55_spill]] }
 0x2bf   : > { %s6631_s21 = sand.u32 1, %s7351_s10  }
 0x2c0   : > { %s1057_s12 = scalar_lea.sflag [#allocation6], %s6631_s21 }
 0x2c1   : > { %5569 = dma.done.wait (%p7350_p8), %s1057_s12, 144  }
 0x2c2   : > { %5571 = vsyncadd (%p7350_p8), %s1057_s12, 4294967152  ;;  %s7352_s23 = sld [smem:[#allocation48_spill]]  ;;  %s7353_s16 = sld [smem:[#allocation61_spill]] }
 0x2c3   : > { %s1074_s8 = scalar_lea.sflag [#allocation9], %s6631_s21 }
 0x2c8   : > { %s6640_s1 = sand.u32 1, %s7352_s23   ;;  %p7354_p2 = scmp.ne.s32.totalorder %s7353_s16, 0 }
 0x2c9   : > { %s4117_s25 = sshll.u32 %s6640_s1, 2 }
 0x2ca   : > { %s6645_s7 = scalar_lea.vmem [#allocation8], %s4117_s25 }
 0x2cb   : > { %5573 = dma.done.wait (%p7354_p2), %s1074_s8, 128  }
 0x2cc   : > { %5575 = vsyncadd (%p7354_p2), %s1074_s8, 4294967168  ;;  %s4535_s0 = smul.u32 192, %s6640_s1  ;;  %s6652_s5 = scalar_lea.vmem [#allocation10], %s4117_s25 }
 0x2cd   : > { %s1092_s2 = scalar_lea.sflag [#allocation12], %s6631_s21 }
 0x2ce   : > { %s6655_s12 = scalar_lea.vmem [#allocation11], %s4535_s0 }
 0x2cf   : > { %5577 = dma.done.wait (%p7354_p2), %s1092_s2, 3120  }
 0x2d0   : > { %5579 = vsyncadd (%p7354_p2), %s1092_s2, 4294964176  ;;  %s4536_s23 = smul.u32 3, %s6640_s1  ;;  %s4119_s8 = sshll.u32 %s6640_s1, 6 }
 0x2d1   : > { %s1110_s29 = scalar_lea.sflag [#allocation15], %s6631_s21  ;;  %s6666_s14 = scalar_lea.vmem [#allocation14], %s4119_s8 }
 0x2d2   : > { %s6663_s28 = scalar_lea.vmem [#allocation13], %s4536_s23 }
 0x2d3   : > { %5581 = dma.done.wait (%p7354_p2), %s1110_s29, 1040  }
 0x2d4   : > { %5583 = vsyncadd (%p7354_p2), %s1110_s29, 4294966256  ;;  %s1127_s0 = scalar_lea.sflag [#allocation18], %s6631_s21  ;;  %s6674_s2 = scalar_lea.vmem [#allocation17], %s4119_s8 }
 0x2d5   : > { %5585 = dma.done.wait (%p7354_p2), %s1127_s0, 1040  }
 0x2d6   : > { %5587 = vsyncadd (%p7354_p2), %s1127_s0, 4294966256  ;;  %s4121_s23 = sshll.u32 %s6640_s1, 7  ;;  %s1144_s9 = scalar_lea.sflag [#allocation21], %s6631_s21 }
 0x2d7   : > { %s6683_s29 = scalar_lea.vmem [#allocation20], %s4121_s23 }
 0x2d8   : > { %5589 = dma.done.wait (%p7354_p2), %s1144_s9, 2080  }
 0x2d9   : > { %5591 = vsyncadd (%p7354_p2), %s1144_s9, 4294965216  ;;  %s4122_s25 = sshll.u32 %s6640_s1, 1  ;;  %s1162_s0 = scalar_lea.sflag [#allocation24], %s6631_s21 }
 0x2da   : > { %s6690_s11 = scalar_lea.vmem [#allocation22], %s4122_s25  ;;  %s6693_s13 = scalar_lea.vmem [#allocation23], %s4119_s8 }
 0x2db   : > { %5593 = dma.done.wait (%p7354_p2), %s1162_s0, 1040  }
 0x2dc   : > { %5595 = vsyncadd (%p7354_p2), %s1162_s0, 4294966256  ;;  %s1173_s6 = scalar_lea.vmem [#allocation25], %s6640_s1  ;;  %s1179_s15 = scalar_lea.sflag [#allocation27], %s6631_s21 }
 0x2dd   : > { %s6701_s9 = scalar_lea.vmem [#allocation26], %s4121_s23 }
 0x2de   : > { %5597 = dma.done.wait (%p7354_p2), %s1179_s15, 2080  }
 0x2df   : > { %5599 = vsyncadd (%p7354_p2), %s1179_s15, 4294965216  ;;  %s6707_s8 = scalar_lea.vmem [#allocation28], %s4122_s25  ;;  %s1197_s17 = scalar_lea.sflag [#allocation30], %s6631_s21 }
 0x2e0   : > { %s6710_s18 = scalar_lea.vmem [#allocation29], %s4121_s23 }
 0x2e1   : > { %5601 = dma.done.wait (%p7354_p2), %s1197_s17, 2064  }
 0x2e2   : > { %5603 = vsyncadd (%p7354_p2), %s1197_s17, 4294965232  ;;  %s1208_s0 = scalar_lea.vmem [#allocation31], %s6640_s1  ;;  %p7355_p13 = scmp.eq.s32.totalorder %s7351_s10, 0 }
 0x2e4   : > { %5605 = dma.done.wait (%p7355_p13), [#allocation33], 32   ;;  %p7356_p0 = pmov %p7355_p13 }
 0x2e5   : > { %s6722_s15 = scalar_lea.vmem [#allocation35], %s6622_s26  ;;  %s7357_s25 = sld [smem:[#allocation52_spill]] }
 0x2e6   : > { %5607 = vsyncadd (%p7356_p0), [#allocation33], 4294967264 }
 0x2eb   : > { %p4130_p4 = scmp.ne.s32.totalorder %s7357_s25, 0 }
 0x2ec   : > { %s7358_s21 = scalar_lea.vmem (!%p4130_p4), [#allocation2], %s6622_s26 }
 0x2ed   : > { %1365 = sbr.rel (%p4130_p4) target bundleno = 756 (0x2f4), region = 192  ;;  %v1366_v0 = vld [vmem:[%s7358_s21] sm:$0xff] (!%p4130_p4) }
 0x2ee   : > { %1367 = vst [vmem:[%s6722_s15] sm:$0xff] (!%p4130_p4), %v1366_v0 }
 0x2f4 PF: > { %v4733_v6 = vld [vmem:[%s6655_s12 + $0x4] ss:$12 sps:$4 sm:$0xff]   ;;  %v4735_v7 = vld [vmem:[%s6655_s12] ss:$12 sps:$4 sm:$0xff]   ;;  %v4736_v8 = vld [vmem:[%s6655_s12 + $0x8] ss:$12 sps:$4 sm:$0xff]   ;;  %v1373_v35 = vlaneseq }
 0x2f5   : > { %v6729_v1 = vld [vmem:[%s6722_s15] sm:$0xff]  ;;  %1588 = vmatprep.subr.bf16.mxu0 %v4733_v6  ;;  %v5683_v9 = vmov 0.0   ;;  %v5684_v23 = vmov 0   ;;  %vm5685_vm0 = vmmov 0   ;;  %v6781_v43 = vld [vmem:[%s6645_s7] sm:$0x7] }
 0x2f6   : > { %1380 = vadd.xlane.f32.xlu0 %v6729_v1  ;;  %4355 = vmatprep.subr.bf16.mxu1 %v5683_v9  ;;  %v4737_v10 = vld [vmem:[%s6655_s12 + $0x1c] ss:$12 sps:$4 sm:$0xff]   ;;  %v4739_v11 = vld [vmem:[%s6655_s12 + $0x18] ss:$12 sps:$4 sm:$0xff]   ;;  %v4740_v12 = vld [vmem:[%s6655_s12 + $0x20] ss:$12 sps:$4 sm:$0xff]  }
 0x2f7   : > { %1589 = vmatpush1.bf16.msra.mxu0 %v4735_v7  ;;  %4356 = vmatpush3.bf16.msra.mxu1 %v4736_v8  ;;  %v4741_v13 = vld [vmem:[%s6655_s12 + $0x34] ss:$12 sps:$4 sm:$0xff]   ;;  %v4743_v14 = vld [vmem:[%s6655_s12 + $0x30] ss:$12 sps:$4 sm:$0xff]   ;;  %v4744_v15 = vld [vmem:[%s6655_s12 + $0x38] ss:$12 sps:$4 sm:$0xff]  }
 0x2f8   : > { %4357 = vmatprep.subr.bf16.mxu1 %v5683_v9  ;;  %1590 = vmatprep.subr.bf16.mxu0 %v4737_v10  ;;  %v4745_v16 = vld [vmem:[%s6655_s12 + $0x4c] ss:$12 sps:$4 sm:$0xff]   ;;  %v4747_v17 = vld [vmem:[%s6655_s12 + $0x48] ss:$12 sps:$4 sm:$0xff]   ;;  %v4748_v18 = vld [vmem:[%s6655_s12 + $0x50] ss:$12 sps:$4 sm:$0xff]  }
 0x2f9   : > { %v4749_v19 = vld [vmem:[%s6655_s12 + $0x64] ss:$12 sps:$4 sm:$0xff]   ;;  %v4751_v20 = vld [vmem:[%s6655_s12 + $0x60] ss:$12 sps:$4 sm:$0xff]   ;;  %v4752_v21 = vld [vmem:[%s6655_s12 + $0x68] ss:$12 sps:$4 sm:$0xff]   ;;  %1620 = vmatprep.mubr.bf16.mxu0 %v5684_v23  ;;  %4371 = vmatprep.mubr.msk.bf16.mxu1 %vm5685_vm0, %v5683_v9 }
 0x2fa   : > { %v4753_v22 = vld [vmem:[%s6655_s12 + $0x7c] ss:$12 sps:$4 sm:$0xff]   ;;  %v4755_v24 = vld [vmem:[%s6655_s12 + $0x78] ss:$12 sps:$4 sm:$0xff]   ;;  %v4756_v25 = vld [vmem:[%s6655_s12 + $0x80] ss:$12 sps:$4 sm:$0xff]  }
 0x2fb   : > { %1591 = vmatpush1.bf16.msra.mxu0 %v4739_v11  ;;  %4358 = vmatpush3.bf16.msra.mxu1 %v4740_v12  ;;  %v4757_v26 = vld [vmem:[%s6655_s12 + $0x94] ss:$12 sps:$4 sm:$0xff]   ;;  %v4759_v27 = vld [vmem:[%s6655_s12 + $0x90] ss:$12 sps:$4 sm:$0xff]   ;;  %v4760_v28 = vld [vmem:[%s6655_s12 + $0x98] ss:$12 sps:$4 sm:$0xff]  }
 0x2fc   : > { %4359 = vmatprep.subr.bf16.mxu1 %v5683_v9  ;;  %1592 = vmatprep.subr.bf16.mxu0 %v4741_v13  ;;  %v4761_v29 = vld [vmem:[%s6655_s12 + $0xac] ss:$12 sps:$4 sm:$0xff]   ;;  %v4763_v30 = vld [vmem:[%s6655_s12 + $0xa8] ss:$12 sps:$4 sm:$0xff]   ;;  %v4764_v31 = vld [vmem:[%s6655_s12 + $0xb0] ss:$12 sps:$4 sm:$0xff]  }
 0x2fd   : > { %v6775_v39 = vshrl.u32 %v1373_v35, 7  ;;  %v6786_v45 = vld [vmem:[%s6652_s5] sm:$0x7]  ;;  %v1443_v53 = vld [vmem:[%s6663_s28] sm:$0x7]  ;;  %vm1958_vm3 = vcmask 1043456  }
 0x2fe   : > { %vm1711_vm4 = vcmask 261120   ;;  %s5686_s17 = smov 64   ;;  %s5687_s10 = smov 96   ;;  %vm1906_vm6 = vcmask 64512   ;;  %vm2153_vm7 = vcmask 523264   ;;  %vm2155_vm8 = vcmask 785408  }
 0x2ff   : > { %1593 = vmatpush1.bf16.msra.mxu0 %v4743_v14  ;;  %4360 = vmatpush3.bf16.msra.mxu1 %v4744_v15  ;;  %v6778_v42 = vsub.s32 0, %v6775_v39  ;;  %v6796_v52 = vsub.s32 2, %v6775_v39  ;;  %v6800_v54 = vsub.s32 1, %v6775_v39  ;;  %s5688_s16 = smov 32   ;;  %s7360_s28 = scalar_lea.vmem [#allocation5], %s6622_s26  ;;  %vm2828_vm13 = vcmask 130048  }
 0x300   : > { %4361 = vmatprep.subr.bf16.mxu1 %v5683_v9  ;;  %1594 = vmatprep.subr.bf16.mxu0 %v4745_v16  ;;  %s7362_s26 = scalar_lea.vmem [#allocation7], %s6619_s27 }
 0x301   : > { %v1402_v44 = vrot.slane %v6781_v43, %v6778_v42  ;;  %v1408_v47 = vrot.slane %v6786_v45, %v6778_v42  ;;  %v1456_v55 = vrot.slane %v1443_v53, %v6796_v52  ;;  %v1452_v56 = vrot.slane %v1443_v53, %v6800_v54 }
 0x302   : > { %v1448_v62 = vrot.slane %v1443_v53, %v6778_v42 }
 0x303   : > { %1595 = vmatpush1.bf16.msra.mxu0 %v4747_v17  ;;  %4362 = vmatpush3.bf16.msra.mxu1 %v4748_v18 }
 0x304   : > { %1596 = vmatprep.subr.bf16.mxu0 %v4749_v19  ;;  %4363 = vmatprep.subr.bf16.mxu1 %v5683_v9 }
 0x307   : > { %1597 = vmatpush1.bf16.msra.mxu0 %v4751_v20  ;;  %4364 = vmatpush3.bf16.msra.mxu1 %v4752_v21 }
 0x308   : > { %1598 = vmatprep.subr.bf16.mxu0 %v4753_v22  ;;  %4365 = vmatprep.subr.bf16.mxu1 %v5683_v9 }
 0x30b   : > { %1599 = vmatpush1.bf16.msra.mxu0 %v4755_v24  ;;  %4366 = vmatpush3.bf16.msra.mxu1 %v4756_v25 }
 0x30c   : > { %1600 = vmatprep.subr.bf16.mxu0 %v4757_v26  ;;  %4367 = vmatprep.subr.bf16.mxu1 %v5683_v9 }
 0x30f   : > { %1601 = vmatpush1.bf16.msra.mxu0 %v4759_v27  ;;  %4368 = vmatpush3.bf16.msra.mxu1 %v4760_v28  ;;  %v1376_v28 = vand.u32 127, %v1373_v35 }
 0x310   : > { %1602 = vmatprep.subr.bf16.mxu0 %v4761_v29  ;;  %4369 = vmatprep.subr.bf16.mxu1 %v5683_v9 }
 0x311   : > { %vm1377_vm5 = vcmp.ge.s32.totalorder %v6775_v39, %v1376_v28 }
 0x313   : > { %1603 = vmatpush1.bf16.msra.mxu0 %v4763_v30  ;;  %4370 = vmatpush3.bf16.msra.mxu1 %v4764_v31 }
 0x314   : > { %4399 = vmatprep.subr.bf16.mxu0 %v5683_v9  ;;  %4375 = vmatprep.subr.bf16.mxu1 %v5683_v9 }
 0x383   : > { %v1381_v2 = vpop.xlane.xlu0 %1380 }
 0x384   : > { %v1383_v3 = vmul.f32 0.0078125, %v1381_v2 }
 0x386   : > { %v6733_v4 = vsub.f32 %v6729_v1, %v1383_v3 }
 0x388   : > { %v1385_v5 = vmul.f32 %v6733_v4, %v6733_v4  ;;  %v1403_v46 = vmul.f32 %v1402_v44, %v6733_v4 }
 0x38a   : > { %1386 = vadd.xlane.f32.xlu0 %v1385_v5 }
 0x417   : > { %v1387_v32 = vpop.xlane.xlu0 %1386 }
 0x418   : > { %v1388_v33 = vmul.f32 0.007874016, %v1387_v32 }
 0x41a   : > { %4854 = vrsqrt.f32 %v1388_v33  ;;  %vm1391_vm1 = vcmp.eq.f32.partialorder %v1388_v33, inf  ;;  %v1394_v37 = vand.u32 2147483648, %v1388_v33  ;;  %vm1393_vm2 = vcmp.eq.f32.partialorder %v1388_v33, 0.0 }
 0x424   : > { %v4855_v34 = vpop.eup %4854 }
 0x425   : > { %v1390_v36 = vmul.f32 %v4855_v34, %v1388_v33 }
 0x427   : > { %v1392_v38 = vsel %vm1391_vm1, %v1388_v33, %v1390_v36 }
 0x428   : > { %v1395_v40 = vsel %vm1393_vm2, %v1394_v37, %v1392_v38 }
 0x429   : > { %v1396_v41 = vadd.f32 1e-06, %v1395_v40 }
 0x42b   : > { %4856 = vrcp.f32 %v1396_v41 }
 0x435   : > { %v4857_v48 = vpop.eup %4856 }
 0x436   : > { %v1404_v49 = vmul.f32 %v4857_v48, %v1403_v46 }
 0x438   : > { %v1409_v50 = vadd.f32 %v1408_v47, %v1404_v49 }
 0x43a   : > { %v1410_v51 = vpack.c.bf16 %v1409_v50, %v1409_v50 }
 0x43c   : > { %1621 = vmatmul.mubr.bf16.vlgmr.msra.gmra.mrb[0].mxu0 %v1410_v51  ;;  %4372 = vmatmul.mubr.bf16.vlgmr.msra.gmra.mrb[0].mxu1 %v1410_v51 }
 0x43d   : > { %4377 = vmatprep.mubr.msk.bf16.mxu1 %vm5685_vm0, %v5683_v9  ;;  %4401 = vmatprep.mubr.msk.bf16.mxu0 %vm5685_vm0, %v5683_v9 }
 0x50f   : > { %v1622_v57 = vpop.f32.mrb[0].mxu0  ;;  %v1663_v58 = vpop.f32.mrb[0].mxu1 }
 0x510   : > { %v6804_v59 = vadd.f32 %v1663_v58, %v1456_v55  ;;  %v1624_v60 = vpop.f32.mrb[1].mxu0  ;;  %v4373_v61 = vpop.f32.mrb[1].mxu1  ;;  %v1623_v8 = vadd.f32 %v1622_v57, %v1448_v62 }
 0x511   : > { %v1625_v63 = vadd.f32 %v1624_v60, %v1452_v56  ;;  %v1626_v0 = vpop.f32.mrb[2].mxu0  ;;  %v1666_v2 = vpop.f32.mrb[2].mxu1 }
 0x512   : > { %v1627_v3 = vpop.f32.mrb[3].mxu0  ;;  %v4374_v4 = vpop.f32.mrb[3].mxu1  ;;  %v1707_v5 = vpack.c.bf16 %v6804_v59, %v6804_v59  ;;  %v1679_v11 = vpack.c.bf16 %v1623_v8, %v1623_v8 }
 0x513   : > { %1687 = vrot.lane.b32.xlu0 %v1625_v63, %s5686_s17  ;;  %1684 = vrot.lane.b32.xlu1 %v1625_v63, %s5687_s10  ;;  %v1693_v6 = vpack.c.bf16 %v1625_v63, %v1625_v63 }
 0x514   : > { %v1960_v7 = vsel %vm1958_vm3, %v1707_v5, 0 }
 0x515   : > { %4400 = vmatpush3.bf16.msra.mxu0 %v1960_v7  ;;  %v1716_v10 = vsel %vm1711_vm4, %v1693_v6, 0 }
 0x516   : > { %4376 = vmatpush3.bf16.xpose.msra.mxu1 %v1716_v10  ;;  %4411 = vmatprep.subr.bf16.mxu0 %v5683_v9 }
 0x517   : > { %1670 = vrot.lane.b32.xlu1 %v1623_v8, %s5687_s10  ;;  %4381 = vmatprep.subr.bf16.mxu1 %v5683_v9 }
 0x51b   : > { %1673 = vrot.lane.b32.xlu1 %v1623_v8, %s5686_s17 }
 0x51d   : > { %4378 = vmatmul.mubr.msk.bf16.vlgmr.msra.gmra.mrb[4].mxu1 %vm1711_vm4, %v1679_v11 }
 0x51e   : > { %4383 = vmatprep.mubr.msk.bf16.mxu1 %vm5685_vm0, %v5683_v9 }
 0x51f   : > { %1690 = vrot.lane.b32.xlu1 %v1625_v63, %s5688_s16 }
 0x523   : > { %1676 = vrot.lane.b32.xlu1 %v1623_v8, %s5688_s16 }
 0x585   : > { %v1685_v12 = vpop.permute.xlu1 %1684  ;;  %v1688_v15 = vpop.permute.xlu0 %1687 }
 0x586   : > { %v1694_v13 = vpack.c.bf16 %v1685_v12, %v1685_v12  ;;  %v1695_v17 = vpack.c.bf16 %v1688_v15, %v1688_v15 }
 0x588   : > { %v1762_v14 = vsel %vm1711_vm4, %v1694_v13, 0  ;;  %v1808_v20 = vsel %vm1711_vm4, %v1695_v17, 0 }
 0x589   : > { %v1671_v16 = vpop.permute.xlu1 %1670  ;;  %4382 = vmatpush3.bf16.xpose.msra.mxu1 %v1762_v14 }
 0x58a   : > { %4387 = vmatprep.subr.bf16.mxu1 %v5683_v9  ;;  %v1680_v19 = vpack.c.bf16 %v1671_v16, %v1671_v16 }
 0x58d   : > { %v1674_v18 = vpop.permute.xlu1 %1673 }
 0x58e   : > { %v1681_v24 = vpack.c.bf16 %v1674_v18, %v1674_v18 }
 0x590   : > { %4384 = vmatmul.mubr.msk.bf16.vlgmr.msra.gmra.mrb[8].mxu1 %vm1711_vm4, %v1680_v19 }
 0x591   : > { %v1691_v21 = vpop.permute.xlu1 %1690  ;;  %4388 = vmatpush3.bf16.xpose.msra.mxu1 %v1808_v20  ;;  %4389 = vmatprep.mubr.msk.bf16.mxu1 %vm5685_vm0, %v5683_v9 }
 0x592   : > { %4393 = vmatprep.subr.bf16.mxu1 %v5683_v9  ;;  %v1696_v22 = vpack.c.bf16 %v1691_v21, %v1691_v21 }
 0x594   : > { %v1854_v25 = vsel %vm1711_vm4, %v1696_v22, 0 }
 0x595   : > { %v1677_v26 = vpop.permute.xlu1 %1676 }
 0x596   : > { %v1682_v27 = vpack.c.bf16 %v1677_v26, %v1677_v26 }
 0x598   : > { %4390 = vmatmul.mubr.msk.bf16.vlgmr.msra.gmra.mrb[12].mxu1 %vm1711_vm4, %v1681_v24 }
 0x599   : > { %4394 = vmatpush3.bf16.xpose.msra.mxu1 %v1854_v25  ;;  %4395 = vmatprep.mubr.msk.bf16.mxu1 %vm5685_vm0, %v5683_v9 }
 0x59a   : > { %4405 = vmatprep.subr.bf16.mxu1 %v5683_v9 }
 0x5a0   : > { %4396 = vmatmul.mubr.msk.bf16.vlgmr.msra.gmra.mrb[16].mxu1 %vm1711_vm4, %v1682_v27 }
 0x5a1   : > { %4407 = vmatprep.mubr.msk.bf16.mxu1 %vm5685_vm0, %v5683_v9 }
 0x5f0   : > { %v1752_v29 = vpop.f32.mrb[4].mxu1 }
 0x5f1   : > { %v1896_v30 = vmul.f32 0.17677669, %v1752_v29  ;;  %v4379_v31 = vpop.f32.mrb[5].mxu1 }
 0x5f2   : > { %v1755_v32 = vpop.f32.mrb[6].mxu1 }
 0x5f3   : > { %v4380_v33 = vpop.f32.mrb[7].mxu1  ;;  %v1902_v34 = vsel %vm1377_vm5, %v1896_v30, -1e+09 }
 0x5f4   : > { %v1907_v36 = vsel %vm1906_vm6, %v1902_v34, -inf }
 0x5f5   : > { %1908 = vmax.xlane.f32.xlu1 %v1907_v36 }
 0x663   : > { %v1798_v37 = vpop.f32.mrb[8].mxu1 }
 0x664   : > { %v1897_v38 = vmul.f32 0.17677669, %v1798_v37  ;;  %v4385_v40 = vpop.f32.mrb[9].mxu1 }
 0x665   : > { %v1801_v41 = vpop.f32.mrb[10].mxu1 }
 0x666   : > { %v4386_v44 = vpop.f32.mrb[11].mxu1  ;;  %v1903_v35 = vsel %vm1377_vm5, %v1897_v38, -1e+09 }
 0x667   : > { %v1910_v46 = vsel %vm1906_vm6, %v1903_v35, -inf }
 0x668   : > { %1911 = vmax.xlane.f32.xlu0 %v1910_v46 }
 0x66b   : > { %v1844_v47 = vpop.f32.mrb[12].mxu1 }
 0x66c   : > { %v1898_v48 = vmul.f32 0.17677669, %v1844_v47  ;;  %v4391_v49 = vpop.f32.mrb[13].mxu1 }
 0x66d   : > { %v1847_v50 = vpop.f32.mrb[14].mxu1 }
 0x66e   : > { %v4392_v51 = vpop.f32.mrb[15].mxu1  ;;  %v1904_v53 = vsel %vm1377_vm5, %v1898_v48, -1e+09 }
 0x66f   : > { %v1913_v55 = vsel %vm1906_vm6, %v1904_v53, -inf }
 0x670   : > { %1914 = vmax.xlane.f32.xlu1 %v1913_v55 }
 0x673   : > { %v1890_v56 = vpop.f32.mrb[16].mxu1 }
 0x674   : > { %v1899_v57 = vmul.f32 0.17677669, %v1890_v56  ;;  %v4397_v58 = vpop.f32.mrb[17].mxu1  ;;  %v4765_v56 = vld [vmem:[%s6666_s14] sm:$0xff]  }
 0x675   : > { %v1893_v60 = vpop.f32.mrb[18].mxu1  ;;  %v4767_v58 = vld [vmem:[%s6666_s14 + $0x10] sm:$0xff]  }
 0x676   : > { %v4398_v61 = vpop.f32.mrb[19].mxu1  ;;  %v1905_v62 = vsel %vm1377_vm5, %v1899_v57, -1e+09  ;;  %v4766_v57 = vld [vmem:[%s6666_s14 + $0x8] sm:$0xff]  }
 0x677   : > { %v1916_v63 = vsel %vm1906_vm6, %v1905_v62, -inf }
 0x678   : > { %1917 = vmax.xlane.f32.xlu1 %v1916_v63 }
 0x682   : > { %v1909_v0 = vpop.xlane.xlu1 %1908 }
 0x683   : > { %v1919_v2 = vsub.f32 %v1902_v34, %v1909_v0  ;;  %v4768_v0 = vld [vmem:[%s6666_s14 + $0x18] sm:$0xff]  }
 0x685   : > { %v1923_v3 = vmul.f32 1.442695, %v1919_v2 }
 0x687   : > { %4858 = vpow2.f32 %v1923_v3 }
 0x691   : > { %v4859_v4 = vpop.eup %4858 }
 0x692   : > { %v1931_v5 = vsel %vm1906_vm6, %v4859_v4, 0.0 }
 0x693   : > { %1932 = vadd.xlane.f32.xlu0 %v1931_v5  ;;  %v4769_v5 = vld [vmem:[%s6666_s14 + $0x20] sm:$0xff]  }
 0x6f5   : > { %v1912_v6 = vpop.xlane.xlu0 %1911 }
 0x6f6   : > { %v1920_v7 = vsub.f32 %v1903_v35, %v1912_v6 }
 0x6f8   : > { %v1925_v8 = vmul.f32 1.442695, %v1920_v7  ;;  %v4770_v7 = vld [vmem:[%s6666_s14 + $0x28] sm:$0xff]  }
 0x6fa   : > { %4860 = vpow2.f32 %v1925_v8  ;;  %v4771_v8 = vld [vmem:[%s6666_s14 + $0x30] sm:$0xff]  }
 0x6fd   : > { %v1915_v10 = vpop.xlane.xlu1 %1914 }
 0x6fe   : > { %v1921_v11 = vsub.f32 %v1904_v53, %v1915_v10  ;;  %v4772_v10 = vld [vmem:[%s6666_s14 + $0x38] sm:$0xff]   ;;  %s7359_s14 = scalar_lea.vmem [#allocation16], %s6640_s1 }
 0x700   : > { %v1927_v12 = vmul.f32 1.442695, %v1921_v11 }
 0x702   : > { %4862 = vpow2.f32 %v1927_v12 }
 0x704   : > { %v4861_v39 = vpop.eup %4860 }
 0x705   : > { %v1934_v13 = vsel %vm1906_vm6, %v4861_v39, 0.0  ;;  %v1918_v17 = vpop.xlane.xlu1 %1917 }
 0x706   : > { %1935 = vadd.xlane.f32.xlu1 %v1934_v13  ;;  %v1922_v18 = vsub.f32 %v1905_v62, %v1918_v17 }
 0x708   : > { %v1929_v19 = vmul.f32 1.442695, %v1922_v18 }
 0x70c   : > { %v4863_v14 = vpop.eup %4862 }
 0x70d   : > { %v1937_v15 = vsel %vm1906_vm6, %v4863_v14, 0.0 }
 0x70e   : > { %1938 = vadd.xlane.f32.xlu0 %v1937_v15 }
 0x717   : > { %1701 = vrot.lane.b32.xlu1 %v6804_v59, %s5686_s17 }
 0x720   : > { %v1933_v16 = vpop.xlane.xlu0 %1932 }
 0x721   : > { %4864 = vrcp.f32 %v1933_v16 }
 0x722   : > { %4866 = vpow2.f32 %v1929_v19 }
 0x724   : > { %1698 = vrot.lane.b32.xlu0 %v6804_v59, %s5687_s10 }
 0x72b   : > { %v4865_v20 = vpop.eup %4864 }
 0x72c   : > { %v1947_v21 = vmul.f32 %v4865_v20, %v4859_v4  ;;  %v4867_v24 = vpop.eup %4866 }
 0x72d   : > { %v1940_v25 = vsel %vm1906_vm6, %v4867_v24, 0.0 }
 0x72e   : > { %v1951_v22 = vpack.c.bf16 %v1947_v21, %v1947_v21  ;;  %v4163_v21 = vld [vmem:[%s7359_s14] ss:$0 sm:$0xff] }
 0x730   : > { %4402 = vmatmul.mubr.msk.bf16.vlgmr.msra.gmra.mrb[4].mxu0 %vm1906_vm6, %v1951_v22 }
 0x731   : > { %4413 = vmatprep.mubr.msk.bf16.mxu0 %vm5685_vm0, %v5683_v9 }
 0x73b   : > { %1941 = vadd.xlane.f32.xlu1 %v1940_v25 }
 0x74c   : > { %1704 = vrot.lane.b32.xlu1 %v6804_v59, %s5688_s16 }
 0x793   : > { %v1936_v26 = vpop.xlane.xlu1 %1935 }
 0x794   : > { %4868 = vrcp.f32 %v1936_v26 }
 0x797   : > { %v1702_v27 = vpop.permute.xlu1 %1701 }
 0x798   : > { %v1709_v28 = vpack.c.bf16 %v1702_v27, %v1702_v27 }
 0x79a   : > { %v2052_v29 = vsel %vm1958_vm3, %v1709_v28, 0 }
 0x79b   : > { %v1939_v30 = vpop.xlane.xlu0 %1938  ;;  %4412 = vmatpush3.bf16.msra.mxu0 %v2052_v29  ;;  %v4773_v29 = vld [vmem:[%s6683_s29] ss:$8 sps:$4 sm:$0xff]  }
 0x79c   : > { %4870 = vrcp.f32 %v1939_v30  ;;  %4423 = vmatprep.subr.bf16.mxu0 %v5683_v9  ;;  %v4775_v30 = vld [vmem:[%s6683_s29 + $0x4] ss:$8 sps:$4 sm:$0xff]  }
 0x79e   : > { %v4869_v31 = vpop.eup %4868 }
 0x79f   : > { %v1699_v32 = vpop.permute.xlu0 %1698  ;;  %v1948_v33 = vmul.f32 %v4869_v31, %v4861_v39  ;;  %v4778_v31 = vld [vmem:[%s6683_s29 + $0x14] ss:$8 sps:$4 sm:$0xff]  }
 0x7a0   : > { %v1708_v34 = vpack.c.bf16 %v1699_v32, %v1699_v32  ;;  %v4776_v32 = vld [vmem:[%s6683_s29 + $0x10] ss:$8 sps:$4 sm:$0xff]  }
 0x7a1   : > { %v1952_v37 = vpack.c.bf16 %v1948_v33, %v1948_v33  ;;  %v4781_v33 = vld [vmem:[%s6683_s29 + $0x24] ss:$8 sps:$4 sm:$0xff]  }
 0x7a2   : > { %v2006_v36 = vsel %vm1958_vm3, %v1708_v34, 0  ;;  %v4779_v34 = vld [vmem:[%s6683_s29 + $0x20] ss:$8 sps:$4 sm:$0xff]  }
 0x7a3   : > { %4406 = vmatpush3.bf16.msra.mxu1 %v2006_v36  ;;  %v4782_v36 = vld [vmem:[%s6683_s29 + $0x30] ss:$8 sps:$4 sm:$0xff]  }
 0x7a4   : > { %4417 = vmatprep.subr.bf16.mxu1 %v5683_v9 }
 0x7a6   : > { %v4871_v59 = vpop.eup %4870  ;;  %4408 = vmatmul.mubr.msk.bf16.vlgmr.msra.gmra.mrb[20].mxu1 %vm1906_vm6, %v1952_v37 }
 0x7a7   : > { %v1949_v38 = vmul.f32 %v4871_v59, %v4863_v14  ;;  %4419 = vmatprep.mubr.msk.bf16.mxu1 %vm5685_vm0, %v5683_v9 }
 0x7a9   : > { %v1953_v40 = vpack.c.bf16 %v1949_v38, %v1949_v38 }
 0x7ab   : > { %4414 = vmatmul.mubr.msk.bf16.vlgmr.msra.gmra.mrb[8].mxu0 %vm1906_vm6, %v1953_v40 }
 0x7ac   : > { %4439 = vmatprep.mubr.msk.bf16.mxu0 %vm5685_vm0, %v5683_v9  ;;  %4424 = vmatpush3.bf16.msra.mxu0 %v4765_v56  ;;  %v4800_v56 = vld [vmem:[%s6674_s2 + $0x18] sm:$0xff]  }
 0x7ad   : > { %4425 = vmatprep.subr.bf16.mxu0 %v5683_v9 }
 0x7b0   : > { %4426 = vmatpush3.bf16.msra.mxu0 %v4766_v57  ;;  %v4801_v57 = vld [vmem:[%s7360_s28] sm:$0xff]  }
 0x7b1   : > { %4427 = vmatprep.subr.bf16.mxu0 %v5683_v9 }
 0x7b4   : > { %4428 = vmatpush3.bf16.msra.mxu0 %v4767_v58  ;;  %v4802_v58 = vld [vmem:[%s6674_s2 + $0x20] sm:$0xff]  }
 0x7b5   : > { %4429 = vmatprep.subr.bf16.mxu0 %v5683_v9 }
 0x7b8   : > { %4430 = vmatpush3.bf16.msra.mxu0 %v4768_v0 }
 0x7b9   : > { %4431 = vmatprep.subr.bf16.mxu0 %v5683_v9 }
 0x7bc   : > { %4432 = vmatpush3.bf16.msra.mxu0 %v4769_v5 }
 0x7bd   : > { %4433 = vmatprep.subr.bf16.mxu0 %v5683_v9 }
 0x7c0   : > { %4434 = vmatpush3.bf16.msra.mxu0 %v4770_v7 }
 0x7c1   : > { %4435 = vmatprep.subr.bf16.mxu0 %v5683_v9 }
 0x7c4   : > { %4436 = vmatpush3.bf16.msra.mxu0 %v4771_v8  ;;  %v2291_v8 = vrot.slane %v6781_v43, %v6800_v54 }
 0x7c5   : > { %4437 = vmatprep.subr.bf16.mxu0 %v5683_v9 }
 0x7c8   : > { %v1942_v41 = vpop.xlane.xlu1 %1941  ;;  %4438 = vmatpush3.bf16.msra.mxu0 %v4772_v10 }
 0x7c9   : > { %4872 = vrcp.f32 %v1942_v41  ;;  %2525 = vmatprep.subr.bf16.mxu0 %v4775_v30  ;;  %v4787_v41 = vld [vmem:[%s6683_s29 + $0x44] ss:$8 sps:$4 sm:$0xff]  }
 0x7cc   : > { %v1705_v44 = vpop.permute.xlu1 %1704 }
 0x7cd   : > { %v1710_v35 = vpack.c.bf16 %v1705_v44, %v1705_v44  ;;  %v4785_v44 = vld [vmem:[%s6683_s29 + $0x40] ss:$8 sps:$4 sm:$0xff]  }
 0x7cf   : > { %v2098_v46 = vsel %vm1958_vm3, %v1710_v35, 0  ;;  %v4788_v35 = vld [vmem:[%s6674_s2] sm:$0xff]  }
 0x7d0   : > { %4418 = vmatpush3.bf16.msra.mxu1 %v2098_v46  ;;  %v4791_v46 = vld [vmem:[%s6683_s29 + $0x54] ss:$8 sps:$4 sm:$0xff]  }
 0x7d1   : > { %4443 = vmatprep.subr.bf16.mxu1 %v5683_v9 }
 0x7d3   : > { %v4873_v47 = vpop.eup %4872 }
 0x7d4   : > { %v1950_v48 = vmul.f32 %v4873_v47, %v4867_v24  ;;  %v4789_v47 = vld [vmem:[%s6683_s29 + $0x50] ss:$8 sps:$4 sm:$0xff]  }
 0x7d6   : > { %v1954_v49 = vpack.c.bf16 %v1950_v48, %v1950_v48  ;;  %v4792_v48 = vld [vmem:[%s6674_s2 + $0x8] sm:$0xff]  }
 0x7d8   : > { %4420 = vmatmul.mubr.msk.bf16.vlgmr.msra.gmra.mrb[24].mxu1 %vm1906_vm6, %v1954_v49  ;;  %v4795_v49 = vld [vmem:[%s6683_s29 + $0x64] ss:$8 sps:$4 sm:$0xff]  }
 0x7d9   : > { %4459 = vmatprep.mubr.msk.bf16.mxu1 %vm5685_vm0, %v5683_v9  ;;  %4444 = vmatpush3.bf16.msra.mxu1 %v4788_v35 }
 0x7da   : > { %4445 = vmatprep.subr.bf16.mxu1 %v5683_v9 }
 0x7dd   : > { %4446 = vmatpush3.bf16.msra.mxu1 %v4792_v48 }
 0x7de   : > { %4447 = vmatprep.subr.bf16.mxu1 %v5683_v9 }
 0x803   : > { %v1996_v50 = vpop.f32.mrb[4].mxu0 }
 0x804   : > { %v4403_v51 = vpop.f32.mrb[5].mxu0 }
 0x805   : > { %v1999_v53 = vpop.f32.mrb[6].mxu0  ;;  %v4796_v51 = vld [vmem:[%s6674_s2 + $0x10] sm:$0xff]  }
 0x806   : > { %v4404_v55 = vpop.f32.mrb[7].mxu0  ;;  %4448 = vmatpush3.bf16.msra.mxu1 %v4796_v51  ;;  %v4799_v53 = vld [vmem:[%s6683_s29 + $0x74] ss:$8 sps:$4 sm:$0xff]  }
 0x807   : > { %v4797_v55 = vld [vmem:[%s6683_s29 + $0x70] ss:$8 sps:$4 sm:$0xff]   ;;  %4449 = vmatprep.subr.bf16.mxu1 %v5683_v9 }
 0x80a   : > { %4450 = vmatpush3.bf16.msra.mxu1 %v4800_v56 }
 0x80b   : > { %4451 = vmatprep.subr.bf16.mxu1 %v5683_v9 }
 0x80e   : > { %4452 = vmatpush3.bf16.msra.mxu1 %v4802_v58 }
 0x80f   : > { %4453 = vmatprep.subr.bf16.mxu1 %v5683_v9 }
 0x879   : > { %v2042_v60 = vpop.f32.mrb[20].mxu1 }
 0x87a   : > { %2141 = vrot.lane.b32.xlu0 %v2042_v60, %s5688_s16  ;;  %v4409_v61 = vpop.f32.mrb[21].mxu1  ;;  %v4803_v60 = vld [vmem:[%s6674_s2 + $0x28] sm:$0xff]  }
 0x87b   : > { %v2045_v62 = vpop.f32.mrb[22].mxu1  ;;  %4454 = vmatpush3.bf16.msra.mxu1 %v4803_v60  ;;  %v4804_v61 = vld [vmem:[%s6674_s2 + $0x30] sm:$0xff]  }
 0x87c   : > { %v4410_v63 = vpop.f32.mrb[23].mxu1  ;;  %4455 = vmatprep.subr.bf16.mxu1 %v5683_v9  ;;  %v4805_v62 = vld [vmem:[%s6674_s2 + $0x38] sm:$0xff]  }
 0x87e   : > { %v2088_v2 = vpop.f32.mrb[8].mxu0 }
 0x87f   : > { %2145 = vrot.lane.b32.xlu1 %v2088_v2, %s5686_s17  ;;  %v4415_v3 = vpop.f32.mrb[9].mxu0  ;;  %4456 = vmatpush3.bf16.msra.mxu1 %v4804_v61 }
 0x880   : > { %v2091_v4 = vpop.f32.mrb[10].mxu0  ;;  %4457 = vmatprep.subr.bf16.mxu1 %v5683_v9 }
 0x881   : > { %v4416_v6 = vpop.f32.mrb[11].mxu0 }
 0x883   : > { %4458 = vmatpush3.bf16.msra.mxu1 %v4805_v62 }
 0x884   : > { %4463 = vmatprep.subr.bf16.mxu1 %v5683_v9 }
 0x8ab   : > { %v2134_v11 = vpop.f32.mrb[24].mxu1 }
 0x8ac   : > { %2149 = vrot.lane.b32.xlu0 %v2134_v11, %s5687_s10  ;;  %v4421_v12 = vpop.f32.mrb[25].mxu1  ;;  %v2297_v11 = vrot.slane %v6786_v45, %v6800_v54 }
 0x8ad   : > { %v2137_v39 = vpop.f32.mrb[26].mxu1 }
 0x8ae   : > { %v4422_v13 = vpop.f32.mrb[27].mxu1 }
 0x8ec   : > { %v2142_v14 = vpop.permute.xlu0 %2141 }
 0x8ed   : > { %v2152_v16 = vsel %vm1711_vm4, %v1996_v50, %v2142_v14  ;;  %v4793_v50 = vld [vmem:[%s6683_s29 + $0x60] ss:$8 sps:$4 sm:$0xff]  }
 0x8f1   : > { %v2146_v15 = vpop.permute.xlu1 %2145 }
 0x8f2   : > { %v2154_v17 = vsel %vm2153_vm7, %v2152_v16, %v2146_v15  ;;  %v2427_v15 = vld [vmem:[%s6690_s11] sm:$0x3]  ;;  %s7361_s11 = scalar_lea.vmem [#allocation19], %s6640_s1 }
 0x8f3   : > { %v2432_v16 = vrot.slane %v2427_v15, %v6778_v42 }
 0x91e   : > { %v2150_v18 = vpop.permute.xlu0 %2149 }
 0x91f   : > { %v2156_v19 = vsel %vm2155_vm8, %v2154_v17, %v2150_v18  ;;  %v2436_v17 = vrot.slane %v2427_v15, %v6800_v54 }
 0x920   : > { %v2157_v20 = vpack.c.bf16 %v2156_v19, %v2156_v19 }
 0x922   : > { %4440 = vmatmul.mubr.bf16.vlgmr.msra.gmra.mrb[12].mxu0 %v2157_v20 }
 0x923   : > { %2557 = vmatprep.mubr.bf16.mxu0 %v5684_v23  ;;  %2526 = vmatpush1.bf16.msra.mxu0 %v4773_v29 }
 0x924   : > { %2527 = vmatprep.subr.bf16.mxu0 %v4778_v31 }
 0x927   : > { %2528 = vmatpush1.bf16.msra.mxu0 %v4776_v32 }
 0x928   : > { %2529 = vmatprep.subr.bf16.mxu0 %v4781_v33 }
 0x92b   : > { %2530 = vmatpush1.bf16.msra.mxu0 %v4779_v34  ;;  %v4172_v34 = vld [vmem:[%s7361_s11] ss:$0 sm:$0xff] }
 0x9f5   : > { %v2263_v22 = vpop.f32.mrb[12].mxu0 }
 0x9f6   : > { %v2264_v24 = vadd.f32 %v4163_v21, %v2263_v22  ;;  %v4441_v25 = vpop.f32.mrb[13].mxu0 }
 0x9f7   : > { %v2266_v26 = vpop.f32.mrb[14].mxu0 }
 0x9f8   : > { %v6904_v27 = vadd.f32 %v2264_v24, %v6729_v1  ;;  %v4442_v28 = vpop.f32.mrb[15].mxu0  ;;  %v4784_v1 = vld [vmem:[%s6683_s29 + $0x34] ss:$8 sps:$4 sm:$0xff]  }
 0x9f9   : > { %2531 = vmatprep.subr.bf16.mxu0 %v4784_v1 }
 0x9fa   : > { %2270 = vadd.xlane.f32.xlu1 %v6904_v27  ;;  %2532 = vmatpush1.bf16.msra.mxu0 %v4782_v36 }
 0x9fb   : > { %2533 = vmatprep.subr.bf16.mxu0 %v4787_v41 }
 0x9fe   : > { %2534 = vmatpush1.bf16.msra.mxu0 %v4785_v44 }
 0x9ff   : > { %2535 = vmatprep.subr.bf16.mxu0 %v4791_v46 }
 0xa02   : > { %2536 = vmatpush1.bf16.msra.mxu0 %v4789_v47 }
 0xa03   : > { %2537 = vmatprep.subr.bf16.mxu0 %v4795_v49 }
 0xa06   : > { %2538 = vmatpush1.bf16.msra.mxu0 %v4793_v50 }
 0xa07   : > { %2539 = vmatprep.subr.bf16.mxu0 %v4799_v53 }
 0xa0a   : > { %2540 = vmatpush1.bf16.msra.mxu0 %v4797_v55 }
 0xa0b   : > { %4487 = vmatprep.subr.bf16.mxu0 %v5683_v9 }
 0xa0d   : > { %2558 = vmatmul.mubr.bf16.vlgmr.msra.gmra.mrb[16].mxu0 %v4801_v57 }
 0xa0e   : > { %4489 = vmatprep.mubr.msk.bf16.mxu0 %vm5685_vm0, %v5683_v9 }
 0xa87   : > { %v2271_v37 = vpop.xlane.xlu1 %2270 }
 0xa88   : > { %v2272_v59 = vmul.f32 0.0078125, %v2271_v37 }
 0xa8a   : > { %v2273_v38 = vsub.f32 %v6904_v27, %v2272_v59 }
 0xa8c   : > { %v2274_v40 = vmul.f32 %v2273_v38, %v2273_v38  ;;  %v2292_v10 = vmul.f32 %v2291_v8, %v2273_v38 }
 0xa8e   : > { %2275 = vadd.xlane.f32.xlu0 %v2274_v40 }
 0xae0   : > { %v2559_v18 = vpop.f32.mrb[16].mxu0 }
 0xae1   : > { %v2560_v19 = vadd.f32 %v2559_v18, %v2432_v16  ;;  %v2561_v43 = vpop.f32.mrb[17].mxu0 }
 0xae2   : > { %v2562_v20 = vadd.f32 %v2561_v43, %v2436_v17  ;;  %v2563_v21 = vpop.f32.mrb[18].mxu0 }
 0xae3   : > { %v2564_v22 = vadd.f32 %v2563_v21, %v2432_v16  ;;  %v2565_v45 = vpop.f32.mrb[19].mxu0 }
 0xae4   : > { %v2566_v24 = vadd.f32 %v2565_v45, %v2436_v17 }
 0xae5   : > { %v4703_v25 = vpack.i.bf16 %v2564_v22, %v2560_v19  ;;  %v2602_v26 = vpack.c.bf16 %v2564_v22, %v2560_v19 }
 0xae6   : > { %v2626_v28 = vpack.c.bf16 %v2566_v24, %v2562_v20  ;;  %v6954_v29 = vpack.i.bf16 %v2566_v24, %v2562_v20 }
 0xae7   : > { %4704 = vrot.lane.b32.xlu0 %v4703_v25, %s5687_s10  ;;  %v2634_v30 = vsel %vm1711_vm4, %v2602_v26, 0 }
 0xae8   : > { %4488 = vmatpush3.bf16.msra.mxu0 %v2626_v28 }
 0xae9   : > { %4499 = vmatprep.subr.bf16.mxu0 %v5683_v9 }
 0xb1b   : > { %v2276_v63 = vpop.xlane.xlu0 %2275 }
 0xb1c   : > { %v2277_v0 = vmul.f32 0.007874016, %v2276_v63 }
 0xb1e   : > { %4874 = vrsqrt.f32 %v2277_v0  ;;  %vm2280_vm9 = vcmp.eq.f32.partialorder %v2277_v0, inf  ;;  %v2283_v4 = vand.u32 2147483648, %v2277_v0  ;;  %vm2282_vm10 = vcmp.eq.f32.partialorder %v2277_v0, 0.0 }
 0xb28   : > { %v4875_v2 = vpop.eup %4874 }
 0xb29   : > { %v2279_v3 = vmul.f32 %v4875_v2, %v2277_v0 }
 0xb2b   : > { %v2281_v5 = vsel %vm2280_vm9, %v2277_v0, %v2279_v3  ;;  %v1378_v0 = vld [vmem:[%s7362_s26] sm:$0x1] }
 0xb2c   : > { %v2284_v6 = vsel %vm2282_vm10, %v2283_v4, %v2281_v5  ;;  %vm1379_vm11 = vcmp.gt.f32.partialorder %v1378_v0, 0.0 }
 0xb2d   : > { %v2285_v7 = vadd.f32 1e-06, %v2284_v6  ;;  %v2818_v2 = vsel %vm1379_vm11, 1, %v5684_v23 }
 0xb2e   : > { %v2822_v3 = vrot.slane %v2818_v2, %v6778_v42 }
 0xb2f   : > { %4876 = vrcp.f32 %v2285_v7 }
 0xb30   : > { %vm6989_vm12 = vcmp.eq.s32.totalorder %v2822_v3, 1 }
 0xb39   : > { %v4877_v12 = vpop.eup %4876 }
 0xb3a   : > { %v2293_v39 = vmul.f32 %v4877_v12, %v2292_v10 }
 0xb3c   : > { %v2298_v13 = vadd.f32 %v2297_v11, %v2293_v39 }
 0xb3e   : > { %v2299_v14 = vpack.c.bf16 %v2298_v13, %v2298_v13 }
 0xb40   : > { %4460 = vmatmul.mubr.bf16.vlgmr.msra.gmra.mrb[28].mxu1 %v2299_v14 }
 0xb41   : > { %4465 = vmatprep.mubr.msk.bf16.mxu1 %vm5685_vm0, %v5683_v9  ;;  %4464 = vmatpush3.bf16.xpose.msra.mxu1 %v2634_v30 }
 0xb42   : > { %4469 = vmatprep.subr.bf16.mxu1 %v5683_v9 }
 0xb59   : > { %v4705_v31 = vpop.permute.xlu0 %4704 }
 0xb5a   : > { %v4707_v32 = vunpack.i.h.bf16 %v4705_v31  ;;  %v4706_v33 = vunpack.i.l.bf16 %v4705_v31 }
 0xb5c   : > { %v2603_v1 = vpack.c.bf16 %v4707_v32, %v4706_v33 }
 0xb5e   : > { %v2680_v44 = vsel %vm1711_vm4, %v2603_v1, 0 }
 0xc13   : > { %v2405_v36 = vpop.f32.mrb[28].mxu1 }
 0xc14   : > { %v2406_v37 = vadd.f32 %v4172_v34, %v2405_v36  ;;  %v4461_v59 = vpop.f32.mrb[29].mxu1 }
 0xc15   : > { %v2408_v38 = vpop.f32.mrb[30].mxu1 }
 0xc16   : > { %v2578_v40 = vpack.c.bf16 %v2406_v37, %v2406_v37  ;;  %2572 = vrot.lane.b32.xlu0 %v2406_v37, %s5686_s17  ;;  %2569 = vrot.lane.b32.xlu1 %v2406_v37, %s5687_s10  ;;  %v4462_v41 = vpop.f32.mrb[31].mxu1 }
 0xc18   : > { %4466 = vmatmul.mubr.msk.bf16.vlgmr.msra.gmra.mrb[32].mxu1 %vm1711_vm4, %v2578_v40 }
 0xc19   : > { %4470 = vmatpush3.bf16.xpose.msra.mxu1 %v2680_v44  ;;  %4471 = vmatprep.mubr.msk.bf16.mxu1 %vm5685_vm0, %v5683_v9 }
 0xc1a   : > { %2575 = vrot.lane.b32.xlu0 %v2406_v37, %s5688_s16  ;;  %4709 = vrot.lane.b32.xlu1 %v4703_v25, %s5686_s17 }
 0xc1b   : > { %4475 = vmatprep.subr.bf16.mxu1 %v5683_v9 }
 0xc1e   : > { %4714 = vrot.lane.b32.xlu1 %v4703_v25, %s5688_s16 }
 0xc88   : > { %v2570_v35 = vpop.permute.xlu1 %2569  ;;  %v2573_v57 = vpop.permute.xlu0 %2572 }
 0xc89   : > { %v2579_v46 = vpack.c.bf16 %v2570_v35, %v2570_v35  ;;  %v2580_v60 = vpack.c.bf16 %v2573_v57, %v2573_v57 }
 0xc8b   : > { %4472 = vmatmul.mubr.msk.bf16.vlgmr.msra.gmra.mrb[36].mxu1 %vm1711_vm4, %v2579_v46 }
 0xc8c   : > { %v4710_v47 = vpop.permute.xlu1 %4709  ;;  %4477 = vmatprep.mubr.msk.bf16.mxu1 %vm5685_vm0, %v5683_v9  ;;  %v2576_v62 = vpop.permute.xlu0 %2575 }
 0xc8d   : > { %v4712_v48 = vunpack.i.h.bf16 %v4710_v47  ;;  %v4711_v49 = vunpack.i.l.bf16 %v4710_v47  ;;  %v2581_v63 = vpack.c.bf16 %v2576_v62, %v2576_v62 }
 0xc8f   : > { %v2604_v50 = vpack.c.bf16 %v4712_v48, %v4711_v49 }
 0xc90   : > { %v4715_v51 = vpop.permute.xlu1 %4714 }
 0xc91   : > { %v4717_v53 = vunpack.i.h.bf16 %v4715_v51  ;;  %v4716_v55 = vunpack.i.l.bf16 %v4715_v51  ;;  %v2726_v56 = vsel %vm1711_vm4, %v2604_v50, 0 }
 0xc92   : > { %4476 = vmatpush3.bf16.xpose.msra.mxu1 %v2726_v56 }
 0xc93   : > { %4481 = vmatprep.subr.bf16.mxu1 %v5683_v9  ;;  %v2605_v58 = vpack.c.bf16 %v4717_v53, %v4716_v55 }
 0xc95   : > { %v2772_v61 = vsel %vm1711_vm4, %v2605_v58, 0 }
 0xc99   : > { %4478 = vmatmul.mubr.msk.bf16.vlgmr.msra.gmra.mrb[40].mxu1 %vm1711_vm4, %v2580_v60 }
 0xc9a   : > { %4482 = vmatpush3.bf16.xpose.msra.mxu1 %v2772_v61  ;;  %4483 = vmatprep.mubr.msk.bf16.mxu1 %vm5685_vm0, %v5683_v9 }
 0xc9b   : > { %4493 = vmatprep.subr.bf16.mxu1 %v5683_v9 }
 0xca1   : > { %4484 = vmatmul.mubr.msk.bf16.vlgmr.msra.gmra.mrb[44].mxu1 %vm1711_vm4, %v2581_v63 }
 0xca2   : > { %4495 = vmatprep.mubr.msk.bf16.mxu1 %vm5685_vm0, %v5683_v9 }
 0xceb   : > { %v2670_v4 = vpop.f32.mrb[32].mxu1 }
 0xcec   : > { %v2814_v6 = vmul.f32 0.17677669, %v2670_v4  ;;  %v4467_v7 = vpop.f32.mrb[33].mxu1 }
 0xced   : > { %v2673_v8 = vpop.f32.mrb[34].mxu1 }
 0xcee   : > { %v4468_v10 = vpop.f32.mrb[35].mxu1  ;;  %v2824_v11 = vsel %vm6989_vm12, %v2814_v6, -1e+09 }
 0xcef   : > { %v2829_v12 = vsel %vm2828_vm13, %v2824_v11, -inf }
 0xcf0   : > { %2830 = vmax.xlane.f32.xlu1 %v2829_v12 }
 0xd5e   : > { %v2716_v39 = vpop.f32.mrb[36].mxu1 }
 0xd5f   : > { %v2815_v13 = vmul.f32 0.17677669, %v2716_v39  ;;  %v4473_v14 = vpop.f32.mrb[37].mxu1 }
 0xd60   : > { %v2719_v15 = vpop.f32.mrb[38].mxu1 }
 0xd61   : > { %v4474_v16 = vpop.f32.mrb[39].mxu1  ;;  %v2825_v17 = vsel %vm6989_vm12, %v2815_v13, -1e+09 }
 0xd62   : > { %v2832_v18 = vsel %vm2828_vm13, %v2825_v17, -inf }
 0xd63   : > { %2833 = vmax.xlane.f32.xlu0 %v2832_v18 }
 0xd6c   : > { %v2762_v19 = vpop.f32.mrb[40].mxu1 }
 0xd6d   : > { %v2816_v43 = vmul.f32 0.17677669, %v2762_v19  ;;  %v4479_v20 = vpop.f32.mrb[41].mxu1 }
 0xd6e   : > { %v2765_v21 = vpop.f32.mrb[42].mxu1 }
 0xd6f   : > { %v4480_v22 = vpop.f32.mrb[43].mxu1  ;;  %v2826_v45 = vsel %vm6989_vm12, %v2816_v43, -1e+09 }
 0xd70   : > { %v2835_v24 = vsel %vm2828_vm13, %v2826_v45, -inf }
 0xd71   : > { %2836 = vmax.xlane.f32.xlu0 %v2835_v24 }
 0xd74   : > { %v2808_v25 = vpop.f32.mrb[44].mxu1 }
 0xd75   : > { %v2817_v26 = vmul.f32 0.17677669, %v2808_v25  ;;  %v4485_v28 = vpop.f32.mrb[45].mxu1 }
 0xd76   : > { %v2811_v30 = vpop.f32.mrb[46].mxu1  ;;  %v4807_v28 = vld [vmem:[%s6693_s13 + $0x8] sm:$0xff]  }
 0xd77   : > { %v4486_v31 = vpop.f32.mrb[47].mxu1  ;;  %v2827_v32 = vsel %vm6989_vm12, %v2817_v26, -1e+09  ;;  %v4806_v26 = vld [vmem:[%s6693_s13] sm:$0xff]   ;;  %v4808_v30 = vld [vmem:[%s6693_s13 + $0x10] sm:$0xff]  }
 0xd78   : > { %v2838_v33 = vsel %vm2828_vm13, %v2827_v32, -inf }
 0xd79   : > { %2839 = vmax.xlane.f32.xlu1 %v2838_v33  ;;  %v4809_v33 = vld [vmem:[%s6693_s13 + $0x18] sm:$0xff]  }
 0xd7d   : > { %v2831_v34 = vpop.xlane.xlu1 %2830 }
 0xd7e   : > { %v2841_v1 = vsub.f32 %v2824_v11, %v2831_v34 }
 0xd80   : > { %v2845_v36 = vmul.f32 1.442695, %v2841_v1 }
 0xd82   : > { %4878 = vpow2.f32 %v2845_v36 }
 0xd8c   : > { %v4879_v37 = vpop.eup %4878 }
 0xd8d   : > { %v2853_v59 = vsel %vm2828_vm13, %v4879_v37, 0.0 }
 0xd8e   : > { %2854 = vadd.xlane.f32.xlu0 %v2853_v59  ;;  %v4810_v59 = vld [vmem:[%s6693_s13 + $0x20] sm:$0xff]  }
 0xdf0   : > { %v2834_v38 = vpop.xlane.xlu0 %2833 }
 0xdf1   : > { %v2842_v40 = vsub.f32 %v2825_v17, %v2834_v38 }
 0xdf3   : > { %v2847_v41 = vmul.f32 1.442695, %v2842_v40  ;;  %v4811_v40 = vld [vmem:[%s6693_s13 + $0x28] sm:$0xff]  }
 0xdf5   : > { %4880 = vpow2.f32 %v2847_v41  ;;  %v4812_v41 = vld [vmem:[%s6693_s13 + $0x30] sm:$0xff]  }
 0xdfe   : > { %v2837_v44 = vpop.xlane.xlu0 %2836 }
 0xdff   : > { %v4881_v35 = vpop.eup %4880  ;;  %v2843_v46 = vsub.f32 %v2826_v45, %v2837_v44  ;;  %v4813_v44 = vld [vmem:[%s6693_s13 + $0x38] sm:$0xff]  }
 0xe00   : > { %v2856_v47 = vsel %vm2828_vm13, %v4881_v35, 0.0 }
 0xe01   : > { %v2849_v48 = vmul.f32 1.442695, %v2843_v46  ;;  %2857 = vadd.xlane.f32.xlu1 %v2856_v47 }
 0xe03   : > { %4882 = vpow2.f32 %v2849_v48 }
 0xe06   : > { %v2840_v53 = vpop.xlane.xlu1 %2839 }
 0xe07   : > { %v2844_v55 = vsub.f32 %v2827_v32, %v2840_v53 }
 0xe09   : > { %v2851_v56 = vmul.f32 1.442695, %v2844_v55 }
 0xe0d   : > { %v4883_v49 = vpop.eup %4882 }
 0xe0e   : > { %v2859_v50 = vsel %vm2828_vm13, %v4883_v49, 0.0 }
 0xe0f   : > { %2860 = vadd.xlane.f32.xlu0 %v2859_v50 }
 0xe12   : > { %4724 = vrot.lane.b32.xlu1 %v6954_v29, %s5686_s17 }
 0xe1b   : > { %v2855_v51 = vpop.xlane.xlu0 %2854 }
 0xe1c   : > { %4884 = vrcp.f32 %v2855_v51 }
 0xe1d   : > { %4886 = vpow2.f32 %v2851_v56 }
 0xe25   : > { %4719 = vrot.lane.b32.xlu0 %v6954_v29, %s5687_s10 }
 0xe26   : > { %v4885_v57 = vpop.eup %4884 }
 0xe27   : > { %v2869_v58 = vmul.f32 %v4885_v57, %v4879_v37  ;;  %v4887_v61 = vpop.eup %4886  ;;  %v4206_v57 = vld [vmem:[%s1173_s6] ss:$0 sm:$0xff]  ;;  %s7365_s6 = sld [smem:[#allocation52_spill]] }
 0xe28   : > { %v2862_v62 = vsel %vm2828_vm13, %v4887_v61, 0.0 }
 0xe29   : > { %v2873_v60 = vpack.c.bf16 %v2869_v58, %v2869_v58 }
 0xe2b   : > { %4490 = vmatmul.mubr.msk.bf16.vlgmr.msra.gmra.mrb[20].mxu0 %vm2828_vm13, %v2873_v60 }
 0xe2c   : > { %4501 = vmatprep.mubr.msk.bf16.mxu0 %vm5685_vm0, %v5683_v9 }
 0xe2d   : > { %p4248_p11 = scmp.ne.s32.totalorder %s7365_s6, 1 }
 0xe36   : > { %2863 = vadd.xlane.f32.xlu1 %v2862_v62 }
 0xe47   : > { %4729 = vrot.lane.b32.xlu1 %v6954_v29, %s5688_s16 }
 0xe8e   : > { %v2858_v63 = vpop.xlane.xlu1 %2857 }
 0xe8f   : > { %4888 = vrcp.f32 %v2858_v63 }
 0xe92   : > { %v4725_v0 = vpop.permute.xlu1 %4724 }
 0xe93   : > { %v4727_v2 = vunpack.i.h.bf16 %v4725_v0  ;;  %v4726_v3 = vunpack.i.l.bf16 %v4725_v0 }
 0xe95   : > { %v2628_v4 = vpack.c.bf16 %v4727_v2, %v4726_v3 }
 0xe97   : > { %4500 = vmatpush3.bf16.msra.mxu0 %v2628_v4 }
 0xe98   : > { %4511 = vmatprep.subr.bf16.mxu0 %v5683_v9 }
 0xe99   : > { %v4889_v6 = vpop.eup %4888 }
 0xe9a   : > { %v2870_v11 = vmul.f32 %v4889_v6, %v4881_v35  ;;  %v4816_v6 = vld [vmem:[%s6701_s9 + $0x4] ss:$8 sps:$4 sm:$0xff]  }
 0xe9c   : > { %v2861_v5 = vpop.xlane.xlu0 %2860  ;;  %v2874_v39 = vpack.c.bf16 %v2870_v11, %v2870_v11  ;;  %v4820_v11 = vld [vmem:[%s6701_s9 + $0x20] ss:$8 sps:$4 sm:$0xff]  }
 0xe9d   : > { %4890 = vrcp.f32 %v2861_v5 }
 0xea0   : > { %v4720_v7 = vpop.permute.xlu0 %4719 }
 0xea1   : > { %v4722_v8 = vunpack.i.h.bf16 %v4720_v7  ;;  %v4721_v10 = vunpack.i.l.bf16 %v4720_v7  ;;  %v4819_v7 = vld [vmem:[%s6701_s9 + $0x14] ss:$8 sps:$4 sm:$0xff]  }
 0xea3   : > { %v2627_v12 = vpack.c.bf16 %v4722_v8, %v4721_v10  ;;  %v4817_v8 = vld [vmem:[%s6701_s9 + $0x10] ss:$8 sps:$4 sm:$0xff]   ;;  %v4822_v10 = vld [vmem:[%s6701_s9 + $0x24] ss:$8 sps:$4 sm:$0xff]  }
 0xea5   : > { %4494 = vmatpush3.bf16.msra.mxu1 %v2627_v12  ;;  %v4825_v12 = vld [vmem:[%s6701_s9 + $0x34] ss:$8 sps:$4 sm:$0xff]  }
 0xea6   : > { %4505 = vmatprep.subr.bf16.mxu1 %v5683_v9 }
 0xea7   : > { %v4891_v29 = vpop.eup %4890 }
 0xea8   : > { %v2871_v13 = vmul.f32 %v4891_v29, %v4883_v49  ;;  %4496 = vmatmul.mubr.msk.bf16.vlgmr.msra.gmra.mrb[48].mxu1 %vm2828_vm13, %v2874_v39  ;;  %v4823_v39 = vld [vmem:[%s6701_s9 + $0x30] ss:$8 sps:$4 sm:$0xff]   ;;  %v4828_v29 = vld [vmem:[%s6701_s9 + $0x44] ss:$8 sps:$4 sm:$0xff]  }
 0xea9   : > { %4507 = vmatprep.mubr.msk.bf16.mxu1 %vm5685_vm0, %v5683_v9 }
 0xeaa   : > { %v2875_v14 = vpack.c.bf16 %v2871_v13, %v2871_v13  ;;  %v4826_v13 = vld [vmem:[%s6701_s9 + $0x40] ss:$8 sps:$4 sm:$0xff]  }
 0xeac   : > { %4502 = vmatmul.mubr.msk.bf16.vlgmr.msra.gmra.mrb[24].mxu0 %vm2828_vm13, %v2875_v14  ;;  %v4831_v14 = vld [vmem:[%s6701_s9 + $0x54] ss:$8 sps:$4 sm:$0xff]  }
 0xead   : > { %4527 = vmatprep.mubr.msk.bf16.mxu0 %vm5685_vm0, %v5683_v9  ;;  %4512 = vmatpush3.bf16.msra.mxu0 %v4806_v26  ;;  %v4845_v26 = vld [vmem:[%s6710_s18 + $0x18] sm:$0xff]  }
 0xeae   : > { %4513 = vmatprep.subr.bf16.mxu0 %v5683_v9 }
 0xeb1   : > { %4514 = vmatpush3.bf16.msra.mxu0 %v4807_v28  ;;  %v4846_v28 = vld [vmem:[%s6710_s18 + $0x60] sm:$0xff]  }
 0xeb2   : > { %4515 = vmatprep.subr.bf16.mxu0 %v5683_v9 }
 0xeb5   : > { %4516 = vmatpush3.bf16.msra.mxu0 %v4808_v30  ;;  %v4847_v30 = vld [vmem:[%s6710_s18 + $0x20] sm:$0xff]  }
 0xeb6   : > { %4517 = vmatprep.subr.bf16.mxu0 %v5683_v9 }
 0xeb9   : > { %4518 = vmatpush3.bf16.msra.mxu0 %v4809_v33 }
 0xeba   : > { %4519 = vmatprep.subr.bf16.mxu0 %v5683_v9 }
 0xebd   : > { %4520 = vmatpush3.bf16.msra.mxu0 %v4810_v59 }
 0xebe   : > { %4521 = vmatprep.subr.bf16.mxu0 %v5683_v9 }
 0xec1   : > { %4522 = vmatpush3.bf16.msra.mxu0 %v4811_v40  ;;  %v4898_v40 = vld [vmem:[%s6645_s7] sm:$0x7] }
 0xec2   : > { %4523 = vmatprep.subr.bf16.mxu0 %v5683_v9 }
 0xec3   : > { %v2864_v15 = vpop.xlane.xlu1 %2863 }
 0xec4   : > { %4892 = vrcp.f32 %v2864_v15  ;;  %v4829_v15 = vld [vmem:[%s6701_s9 + $0x50] ss:$8 sps:$4 sm:$0xff]  }
 0xec5   : > { %4524 = vmatpush3.bf16.msra.mxu0 %v4812_v41  ;;  %v3198_v41 = vrot.slane %v4898_v40, %v6796_v52 }
 0xec6   : > { %4525 = vmatprep.subr.bf16.mxu0 %v5683_v9 }
 0xec7   : > { %v4730_v16 = vpop.permute.xlu1 %4729 }
 0xec8   : > { %v4732_v17 = vunpack.i.h.bf16 %v4730_v16  ;;  %v4731_v18 = vunpack.i.l.bf16 %v4730_v16  ;;  %v4834_v16 = vld [vmem:[%s6701_s9 + $0x64] ss:$8 sps:$4 sm:$0xff]  }
 0xec9   : > { %4526 = vmatpush3.bf16.msra.mxu0 %v4813_v44 }
 0xeca   : > { %v2629_v19 = vpack.c.bf16 %v4732_v17, %v4731_v18  ;;  %v4832_v17 = vld [vmem:[%s6701_s9 + $0x60] ss:$8 sps:$4 sm:$0xff]   ;;  %v4837_v18 = vld [vmem:[%s6701_s9 + $0x74] ss:$8 sps:$4 sm:$0xff]  }
 0xecc   : > { %4506 = vmatpush3.bf16.msra.mxu1 %v2629_v19  ;;  %v4835_v19 = vld [vmem:[%s6701_s9 + $0x70] ss:$8 sps:$4 sm:$0xff]  }
 0xecd   : > { %3315 = vmatprep.subr.bf16.mxu1 %v4816_v6 }
 0xece   : > { %v4893_v43 = vpop.eup %4892 }
 0xecf   : > { %v2872_v20 = vmul.f32 %v4893_v43, %v4887_v61  ;;  %v4838_v43 = vld [vmem:[%s6710_s18 + $0x40] sm:$0xff]  }
 0xed0   : > { %4333 = vmatprep.subr.bf16.mxu0 %v4838_v43 }
 0xed1   : > { %v2876_v21 = vpack.c.bf16 %v2872_v20, %v2872_v20  ;;  %v4839_v20 = vld [vmem:[%s6710_s18] sm:$0xff]  }
 0xed3   : > { %4508 = vmatmul.mubr.msk.bf16.vlgmr.msra.gmra.mrb[52].mxu1 %vm2828_vm13, %v2876_v21  ;;  %v4840_v21 = vld [vmem:[%s6710_s18 + $0x48] sm:$0xff]  }
 0xed4   : > { %3347 = vmatprep.mubr.bf16.mxu1 %v5684_v23 }
 0xefe   : > { %v2914_v22 = vpop.f32.mrb[20].mxu0 }
 0xeff   : > { %v4491_v45 = vpop.f32.mrb[21].mxu0 }
 0xf00   : > { %v2917_v24 = vpop.f32.mrb[22].mxu0  ;;  %v4842_v45 = vld [vmem:[%s6710_s18 + $0x50] sm:$0xff]  }
 0xf01   : > { %v4492_v25 = vpop.f32.mrb[23].mxu0  ;;  %v4843_v24 = vld [vmem:[%s6710_s18 + $0x10] sm:$0xff]  }
 0xf02   : > { %v4844_v25 = vld [vmem:[%s6710_s18 + $0x58] sm:$0xff]  }
 0xf7b   : > { %v2957_v31 = vpop.f32.mrb[48].mxu1 }
 0xf7c   : > { %3050 = vrot.lane.b32.xlu0 %v2957_v31, %s5688_s16  ;;  %v4497_v23 = vpop.f32.mrb[49].mxu1  ;;  %v4848_v31 = vld [vmem:[%s6710_s18 + $0x68] sm:$0xff]  }
 0xf7d   : > { %v2960_v32 = vpop.f32.mrb[50].mxu1  ;;  %v4849_v23 = vld [vmem:[%s6710_s18 + $0x28] sm:$0xff]  }
 0xf7e   : > { %v4498_v34 = vpop.f32.mrb[51].mxu1 }
 0xf7f   : > { %v3000_v1 = vpop.f32.mrb[24].mxu0 }
 0xf80   : > { %3054 = vrot.lane.b32.xlu1 %v3000_v1, %s5686_s17  ;;  %v4503_v36 = vpop.f32.mrb[25].mxu0 }
 0xf81   : > { %v3003_v37 = vpop.f32.mrb[26].mxu0 }
 0xf82   : > { %v4504_v38 = vpop.f32.mrb[27].mxu0 }
 0xfa6   : > { %v3043_v35 = vpop.f32.mrb[52].mxu1 }
 0xfa7   : > { %3058 = vrot.lane.b32.xlu0 %v3043_v35, %s5687_s10  ;;  %v4509_v46 = vpop.f32.mrb[53].mxu1  ;;  %v4899_v35 = vld [vmem:[%s6652_s5] sm:$0x7] }
 0xfa8   : > { %v3046_v47 = vpop.f32.mrb[54].mxu1  ;;  %v3204_v46 = vrot.slane %v4899_v35, %v6796_v52 }
 0xfa9   : > { %v4510_v48 = vpop.f32.mrb[55].mxu1 }
 0xfee   : > { %v3051_v49 = vpop.permute.xlu0 %3050 }
 0xfef   : > { %v3061_v51 = vsel %vm1711_vm4, %v2914_v22, %v3051_v49  ;;  %v4841_v22 = vld [vmem:[%s6710_s18 + $0x8] sm:$0xff]  }
 0xff2   : > { %v3055_v50 = vpop.permute.xlu1 %3054 }
 0xff3   : > { %v3062_v53 = vsel %vm2153_vm7, %v3061_v51, %v3055_v50  ;;  %v4850_v51 = vld [vmem:[%s6710_s18 + $0x70] sm:$0xff]  }
0x1019   : > { %v3059_v55 = vpop.permute.xlu0 %3058 }
0x101a   : > { %v3063_v56 = vsel %vm2155_vm8, %v3062_v53, %v3059_v55  ;;  %v4851_v53 = vld [vmem:[%s6710_s18 + $0x30] sm:$0xff]   ;;  %v4852_v55 = vld [vmem:[%s6710_s18 + $0x78] sm:$0xff]  }
0x101b   : > { %v3064_v9 = vpack.c.bf16 %v3063_v56, %v3063_v56  ;;  %v4853_v56 = vld [vmem:[%s6710_s18 + $0x38] sm:$0xff]  }
0x101d   : > { %4528 = vmatmul.mubr.bf16.vlgmr.msra.gmra.mrb[28].mxu0 %v3064_v9  ;;  %v3223_v9 = vld [vmem:[%s6707_s8] sm:$0x3] }
0x101e   : > { %4334 = vmatpush3.bf16.msra.mxu0 %v4839_v20 }
0x101f   : > { %4335 = vmatprep.subr.bf16.mxu0 %v4840_v21  ;;  %v4249_v21 = vld [vmem:[#allocation32] ss:$0 sm:$0xff] (!%p4248_p11) }
0x1022   : > { %4336 = vmatpush3.bf16.msra.mxu0 %v4841_v22 }
0x1023   : > { %4337 = vmatprep.subr.bf16.mxu0 %v4842_v45 }
0x1026   : > { %4338 = vmatpush3.bf16.msra.mxu0 %v4843_v24  ;;  %v4250_v24 = vld [vmem:[#allocation34] ss:$0 sm:$0xff] (!%p4248_p11) }
0x1027   : > { %4339 = vmatprep.subr.bf16.mxu0 %v4844_v25 }
0x102a   : > { %4340 = vmatpush3.bf16.msra.mxu0 %v4845_v26 }
0x102b   : > { %4341 = vmatprep.subr.bf16.mxu0 %v4846_v28 }
0x102e   : > { %4342 = vmatpush3.bf16.msra.mxu0 %v4847_v30 }
0x102f   : > { %4343 = vmatprep.subr.bf16.mxu0 %v4848_v31 }
0x1032   : > { %4344 = vmatpush3.bf16.msra.mxu0 %v4849_v23 }
0x1033   : > { %4345 = vmatprep.subr.bf16.mxu0 %v4850_v51 }
0x1036   : > { %4346 = vmatpush3.bf16.msra.mxu0 %v4851_v53 }
0x1037   : > { %4347 = vmatprep.subr.bf16.mxu0 %v4852_v55 }
0x103a   : > { %4348 = vmatpush3.bf16.msra.mxu0 %v4853_v56 }
0x10f0   : > { %v3170_v58 = vpop.f32.mrb[28].mxu0 }
0x10f1   : > { %v3171_v60 = vadd.f32 %v4206_v57, %v3170_v58  ;;  %v4529_v61 = vpop.f32.mrb[29].mxu0  ;;  %v3228_v57 = vrot.slane %v3223_v9, %v6778_v42  ;;  %v3232_v58 = vrot.slane %v3223_v9, %v6800_v54  ;;  %v4247_v42 = vld [vmem:[%s1208_s0] ss:$0 sm:$0xff] }
0x10f2   : > { %v3173_v62 = vpop.f32.mrb[30].mxu0 }
0x10f3   : > { %v7052_v63 = vadd.f32 %v3171_v60, %v6904_v27  ;;  %v4530_v0 = vpop.f32.mrb[31].mxu0  ;;  %v4814_v27 = vld [vmem:[%s6701_s9] ss:$8 sps:$4 sm:$0xff]  }
0x10f4   : > { %3316 = vmatpush1.bf16.msra.mxu1 %v4814_v27 }
0x10f5   : > { %3177 = vadd.xlane.f32.xlu1 %v7052_v63  ;;  %3317 = vmatprep.subr.bf16.mxu1 %v4819_v7 }
0x10f8   : > { %3318 = vmatpush1.bf16.msra.mxu1 %v4817_v8 }
0x10f9   : > { %3319 = vmatprep.subr.bf16.mxu1 %v4822_v10 }
0x10fc   : > { %3320 = vmatpush1.bf16.msra.mxu1 %v4820_v11 }
0x10fd   : > { %3321 = vmatprep.subr.bf16.mxu1 %v4825_v12 }
0x1100   : > { %3322 = vmatpush1.bf16.msra.mxu1 %v4823_v39 }
0x1101   : > { %3323 = vmatprep.subr.bf16.mxu1 %v4828_v29 }
0x1104   : > { %3324 = vmatpush1.bf16.msra.mxu1 %v4826_v13 }
0x1105   : > { %3325 = vmatprep.subr.bf16.mxu1 %v4831_v14 }
0x1108   : > { %3326 = vmatpush1.bf16.msra.mxu1 %v4829_v15 }
0x1109   : > { %3327 = vmatprep.subr.bf16.mxu1 %v4834_v16 }
0x110c   : > { %3328 = vmatpush1.bf16.msra.mxu1 %v4832_v17 }
0x110d   : > { %3329 = vmatprep.subr.bf16.mxu1 %v4837_v18 }
0x1110   : > { %3330 = vmatpush1.bf16.msra.mxu1 %v4835_v19 }
0x1182   : > { %v3178_v2 = vpop.xlane.xlu1 %3177 }
0x1183   : > { %v3179_v3 = vmul.f32 0.0078125, %v3178_v2 }
0x1185   : > { %v7056_v4 = vsub.f32 %v7052_v63, %v3179_v3 }
0x1187   : > { %v3181_v5 = vmul.f32 %v7056_v4, %v7056_v4  ;;  %v3199_v44 = vmul.f32 %v3198_v41, %v7056_v4 }
0x1189   : > { %3182 = vadd.xlane.f32.xlu0 %v3181_v5 }
0x1216   : > { %v3183_v32 = vpop.xlane.xlu0 %3182 }
0x1217   : > { %v3184_v33 = vmul.f32 0.007874016, %v3183_v32 }
0x1219   : > { %4894 = vrsqrt.f32 %v3184_v33  ;;  %vm3187_vm14 = vcmp.eq.f32.partialorder %v3184_v33, inf  ;;  %v3190_v36 = vand.u32 2147483648, %v3184_v33  ;;  %vm3189_vm15 = vcmp.eq.f32.partialorder %v3184_v33, 0.0 }
0x1223   : > { %v4895_v34 = vpop.eup %4894 }
0x1224   : > { %v3186_v1 = vmul.f32 %v4895_v34, %v3184_v33 }
0x1226   : > { %v3188_v37 = vsel %vm3187_vm14, %v3184_v33, %v3186_v1 }
0x1227   : > { %v3191_v59 = vsel %vm3189_vm15, %v3190_v36, %v3188_v37 }
0x1228   : > { %v3192_v38 = vadd.f32 1e-06, %v3191_v59 }
0x122a   : > { %4896 = vrcp.f32 %v3192_v38 }
0x1234   : > { %v4897_v47 = vpop.eup %4896 }
0x1235   : > { %v3200_v48 = vmul.f32 %v4897_v47, %v3199_v44 }
0x1237   : > { %v3205_v49 = vadd.f32 %v3204_v46, %v3200_v48 }
0x1239   : > { %v3206_v50 = vpack.c.bf16 %v3205_v49, %v3205_v49 }
0x123b   : > { %3348 = vmatmul.mubr.bf16.vlgmr.msra.gmra.mrb[56].mxu1 %v3206_v50 }
0x130e   : > { %v3349_v60 = vpop.f32.mrb[56].mxu1 }
0x130f   : > { %v3350_v52 = vadd.f32 %v3349_v60, %v3228_v57  ;;  %v3351_v61 = vpop.f32.mrb[57].mxu1 }
0x1310   : > { %v3352_v62 = vadd.f32 %v3351_v61, %v3232_v58  ;;  %v3353_v0 = vpop.f32.mrb[58].mxu1 }
0x1311   : > { %v3356_v2 = vmax.f32 %v3350_v52, 0.0  ;;  %v3354_v3 = vpop.f32.mrb[59].mxu1 }
0x1312   : > { %v3357_v4 = vmax.f32 %v3352_v62, 0.0 }
0x1313   : > { %v3358_v6 = vpack.c.bf16 %v3356_v2, %v3356_v2 }
0x1314   : > { %v3359_v5 = vpack.c.bf16 %v3357_v4, %v3357_v4 }
0x1316   : > { %3520 = vmatprep.mubr.bf16.mxu0 %v3359_v5 }
0x1317   : > { %3521 = vmatmul.mubr.bf16.vlgmr.msra.gmra.mrb[32].mxu0 %v3358_v6 }
0x13ea   : > { %v4349_v27 = vpop.f32.mrb[32].mxu0  ;;  %3540 = sbr.rel (%p4248_p11) target bundleno = 5431 (0x1537), region = 196 }
0x13eb   : > { %v4350_v7 = vpop.f32.mrb[33].mxu0 }
0x13ec   : > { %v4351_v8 = vadd.f32 %v4350_v7, %v4349_v27  ;;  %v4352_v10 = vpop.f32.mrb[34].mxu0 }
0x13ed   : > { %v4353_v54 = vpop.f32.mrb[35].mxu0 }
0x13ee   : > { %v3528_v11 = vadd.f32 %v4351_v8, %v7052_v63 }
0x13f0   : > { %v3536_v12 = vadd.f32 %v4247_v42, %v3528_v11 }
0x13f2   : > { %3543 = vadd.xlane.f32.xlu0 %v3536_v12 }
0x147f   : > { %v3544_v39 = vpop.xlane.xlu0 %3543 }
0x1480   : > { %v3545_v29 = vmul.f32 0.0078125, %v3544_v39 }
0x1482   : > { %v3546_v13 = vsub.f32 %v3536_v12, %v3545_v29 }
0x1484   : > { %v3547_v14 = vmul.f32 %v3546_v13, %v3546_v13  ;;  %v3567_v22 = vmul.f32 %v4249_v21, %v3546_v13 }
0x1486   : > { %3548 = vadd.xlane.f32.xlu0 %v3547_v14 }
0x1513   : > { %v3549_v15 = vpop.xlane.xlu0 %3548 }
0x1514   : > { %v3550_v16 = vmul.f32 0.007874016, %v3549_v15 }
0x1516   : > { %4900 = vrsqrt.f32 %v3550_v16  ;;  %vm3553_vm0 = vcmp.eq.f32.partialorder %v3550_v16, inf  ;;  %v3556_v19 = vand.u32 2147483648, %v3550_v16  ;;  %vm3555_vm1 = vcmp.eq.f32.partialorder %v3550_v16, 0.0 }
0x1520   : > { %v4901_v17 = vpop.eup %4900 }
0x1521   : > { %v3552_v18 = vmul.f32 %v4901_v17, %v3550_v16 }
0x1523   : > { %v3554_v43 = vsel %vm3553_vm0, %v3550_v16, %v3552_v18 }
0x1524   : > { %v3557_v63 = vsel %vm3555_vm1, %v3556_v19, %v3554_v43 }
0x1525   : > { %v3558_v20 = vadd.f32 1e-06, %v3557_v63 }
0x1527   : > { %4902 = vrcp.f32 %v3558_v20 }
0x1531   : > { %v4903_v45 = vpop.eup %4902 }
0x1532   : > { %v3568_v25 = vmul.f32 %v4903_v45, %v3567_v22 }
0x1534   : > { %v3575_v26 = vadd.f32 %v4250_v24, %v3568_v25 }
0x1536   : > { %3576 = vst [vmem:[%s6722_s15] sm:$0xff] %v3575_v26 }
0x1537 PF: > { %s7366_s13 = sld [smem:[#allocation52_spill]] }
0x153d   : > { %p4251_p6 = scmp.ge.s32.totalorder %s7366_s13, 1 }
0x153e   : > { %3581 = vst [vmem:[%s6722_s15] sm:$0xff] (!%p4251_p6), %v3536_v12 }
0x153f   : > { %3580 = sbr.rel (%p4251_p6) target bundleno = 5446 (0x1546), region = 200 }
0x1546 PF: > { %s7367_s18 = sld [smem:[#allocation53_spill]]  ;;  %s7368_s1 = sld [smem:[#allocation62_spill]] }
0x1547   : > { %s7369_s2 = sld [smem:[#allocation85_spill]]  ;;  %s3596_s9 = sshll.u32 %s6722_s15, 4  ;;  %s3597_s9 = int_to_ptr.vmem [resolvable:$true] %s3596_s9 }
0x1548   : > { %s3583_s8 = scalar_lea.sflag [#allocation4], %s6619_s27  ;;  %s5492_s0 = scalar_lea.vmem %s3597_s9, 128 }
0x1549   : > { %p5493_p5 = scmp.ne.s32.totalorder %s3597_s9, %s5492_s0  ;;  %s5689_s25 = smov [#allocation35]  }
0x154a   : > { %s5496_s21 = sshll.u32 %s5689_s25, 4  ;;  %s5497_s21 = int_to_ptr.vmem [resolvable:$false] %s5496_s21 }
0x154b   : > { %s5498_s17 = scalar_lea.vmem %s5497_s21, 256  ;;  %p5499_p7 = scmp.lt.s32.totalorder %s3597_s9, %s5497_s21 }
0x154c   : > { %s4253_s7 = sshll.u32 %s7367_s18, 7  ;;  %p7371_p10 = scmp.ne.s32.totalorder %s7368_s1, 0 }
0x154d   : > { %s7370_s23 = smov %s7369_s2  ;;  %s7111_s29 = scalar_lea.hbm %s7369_s2, %s4253_s7 }
0x154e   : > { %p5494_p3 = pnand %p5493_p5, %p7371_p10  ;;  %p5500_p1 = scmp.lt.s32.totalorder %s5498_s17, %s5492_s0 }
0x1550   : > { %p5495_p9 = pneg %p5494_p3  ;;  %p5501_p12 = por %p5500_p1, %p5499_p7 }
0x1552   : > { %p5502_p8 = pnand %p5501_p12, %p5495_p9 }
0x1554   : > { %5505 = shalt.err (!%p5502_p8)
}
0x1555   : > { %s5506_s27 = scalar_lea.hbm %s7111_s29, 128  ;;  %s5510_s16 = scalar_lea.hbm %s7370_s23, 256 }
0x1556   : > { %p5507_p2 = scmp.ne.s32.totalorder %s7111_s29, %s5506_s27  ;;  %p5511_p4 = scmp.lt.u32.totalorder %s7111_s29, %s7370_s23 }
0x1557   : > { %p5512_p11 = scmp.lt.u32.totalorder %s5510_s16, %s5506_s27  ;;  %p5514_p5 = scmp.lt.u32.totalorder %s5506_s27, %s7111_s29 }
0x1558   : > { %p5508_p13 = pnand %p5507_p2, %p7371_p10 }
0x1559   : > { %p5513_p6 = por %p5512_p11, %p5511_p4 }
0x155a   : > { %p5509_p0 = pneg %p5508_p13 }
0x155b   : > { %p5515_p3 = por %p5514_p5, %p5513_p6 }
0x155d   : > { %p5516_p9 = pnand %p5515_p3, %p5509_p0 }
0x155f   : > { %5519 = shalt.err (!%p5516_p9)
}
0x1560   : > { %4583 = dma.vmem_to_hbm [thread:$0]  (%p7371_p10), %s3597_s9, 128, %s7111_s29, %s3583_s8  }
0x1561 PF: > { %s7372_s11 = sld [smem:[#allocation54_spill]]  ;;  %s7373_s26 = sld [smem:[#allocation50_spill]] }
0x1562   : > { %s7374_s6 = sld [smem:[#allocation63_spill]] }
0x1567   : > { %p4600_p7 = scmp.ge.s32.totalorder %s7372_s11, 2  ;;  %s3608_s13 = sand.u32 1, %s7373_s26  }
0x1568   : > { %p7375_p1 = scmp.ne.s32.totalorder %s7374_s6, 0  ;;  %s3609_s18 = scalar_lea.sflag [#allocation4], %s3608_s13 }
0x156a   : > { %p4593_p12 = pnand %p4600_p7, %p7375_p1 }
0x156c   : > { %5609 = dma.done.wait (!%p4593_p12), %s3609_s18, 128  }
0x156d   : > { %5611 = vsyncadd (!%p4593_p12), %s3609_s18, 4294967168  ;;  %s65_s5 = sadd.s32 1, %s7372_s11   ;;  %s7376_s2 = sld [smem:[#allocation48_spill]] }
0x156e   : > { %p62_p8 = scmp.ge.s32.totalorder %s65_s5, 6   ;;  %s7377_s25 = sld [smem:[#allocation49_spill]] }
0x156f   : > { %s7378_s26 = sld [smem:[#allocation59_spill]]  ;;  %s7379_s1 = sld [smem:[#allocation51_spill]] }
0x1570   : > { %s7380_s28 = sld [smem:[#allocation60_spill]]  ;;  %s7381_s7 = sld [smem:[#allocation56_spill]] }
0x1571   : > { %s7382_s12 = sld [smem:[#allocation57_spill]]  ;;  %s7383_s27 = smov %s5630_s3 }
0x1572   : > { %s7385_s29 = smov %s5646_s4  ;;  %s7386_s0 = smov %s5650_s30 }
0x1573   :  { %64 = sbr.rel (!%p62_p8) target bundleno = 51 (0x33), region = 385 }
0x1575   : > { %s7384_s3 = smov %s7379_s1 }
0x1576   : > { %s7387_s4 = smov %s7381_s7 }
0x1577   : > { %s7388_s30 = smov %s7382_s12 }
0x157a   :  { %3614 = vsyncpa [#allocation3], 1 }
0x157b   :  { %3616 = vsyncpa [#allocation3 + $0x1], 1 }
0x157c   :  { %3617 = vsyncpa [#allocation6], 1 }
0x157d   :  { %3619 = vsyncpa [#allocation6 + $0x1], 1 }
0x157e   :  { %3620 = vsyncpa [#allocation9], 1 }
0x157f   :  { %3622 = vsyncpa [#allocation9 + $0x1], 1 }
0x1580   :  { %3623 = vsyncpa [#allocation12], 1 }
0x1581   :  { %3625 = vsyncpa [#allocation12 + $0x1], 1 }
0x1582   :  { %3626 = vsyncpa [#allocation15], 1 }
0x1583   :  { %3628 = vsyncpa [#allocation15 + $0x1], 1 }
0x1584   :  { %3629 = vsyncpa [#allocation18], 1 }
0x1585   :  { %3631 = vsyncpa [#allocation18 + $0x1], 1 }
0x1586   :  { %3632 = vsyncpa [#allocation21], 1 }
0x1587   :  { %3634 = vsyncpa [#allocation21 + $0x1], 1 }
0x1588   :  { %3635 = vsyncpa [#allocation24], 1 }
0x1589   :  { %3637 = vsyncpa [#allocation24 + $0x1], 1 }
0x158a   :  { %3638 = vsyncpa [#allocation27], 1 }
0x158b   :  { %3640 = vsyncpa [#allocation27 + $0x1], 1 }
0x158c   :  { %3641 = vsyncpa [#allocation30], 1 }
0x158d   :  { %3643 = vsyncpa [#allocation30 + $0x1], 1 }
0x158e   :  { %3644 = vsyncpa [#allocation33], 1 }
0x158f   :  { %3645 = vsyncpa [#allocation4], 1 }
0x1590   :  { %3647 = vsyncpa [#allocation4 + $0x1], 1 }

</bundles_post_ra>
